<compile_context>
chip_gen: v7x
topology: tpu7x:2x2x1
jax: 0.10.0
libtpu: 0.0.40
codegen_flags: <defaults>
</compile_context>

<pallas_src>
import jax
import jax.numpy as jnp
import numpy as np
from jax import lax
from jax.experimental import pallas as pl
from jax.experimental.pallas import tpu as pltpu

_VMEM_BUDGET_BYTES = 36 * 1024 * 1024   # per-step working-set cap (all gens)
_VMEM_LIMIT_CAP = 48 * 1024 * 1024      # < v7x's 64 MiB physical per TC


def _make_bottleneck_kernel(B, H, W, Cin, P, stride, dilation):
    assert stride == 1, "identity residual path only (stride must be 1)"
    pad = dilation
    Hp, Wp = H + 2 * pad, W + 2 * pad
    Ho = (H + 2 * pad - 2 * dilation - 1) // stride + 1
    Wo = (W + 2 * pad - 2 * dilation - 1) // stride + 1
    Cout = 4 * P
    M = B * H * W
    Mo = B * Ho * Wo

    def kernel(x_ref, w1_ref, w2_ref, w3_ref, b1_ref, b2_ref, b3_ref,
               out_ref, pad_ref):
        # ---- conv1 (1x1, BN scale pre-folded into w1) + bias + relu --------
        x_bf = x_ref[...].reshape(M, Cin).astype(jnp.bfloat16)
        o1 = jnp.dot(x_bf, w1_ref[...], preferred_element_type=jnp.float32)
        o1 = jnp.maximum(o1 + b1_ref[...], 0.0)

        # ---- conv2 (3x3, stride=1, dilation, padding=dilation) + bias + relu
        # bf16 padded scratch: zero only the top/bottom pad rows (wide
        # full-width stores); the left/right pad columns are never written --
        # their stale contents are masked out of the taps in-register below.
        zrow = jnp.zeros((B, pad, Wp, P), jnp.bfloat16)
        pad_ref[:, pl.ds(0, pad), :, :] = zrow
        pad_ref[:, pl.ds(Hp - pad, pad), :, :] = zrow
        pad_ref[:, pl.ds(pad, H), pl.ds(pad, W), :] = (
            o1.reshape(B, H, W, P).astype(jnp.bfloat16))

        # W-border masks (hoisted): kw==0 taps have their first `pad` output
        # columns in the conv zero-padding, kw==2 taps their last `pad`.
        wi = lax.broadcasted_iota(jnp.int32, (1, 1, Wo, P), 2)
        left_ok = wi >= pad
        right_ok = wi < (Wo - pad)

        acc = None
        for kw in range(3):
            w0 = kw * dilation
            for kh in range(3):
                h0 = kh * dilation
                # Read taps straight from the ref: H offset is free address
                # math, W offset is an offset vector load (no value relayout).
                tap = pad_ref[:, pl.ds(h0, Ho), pl.ds(w0, Wo), :]
                if kw == 0:
                    tap = jnp.where(left_ok, tap, 0)
                elif kw == 2:
                    tap = jnp.where(right_ok, tap, 0)
                m = jnp.dot(tap.reshape(Mo, P), w2_ref[kh, kw],
                            preferred_element_type=jnp.float32)
                acc = m if acc is None else acc + m
        o2 = jnp.maximum(acc + b2_ref[...], 0.0)

        # ---- conv3 (1x1, BN scale pre-folded) + bias ------------------------
        o3 = jnp.dot(o2.astype(jnp.bfloat16), w3_ref[...],
                     preferred_element_type=jnp.float32)
        o3 = o3 + b3_ref[...]

        # ---- identity residual add + relu (re-read x from the VMEM block) ---
        res = x_ref[...].reshape(Mo, Cout)
        out = jnp.maximum(o3 + res, 0.0)
        out_ref[...] = out.reshape(B, Ho, Wo, Cout).astype(out_ref.dtype)

    return kernel, Ho, Wo, Hp, Wp


def _step_vmem_bytes(B, H, W, Cin, P, dilation, x_bytes=4, out_bytes=4):
    """Rough per-grid-step VMEM working set (double-buffered I/O blocks,
    bf16 scratch, live f32 intermediates, folded weights)."""
    pad = dilation
    Hp, Wp = H + 2 * pad, W + 2 * pad
    Cout = 4 * P
    blocks = 2 * B * H * W * Cin * x_bytes + 2 * B * H * W * Cout * out_bytes
    scratch = B * Hp * Wp * P * 2
    live = B * H * W * (P * 4 + P * 4 + Cout * 4 + Cin * 4)
    weights = 2 * 2 * (Cin * P + 9 * P * P + P * Cout) + 4 * (2 * P + Cout) * 2
    return blocks + scratch + live + weights


def _pick_images_per_step(N, H, W, Cin, P, dilation,
                          budget_bytes=_VMEM_BUDGET_BYTES):
    """Pack B images per grid step so the per-step VMEM working set stays
    under budget while keeping enough grid steps: prefer >=4 (so v7x's two
    TensorCores each get >=2 pipelined steps), else >=2, else whatever fits."""
    divisors = [b for b in range(1, N + 1) if N % b == 0]

    def fits(b):
        return _step_vmem_bytes(b, H, W, Cin, P, dilation) <= budget_bytes

    for min_steps in (4, 2, 1):
        cands = [b for b in divisors if fits(b) and N // b >= min_steps]
        if cands:
            return max(cands)
    return 1


def bottleneck_pallas(x_nhwc, w1, w2, w3, s1, b1, s2, b2, s3, b3,
                      *, stride=1, dilation=1, images_per_step=None,
                      out_dtype=None):
    """x_nhwc: (N, H, W, Cin) float32. Returns (N, Ho, Wo, 4*planes) NHWC."""
    N, H, W, Cin = x_nhwc.shape
    P = w1.shape[1]
    Cout = 4 * P
    # TODO(synk): downsample / non-identity residual path not implemented.
    assert Cin == Cout and stride == 1, "identity residual path only"
    out_dtype = out_dtype or x_nhwc.dtype

    if images_per_step is None:
        B = _pick_images_per_step(N, H, W, Cin, P, dilation)
    else:
        B = images_per_step
        assert N % B == 0, "images_per_step must divide N"
        assert _step_vmem_bytes(B, H, W, Cin, P, dilation) <= _VMEM_BUDGET_BYTES, \
            "images_per_step exceeds the per-step VMEM budget"
    G = N // B

    kernel, Ho, Wo, Hp, Wp = _make_bottleneck_kernel(
        B, H, W, Cin, P, stride, dilation)

    # Fold BN scales into conv weights once, in plain JAX; bf16 MXU operands.
    w1f = (w1 * s1[None, :]).astype(jnp.bfloat16)                  # (Cin, P)
    w2f = (w2 * s2[None, None, None, :]).astype(jnp.bfloat16)      # (3,3,P,P)
    w3f = (w3 * s3[None, :]).astype(jnp.bfloat16)                  # (P, Cout)
    b1v = b1.reshape(1, P).astype(jnp.float32)
    b2v = b2.reshape(1, P).astype(jnp.float32)
    b3v = b3.reshape(1, Cout).astype(jnp.float32)

    in_specs = [
        pl.BlockSpec((B, H, W, Cin), lambda n: (n, 0, 0, 0)),      # x
        pl.BlockSpec((Cin, P), lambda n: (0, 0)),                  # w1 folded
        pl.BlockSpec((3, 3, P, P), lambda n: (0, 0, 0, 0)),        # w2 folded
        pl.BlockSpec((P, Cout), lambda n: (0, 0)),                 # w3 folded
        pl.BlockSpec((1, P), lambda n: (0, 0)),                    # b1
        pl.BlockSpec((1, P), lambda n: (0, 0)),                    # b2
        pl.BlockSpec((1, Cout), lambda n: (0, 0)),                 # b3
    ]
    out_specs = pl.BlockSpec((B, Ho, Wo, Cout), lambda n: (n, 0, 0, 0))

    est = _step_vmem_bytes(B, H, W, Cin, P, dilation)
    vmem_limit = int(min(_VMEM_LIMIT_CAP, max(32 * 1024 * 1024, 2 * est)))

    fn = pl.pallas_call(
        kernel,
        out_shape=jax.ShapeDtypeStruct((N, Ho, Wo, Cout), out_dtype),
        grid=(G,),
        in_specs=in_specs,
        out_specs=out_specs,
        scratch_shapes=[pltpu.VMEM((B, Hp, Wp, P), jnp.bfloat16)],
        compiler_params=pltpu.CompilerParams(
            dimension_semantics=("parallel",),
            vmem_limit_bytes=vmem_limit),
    )
    return fn(x_nhwc, w1f, w2f, w3f, b1v, b2v, b3v)


# ------------------------- pure-JAX reference -------------------------------
def bottleneck_ref(x, w1, w2, w3, s1, b1, s2, b2, s3, b3,
                   *, stride=1, dilation=1):
    """Reference with the kernel's numerics: BN scales folded into bf16 conv
    weights, bf16 conv operands, f32 accumulation & elementwise math."""
    w1f = (w1 * s1[None, :]).astype(jnp.bfloat16)
    w2f = (w2 * s2[None, None, None, :]).astype(jnp.bfloat16)
    w3f = (w3 * s3[None, :]).astype(jnp.bfloat16)

    def conv1x1(h, w):
        return lax.conv_general_dilated(
            h.astype(jnp.bfloat16), w.reshape(1, 1, *w.shape), (1, 1),
            [(0, 0), (0, 0)], dimension_numbers=("NHWC", "HWIO", "NHWC"),
            preferred_element_type=jnp.float32)

    o = jnp.maximum(conv1x1(x, w1f) + b1, 0.0)
    o = lax.conv_general_dilated(
        o.astype(jnp.bfloat16), w2f, (stride, stride),
        [(dilation, dilation)] * 2, rhs_dilation=(dilation, dilation),
        dimension_numbers=("NHWC", "HWIO", "NHWC"),
        preferred_element_type=jnp.float32)
    o = jnp.maximum(o + b2, 0.0)
    o = conv1x1(o, w3f) + b3
    return jnp.maximum(o + x, 0.0)


def _bn_fold(gamma, beta, mean, var, eps=1e-5):
    scale = gamma / jnp.sqrt(var + eps)
    bias = beta - mean * scale
    return scale, bias


if __name__ == "__main__":
    # Shapes consistent with Bottleneck(inplanes=32, planes=8, stride=1).
    N, H, W = 2, 16, 16
    planes = 8
    inplanes = planes * 4     # identity residual requires inplanes == 4*planes
    stride, dilation = 1, 1

    key = jax.random.PRNGKey(0)
    ks = jax.random.split(key, 8)

    # Input in PyTorch NCHW convention, transposed to NHWC for the kernel.
    x_nchw = jax.random.normal(ks[0], (N, inplanes, H, W), jnp.float32)
    x_nhwc = jnp.transpose(x_nchw, (0, 2, 3, 1))

    # Conv weights (channels-last friendly layouts).
    w1 = 0.1 * jax.random.normal(ks[1], (inplanes, planes), jnp.float32)      # 1x1
    w2 = 0.1 * jax.random.normal(ks[2], (3, 3, planes, planes), jnp.float32)  # HWIO
    w3 = 0.1 * jax.random.normal(ks[3], (planes, planes * 4), jnp.float32)    # 1x1

    # Synthetic BatchNorm parameters (inference-mode folding).
    def bn_params(k, c):
        k1, k2, k3, k4 = jax.random.split(k, 4)
        gamma = 0.5 + jax.random.uniform(k1, (c,), jnp.float32)
        beta = 0.1 * jax.random.normal(k2, (c,), jnp.float32)
        mean = 0.1 * jax.random.normal(k3, (c,), jnp.float32)
        var = 0.5 + jax.random.uniform(k4, (c,), jnp.float32)
        return _bn_fold(gamma, beta, mean, var)

    s1, b1 = bn_params(ks[4], planes)
    s2, b2 = bn_params(ks[5], planes)
    s3, b3 = bn_params(ks[6], planes * 4)

    out = bottleneck_pallas(x_nhwc, w1, w2, w3, s1, b1, s2, b2, s3, b3,
                            stride=stride, dilation=dilation)
    out = jax.block_until_ready(out)

    ref = bottleneck_ref(x_nhwc, w1, w2, w3, s1, b1, s2, b2, s3, b3,
                         stride=stride, dilation=dilation)
    np.testing.assert_allclose(np.asarray(out), np.asarray(ref),
                               rtol=1e-3, atol=1e-3)
    print("KERNEL_OK")
</pallas_src>

<mosaic_0001>
module attributes {stable_mosaic.version = 11 : i64} {
  func.func @kernel(%arg0: i32, %arg1: memref<1x16x16x32xf32, #tpu.memory_space<vmem>>, %arg2: memref<32x8xbf16, #tpu.memory_space<vmem>>, %arg3: memref<3x3x8x8xbf16, #tpu.memory_space<vmem>>, %arg4: memref<8x32xbf16, #tpu.memory_space<vmem>>, %arg5: memref<1x8xf32, #tpu.memory_space<vmem>>, %arg6: memref<1x8xf32, #tpu.memory_space<vmem>>, %arg7: memref<1x32xf32, #tpu.memory_space<vmem>>, %arg8: memref<1x16x16x32xf32, #tpu.memory_space<vmem>>, %arg9: memref<1x18x18x8xbf16, #tpu.memory_space<vmem>>) attributes {dimension_semantics = [#tpu.dimension_semantics<parallel>], iteration_bounds = array<i64: 2>, scalar_prefetch = 0 : i64, scratch_operands = 1 : i64, tpu.core_type = #tpu.core_type<tc>, window_params = [{transform_indices = @transform_0, window_bounds = array<i64: 1, 16, 16, 32>}, {pipeline_mode = #tpu.pipeline_mode<synchronous>, transform_indices = @transform_1, window_bounds = array<i64: 32, 8>}, {pipeline_mode = #tpu.pipeline_mode<synchronous>, transform_indices = @transform_2, window_bounds = array<i64: 3, 3, 8, 8>}, {pipeline_mode = #tpu.pipeline_mode<synchronous>, transform_indices = @transform_3, window_bounds = array<i64: 8, 32>}, {pipeline_mode = #tpu.pipeline_mode<synchronous>, transform_indices = @transform_4, window_bounds = array<i64: 1, 8>}, {pipeline_mode = #tpu.pipeline_mode<synchronous>, transform_indices = @transform_5, window_bounds = array<i64: 1, 8>}, {pipeline_mode = #tpu.pipeline_mode<synchronous>, transform_indices = @transform_6, window_bounds = array<i64: 1, 32>}, {transform_indices = @transform_7, window_bounds = array<i64: 1, 16, 16, 32>}]} {
    %c0 = arith.constant 0 : index
    %c0_0 = arith.constant 0 : index
    %c0_1 = arith.constant 0 : index
    %c0_2 = arith.constant 0 : index
    %0 = vector.load %arg1[%c0, %c0_0, %c0_1, %c0_2] : memref<1x16x16x32xf32, #tpu.memory_space<vmem>>, vector<1x16x16x32xf32>
    %1 = vector.shape_cast %0 : vector<1x16x16x32xf32> to vector<256x32xf32>
    %2 = arith.truncf %1 : vector<256x32xf32> to vector<256x32xbf16>
    %c0_3 = arith.constant 0 : index
    %c0_4 = arith.constant 0 : index
    %3 = vector.load %arg2[%c0_3, %c0_4] : memref<32x8xbf16, #tpu.memory_space<vmem>>, vector<32x8xbf16>
    %cst = arith.constant dense<0.000000e+00> : vector<256x8xf32>
    %4 = tpu.matmul %2, %3, %cst {dimension_numbers = #tpu.dot_dimension_numbers<[1], [0], [0], [1], [0, 0, 1, 1], [], []>} : vector<256x32xbf16>, vector<32x8xbf16>, vector<256x8xf32> -> vector<256x8xf32>
    %c0_5 = arith.constant 0 : index
    %c0_6 = arith.constant 0 : index
    %5 = vector.load %arg5[%c0_5, %c0_6] : memref<1x8xf32, #tpu.memory_space<vmem>>, vector<1x8xf32>
    %6 = vector.broadcast %5 : vector<1x8xf32> to vector<256x8xf32>
    %7 = arith.addf %4, %6 : vector<256x8xf32>
    %cst_7 = arith.constant 0.000000e+00 : f32
    %8 = vector.broadcast %cst_7 : f32 to vector<256x8xf32>
    %9 = arith.maximumf %7, %8 : vector<256x8xf32>
    %cst_8 = arith.constant 0.000000e+00 : bf16
    %10 = vector.broadcast %cst_8 : bf16 to vector<1x1x18x8xbf16>
    %c0_9 = arith.constant 0 : index
    %c0_10 = arith.constant 0 : index
    %c0_11 = arith.constant 0 : index
    %c0_12 = arith.constant 0 : index
    %11 = vector.load %arg9[%c0_9, %c0_10, %c0_11, %c0_12] : memref<1x18x18x8xbf16, #tpu.memory_space<vmem>>, vector<1x1x18x8xbf16>
    tpu.vector_store %arg9[%c0_9, %c0_10, %c0_11, %c0_12], %10 {strides = array<i32>} : memref<1x18x18x8xbf16, #tpu.memory_space<vmem>>, vector<1x1x18x8xbf16>,
    %c0_13 = arith.constant 0 : index
    %c17 = arith.constant 17 : index
    %c0_14 = arith.constant 0 : index
    %c0_15 = arith.constant 0 : index
    %12 = vector.load %arg9[%c0_13, %c17, %c0_14, %c0_15] : memref<1x18x18x8xbf16, #tpu.memory_space<vmem>>, vector<1x1x18x8xbf16>
    tpu.vector_store %arg9[%c0_13, %c17, %c0_14, %c0_15], %10 {strides = array<i32>} : memref<1x18x18x8xbf16, #tpu.memory_space<vmem>>, vector<1x1x18x8xbf16>,
    %13 = vector.shape_cast %9 : vector<256x8xf32> to vector<1x16x16x8xf32>
    %14 = arith.truncf %13 : vector<1x16x16x8xf32> to vector<1x16x16x8xbf16>
    %c0_16 = arith.constant 0 : index
    %c1 = arith.constant 1 : index
    %c1_17 = arith.constant 1 : index
    %c0_18 = arith.constant 0 : index
    %15 = vector.load %arg9[%c0_16, %c1, %c1_17, %c0_18] : memref<1x18x18x8xbf16, #tpu.memory_space<vmem>>, vector<1x16x16x8xbf16>
    tpu.vector_store %arg9[%c0_16, %c1, %c1_17, %c0_18], %14 {strides = array<i32>} : memref<1x18x18x8xbf16, #tpu.memory_space<vmem>>, vector<1x16x16x8xbf16>,
    %16 = tpu.iota {dimensions = array<i32: 2>} : vector<1x1x16x8xi32>
    %c1_i32 = arith.constant 1 : i32
    %17 = vector.broadcast %c1_i32 : i32 to vector<1x1x16x8xi32>
    %18 = arith.cmpi sge, %16, %17 : vector<1x1x16x8xi32>
    %c15_i32 = arith.constant 15 : i32
    %19 = vector.broadcast %c15_i32 : i32 to vector<1x1x16x8xi32>
    %20 = arith.cmpi slt, %16, %19 : vector<1x1x16x8xi32>
    %c0_19 = arith.constant 0 : index
    %c0_20 = arith.constant 0 : index
    %c0_21 = arith.constant 0 : index
    %c0_22 = arith.constant 0 : index
    %21 = vector.load %arg9[%c0_19, %c0_20, %c0_21, %c0_22] : memref<1x18x18x8xbf16, #tpu.memory_space<vmem>>, vector<1x16x16x8xbf16>
    %c0_i32 = arith.constant 0 : i32
    %22 = arith.sitofp %c0_i32 : i32 to bf16
    %23 = vector.shape_cast %18 : vector<1x1x16x8xi1> to vector<1x1x16x8xi1>
    %24 = vector.broadcast %23 : vector<1x1x16x8xi1> to vector<1x16x16x8xi1>
    %25 = vector.broadcast %22 : bf16 to vector<1x16x16x8xbf16>
    %26 = arith.select %24, %21, %25 : vector<1x16x16x8xi1>, vector<1x16x16x8xbf16>
    %27 = vector.shape_cast %26 : vector<1x16x16x8xbf16> to vector<256x8xbf16>
    %c0_23 = arith.constant 0 : index
    %c0_24 = arith.constant 0 : index
    %c0_25 = arith.constant 0 : index
    %c0_26 = arith.constant 0 : index
    %28 = vector.load %arg3[%c0_23, %c0_24, %c0_25, %c0_26] : memref<3x3x8x8xbf16, #tpu.memory_space<vmem>>, vector<1x1x8x8xbf16>
    %29 = vector.shape_cast %28 : vector<1x1x8x8xbf16> to vector<8x8xbf16>
    %cst_27 = arith.constant dense<0.000000e+00> : vector<256x8xf32>
    %30 = tpu.matmul %27, %29, %cst_27 {dimension_numbers = #tpu.dot_dimension_numbers<[1], [0], [0], [1], [0, 0, 1, 1], [], []>} : vector<256x8xbf16>, vector<8x8xbf16>, vector<256x8xf32> -> vector<256x8xf32>
    %c0_28 = arith.constant 0 : index
    %c1_29 = arith.constant 1 : index
    %c0_30 = arith.constant 0 : index
    %c0_31 = arith.constant 0 : index
    %31 = vector.load %arg9[%c0_28, %c1_29, %c0_30, %c0_31] : memref<1x18x18x8xbf16, #tpu.memory_space<vmem>>, vector<1x16x16x8xbf16>
    %c0_i32_32 = arith.constant 0 : i32
    %32 = arith.sitofp %c0_i32_32 : i32 to bf16
    %33 = vector.shape_cast %18 : vector<1x1x16x8xi1> to vector<1x1x16x8xi1>
    %34 = vector.broadcast %33 : vector<1x1x16x8xi1> to vector<1x16x16x8xi1>
    %35 = vector.broadcast %32 : bf16 to vector<1x16x16x8xbf16>
    %36 = arith.select %34, %31, %35 : vector<1x16x16x8xi1>, vector<1x16x16x8xbf16>
    %37 = vector.shape_cast %36 : vector<1x16x16x8xbf16> to vector<256x8xbf16>
    %c1_33 = arith.constant 1 : index
    %c0_34 = arith.constant 0 : index
    %c0_35 = arith.constant 0 : index
    %c0_36 = arith.constant 0 : index
    %38 = vector.load %arg3[%c1_33, %c0_34, %c0_35, %c0_36] : memref<3x3x8x8xbf16, #tpu.memory_space<vmem>>, vector<1x1x8x8xbf16>
    %39 = vector.shape_cast %38 : vector<1x1x8x8xbf16> to vector<8x8xbf16>
    %cst_37 = arith.constant dense<0.000000e+00> : vector<256x8xf32>
    %40 = tpu.matmul %37, %39, %cst_37 {dimension_numbers = #tpu.dot_dimension_numbers<[1], [0], [0], [1], [0, 0, 1, 1], [], []>} : vector<256x8xbf16>, vector<8x8xbf16>, vector<256x8xf32> -> vector<256x8xf32>
    %41 = arith.addf %30, %40 : vector<256x8xf32>
    %c0_38 = arith.constant 0 : index
    %c2 = arith.constant 2 : index
    %c0_39 = arith.constant 0 : index
    %c0_40 = arith.constant 0 : index
    %42 = vector.load %arg9[%c0_38, %c2, %c0_39, %c0_40] : memref<1x18x18x8xbf16, #tpu.memory_space<vmem>>, vector<1x16x16x8xbf16>
    %c0_i32_41 = arith.constant 0 : i32
    %43 = arith.sitofp %c0_i32_41 : i32 to bf16
    %44 = vector.shape_cast %18 : vector<1x1x16x8xi1> to vector<1x1x16x8xi1>
    %45 = vector.broadcast %44 : vector<1x1x16x8xi1> to vector<1x16x16x8xi1>
    %46 = vector.broadcast %43 : bf16 to vector<1x16x16x8xbf16>
    %47 = arith.select %45, %42, %46 : vector<1x16x16x8xi1>, vector<1x16x16x8xbf16>
    %48 = vector.shape_cast %47 : vector<1x16x16x8xbf16> to vector<256x8xbf16>
    %c2_42 = arith.constant 2 : index
    %c0_43 = arith.constant 0 : index
    %c0_44 = arith.constant 0 : index
    %c0_45 = arith.constant 0 : index
    %49 = vector.load %arg3[%c2_42, %c0_43, %c0_44, %c0_45] : memref<3x3x8x8xbf16, #tpu.memory_space<vmem>>, vector<1x1x8x8xbf16>
    %50 = vector.shape_cast %49 : vector<1x1x8x8xbf16> to vector<8x8xbf16>
    %cst_46 = arith.constant dense<0.000000e+00> : vector<256x8xf32>
    %51 = tpu.matmul %48, %50, %cst_46 {dimension_numbers = #tpu.dot_dimension_numbers<[1], [0], [0], [1], [0, 0, 1, 1], [], []>} : vector<256x8xbf16>, vector<8x8xbf16>, vector<256x8xf32> -> vector<256x8xf32>
    %52 = arith.addf %41, %51 : vector<256x8xf32>
    %c0_47 = arith.constant 0 : index
    %c0_48 = arith.constant 0 : index
    %c1_49 = arith.constant 1 : index
    %c0_50 = arith.constant 0 : index
    %53 = vector.load %arg9[%c0_47, %c0_48, %c1_49, %c0_50] : memref<1x18x18x8xbf16, #tpu.memory_space<vmem>>, vector<1x16x16x8xbf16>
    %54 = vector.shape_cast %53 : vector<1x16x16x8xbf16> to vector<256x8xbf16>
    %c0_51 = arith.constant 0 : index
    %c1_52 = arith.constant 1 : index
    %c0_53 = arith.constant 0 : index
    %c0_54 = arith.constant 0 : index
    %55 = vector.load %arg3[%c0_51, %c1_52, %c0_53, %c0_54] : memref<3x3x8x8xbf16, #tpu.memory_space<vmem>>, vector<1x1x8x8xbf16>
    %56 = vector.shape_cast %55 : vector<1x1x8x8xbf16> to vector<8x8xbf16>
    %cst_55 = arith.constant dense<0.000000e+00> : vector<256x8xf32>
    %57 = tpu.matmul %54, %56, %cst_55 {dimension_numbers = #tpu.dot_dimension_numbers<[1], [0], [0], [1], [0, 0, 1, 1], [], []>} : vector<256x8xbf16>, vector<8x8xbf16>, vector<256x8xf32> -> vector<256x8xf32>
    %58 = arith.addf %52, %57 : vector<256x8xf32>
    %c0_56 = arith.constant 0 : index
    %c1_57 = arith.constant 1 : index
    %c1_58 = arith.constant 1 : index
    %c0_59 = arith.constant 0 : index
    %59 = vector.load %arg9[%c0_56, %c1_57, %c1_58, %c0_59] : memref<1x18x18x8xbf16, #tpu.memory_space<vmem>>, vector<1x16x16x8xbf16>
    %60 = vector.shape_cast %59 : vector<1x16x16x8xbf16> to vector<256x8xbf16>
    %c1_60 = arith.constant 1 : index
    %c1_61 = arith.constant 1 : index
    %c0_62 = arith.constant 0 : index
    %c0_63 = arith.constant 0 : index
    %61 = vector.load %arg3[%c1_60, %c1_61, %c0_62, %c0_63] : memref<3x3x8x8xbf16, #tpu.memory_space<vmem>>, vector<1x1x8x8xbf16>
    %62 = vector.shape_cast %61 : vector<1x1x8x8xbf16> to vector<8x8xbf16>
    %cst_64 = arith.constant dense<0.000000e+00> : vector<256x8xf32>
    %63 = tpu.matmul %60, %62, %cst_64 {dimension_numbers = #tpu.dot_dimension_numbers<[1], [0], [0], [1], [0, 0, 1, 1], [], []>} : vector<256x8xbf16>, vector<8x8xbf16>, vector<256x8xf32> -> vector<256x8xf32>
    %64 = arith.addf %58, %63 : vector<256x8xf32>
    %c0_65 = arith.constant 0 : index
    %c2_66 = arith.constant 2 : index
    %c1_67 = arith.constant 1 : index
    %c0_68 = arith.constant 0 : index
    %65 = vector.load %arg9[%c0_65, %c2_66, %c1_67, %c0_68] : memref<1x18x18x8xbf16, #tpu.memory_space<vmem>>, vector<1x16x16x8xbf16>
    %66 = vector.shape_cast %65 : vector<1x16x16x8xbf16> to vector<256x8xbf16>
    %c2_69 = arith.constant 2 : index
    %c1_70 = arith.constant 1 : index
    %c0_71 = arith.constant 0 : index
    %c0_72 = arith.constant 0 : index
    %67 = vector.load %arg3[%c2_69, %c1_70, %c0_71, %c0_72] : memref<3x3x8x8xbf16, #tpu.memory_space<vmem>>, vector<1x1x8x8xbf16>
    %68 = vector.shape_cast %67 : vector<1x1x8x8xbf16> to vector<8x8xbf16>
    %cst_73 = arith.constant dense<0.000000e+00> : vector<256x8xf32>
    %69 = tpu.matmul %66, %68, %cst_73 {dimension_numbers = #tpu.dot_dimension_numbers<[1], [0], [0], [1], [0, 0, 1, 1], [], []>} : vector<256x8xbf16>, vector<8x8xbf16>, vector<256x8xf32> -> vector<256x8xf32>
    %70 = arith.addf %64, %69 : vector<256x8xf32>
    %c0_74 = arith.constant 0 : index
    %c0_75 = arith.constant 0 : index
    %c2_76 = arith.constant 2 : index
    %c0_77 = arith.constant 0 : index
    %71 = vector.load %arg9[%c0_74, %c0_75, %c2_76, %c0_77] : memref<1x18x18x8xbf16, #tpu.memory_space<vmem>>, vector<1x16x16x8xbf16>
    %c0_i32_78 = arith.constant 0 : i32
    %72 = arith.sitofp %c0_i32_78 : i32 to bf16
    %73 = vector.shape_cast %20 : vector<1x1x16x8xi1> to vector<1x1x16x8xi1>
    %74 = vector.broadcast %73 : vector<1x1x16x8xi1> to vector<1x16x16x8xi1>
    %75 = vector.broadcast %72 : bf16 to vector<1x16x16x8xbf16>
    %76 = arith.select %74, %71, %75 : vector<1x16x16x8xi1>, vector<1x16x16x8xbf16>
    %77 = vector.shape_cast %76 : vector<1x16x16x8xbf16> to vector<256x8xbf16>
    %c0_79 = arith.constant 0 : index
    %c2_80 = arith.constant 2 : index
    %c0_81 = arith.constant 0 : index
    %c0_82 = arith.constant 0 : index
    %78 = vector.load %arg3[%c0_79, %c2_80, %c0_81, %c0_82] : memref<3x3x8x8xbf16, #tpu.memory_space<vmem>>, vector<1x1x8x8xbf16>
    %79 = vector.shape_cast %78 : vector<1x1x8x8xbf16> to vector<8x8xbf16>
    %cst_83 = arith.constant dense<0.000000e+00> : vector<256x8xf32>
    %80 = tpu.matmul %77, %79, %cst_83 {dimension_numbers = #tpu.dot_dimension_numbers<[1], [0], [0], [1], [0, 0, 1, 1], [], []>} : vector<256x8xbf16>, vector<8x8xbf16>, vector<256x8xf32> -> vector<256x8xf32>
    %81 = arith.addf %70, %80 : vector<256x8xf32>
    %c0_84 = arith.constant 0 : index
    %c1_85 = arith.constant 1 : index
    %c2_86 = arith.constant 2 : index
    %c0_87 = arith.constant 0 : index
    %82 = vector.load %arg9[%c0_84, %c1_85, %c2_86, %c0_87] : memref<1x18x18x8xbf16, #tpu.memory_space<vmem>>, vector<1x16x16x8xbf16>
    %c0_i32_88 = arith.constant 0 : i32
    %83 = arith.sitofp %c0_i32_88 : i32 to bf16
    %84 = vector.shape_cast %20 : vector<1x1x16x8xi1> to vector<1x1x16x8xi1>
    %85 = vector.broadcast %84 : vector<1x1x16x8xi1> to vector<1x16x16x8xi1>
    %86 = vector.broadcast %83 : bf16 to vector<1x16x16x8xbf16>
    %87 = arith.select %85, %82, %86 : vector<1x16x16x8xi1>, vector<1x16x16x8xbf16>
    %88 = vector.shape_cast %87 : vector<1x16x16x8xbf16> to vector<256x8xbf16>
    %c1_89 = arith.constant 1 : index
    %c2_90 = arith.constant 2 : index
    %c0_91 = arith.constant 0 : index
    %c0_92 = arith.constant 0 : index
    %89 = vector.load %arg3[%c1_89, %c2_90, %c0_91, %c0_92] : memref<3x3x8x8xbf16, #tpu.memory_space<vmem>>, vector<1x1x8x8xbf16>
    %90 = vector.shape_cast %89 : vector<1x1x8x8xbf16> to vector<8x8xbf16>
    %cst_93 = arith.constant dense<0.000000e+00> : vector<256x8xf32>
    %91 = tpu.matmul %88, %90, %cst_93 {dimension_numbers = #tpu.dot_dimension_numbers<[1], [0], [0], [1], [0, 0, 1, 1], [], []>} : vector<256x8xbf16>, vector<8x8xbf16>, vector<256x8xf32> -> vector<256x8xf32>
    %92 = arith.addf %81, %91 : vector<256x8xf32>
    %c0_94 = arith.constant 0 : index
    %c2_95 = arith.constant 2 : index
    %c2_96 = arith.constant 2 : index
    %c0_97 = arith.constant 0 : index
    %93 = vector.load %arg9[%c0_94, %c2_95, %c2_96, %c0_97] : memref<1x18x18x8xbf16, #tpu.memory_space<vmem>>, vector<1x16x16x8xbf16>
    %c0_i32_98 = arith.constant 0 : i32
    %94 = arith.sitofp %c0_i32_98 : i32 to bf16
    %95 = vector.shape_cast %20 : vector<1x1x16x8xi1> to vector<1x1x16x8xi1>
    %96 = vector.broadcast %95 : vector<1x1x16x8xi1> to vector<1x16x16x8xi1>
    %97 = vector.broadcast %94 : bf16 to vector<1x16x16x8xbf16>
    %98 = arith.select %96, %93, %97 : vector<1x16x16x8xi1>, vector<1x16x16x8xbf16>
    %99 = vector.shape_cast %98 : vector<1x16x16x8xbf16> to vector<256x8xbf16>
    %c2_99 = arith.constant 2 : index
    %c2_100 = arith.constant 2 : index
    %c0_101 = arith.constant 0 : index
    %c0_102 = arith.constant 0 : index
    %100 = vector.load %arg3[%c2_99, %c2_100, %c0_101, %c0_102] : memref<3x3x8x8xbf16, #tpu.memory_space<vmem>>, vector<1x1x8x8xbf16>
    %101 = vector.shape_cast %100 : vector<1x1x8x8xbf16> to vector<8x8xbf16>
    %cst_103 = arith.constant dense<0.000000e+00> : vector<256x8xf32>
    %102 = tpu.matmul %99, %101, %cst_103 {dimension_numbers = #tpu.dot_dimension_numbers<[1], [0], [0], [1], [0, 0, 1, 1], [], []>} : vector<256x8xbf16>, vector<8x8xbf16>, vector<256x8xf32> -> vector<256x8xf32>
    %103 = arith.addf %92, %102 : vector<256x8xf32>
    %c0_104 = arith.constant 0 : index
    %c0_105 = arith.constant 0 : index
    %104 = vector.load %arg6[%c0_104, %c0_105] : memref<1x8xf32, #tpu.memory_space<vmem>>, vector<1x8xf32>
    %105 = vector.broadcast %104 : vector<1x8xf32> to vector<256x8xf32>
    %106 = arith.addf %103, %105 : vector<256x8xf32>
    %cst_106 = arith.constant 0.000000e+00 : f32
    %107 = vector.broadcast %cst_106 : f32 to vector<256x8xf32>
    %108 = arith.maximumf %106, %107 : vector<256x8xf32>
    %109 = arith.truncf %108 : vector<256x8xf32> to vector<256x8xbf16>
    %c0_107 = arith.constant 0 : index
    %c0_108 = arith.constant 0 : index
    %110 = vector.load %arg4[%c0_107, %c0_108] : memref<8x32xbf16, #tpu.memory_space<vmem>>, vector<8x32xbf16>
    %cst_109 = arith.constant dense<0.000000e+00> : vector<256x32xf32>
    %111 = tpu.matmul %109, %110, %cst_109 {dimension_numbers = #tpu.dot_dimension_numbers<[1], [0], [0], [1], [0, 0, 1, 1], [], []>} : vector<256x8xbf16>, vector<8x32xbf16>, vector<256x32xf32> -> vector<256x32xf32>
    %c0_110 = arith.constant 0 : index
    %c0_111 = arith.constant 0 : index
    %112 = vector.load %arg7[%c0_110, %c0_111] : memref<1x32xf32, #tpu.memory_space<vmem>>, vector<1x32xf32>
    %113 = vector.broadcast %112 : vector<1x32xf32> to vector<256x32xf32>
    %114 = arith.addf %111, %113 : vector<256x32xf32>
    %c0_112 = arith.constant 0 : index
    %c0_113 = arith.constant 0 : index
    %c0_114 = arith.constant 0 : index
    %c0_115 = arith.constant 0 : index
    %115 = vector.load %arg1[%c0_112, %c0_113, %c0_114, %c0_115] : memref<1x16x16x32xf32, #tpu.memory_space<vmem>>, vector<1x16x16x32xf32>
    %116 = vector.shape_cast %115 : vector<1x16x16x32xf32> to vector<256x32xf32>
    %117 = arith.addf %114, %116 : vector<256x32xf32>
    %cst_116 = arith.constant 0.000000e+00 : f32
    %118 = vector.broadcast %cst_116 : f32 to vector<256x32xf32>
    %119 = arith.maximumf %117, %118 : vector<256x32xf32>
    %120 = vector.shape_cast %119 : vector<256x32xf32> to vector<1x16x16x32xf32>
    %c0_117 = arith.constant 0 : index
    %c0_118 = arith.constant 0 : index
    %c0_119 = arith.constant 0 : index
    %c0_120 = arith.constant 0 : index
    %121 = vector.load %arg8[%c0_117, %c0_118, %c0_119, %c0_120] : memref<1x16x16x32xf32, #tpu.memory_space<vmem>>, vector<1x16x16x32xf32>
    tpu.vector_store %arg8[%c0_117, %c0_118, %c0_119, %c0_120], %120 {strides = array<i32>} : memref<1x16x16x32xf32, #tpu.memory_space<vmem>>, vector<1x16x16x32xf32>,
    return
  }
  func.func @transform_0(%arg0: i32) -> (i32, i32, i32, i32) {
    %c0_i32 = arith.constant 0 : i32
    %c0_i32_0 = arith.constant 0 : i32
    %c0_i32_1 = arith.constant 0 : i32
    %c0_i32_2 = arith.constant 0 : i32
    return %arg0, %c0_i32, %c0_i32_0, %c0_i32_1 : i32, i32, i32, i32
  }
  func.func @transform_1(%arg0: i32) -> (i32, i32) {
    %c0_i32 = arith.constant 0 : i32
    %c0_i32_0 = arith.constant 0 : i32
    %c0_i32_1 = arith.constant 0 : i32
    return %c0_i32, %c0_i32_0 : i32, i32
  }
  func.func @transform_2(%arg0: i32) -> (i32, i32, i32, i32) {
    %c0_i32 = arith.constant 0 : i32
    %c0_i32_0 = arith.constant 0 : i32
    %c0_i32_1 = arith.constant 0 : i32
    %c0_i32_2 = arith.constant 0 : i32
    %c0_i32_3 = arith.constant 0 : i32
    return %c0_i32, %c0_i32_0, %c0_i32_1, %c0_i32_2 : i32, i32, i32, i32
  }
  func.func @transform_3(%arg0: i32) -> (i32, i32) {
    %c0_i32 = arith.constant 0 : i32
    %c0_i32_0 = arith.constant 0 : i32
    %c0_i32_1 = arith.constant 0 : i32
    return %c0_i32, %c0_i32_0 : i32, i32
  }
  func.func @transform_4(%arg0: i32) -> (i32, i32) {
    %c0_i32 = arith.constant 0 : i32
    %c0_i32_0 = arith.constant 0 : i32
    %c0_i32_1 = arith.constant 0 : i32
    return %c0_i32, %c0_i32_0 : i32, i32
  }
  func.func @transform_5(%arg0: i32) -> (i32, i32) {
    %c0_i32 = arith.constant 0 : i32
    %c0_i32_0 = arith.constant 0 : i32
    %c0_i32_1 = arith.constant 0 : i32
    return %c0_i32, %c0_i32_0 : i32, i32
  }
  func.func @transform_6(%arg0: i32) -> (i32, i32) {
    %c0_i32 = arith.constant 0 : i32
    %c0_i32_0 = arith.constant 0 : i32
    %c0_i32_1 = arith.constant 0 : i32
    return %c0_i32, %c0_i32_0 : i32, i32
  }
  func.func @transform_7(%arg0: i32) -> (i32, i32, i32, i32) {
    %c0_i32 = arith.constant 0 : i32
    %c0_i32_0 = arith.constant 0 : i32
    %c0_i32_1 = arith.constant 0 : i32
    %c0_i32_2 = arith.constant 0 : i32
    return %arg0, %c0_i32, %c0_i32_0, %c0_i32_1 : i32, i32, i32, i32
  }
}

</mosaic_0001>

<bundles_post_ra>
// kernel: tpu_custom_call.1
= control target key start
LH: loop header
LB: loop body
LE: loop exit
PB: predicated region body
PF: predicated region fallthrough
CT: control target
= control target key end

     0   :  { %12 = vsyncpa [#allocation4], 0  ;;  %s10095_s0 = inlined_call_operand.hbm [shape: f32[2,16,16,32], index: 0, kind: input, shape index: {}]   ;;  %s10096_s1 = inlined_call_operand.vmem [shape: bf16[32,8], index: 1, kind: input, shape index: {}]   ;;  %s10097_s2 = inlined_call_operand.hbm [shape: bf16[3,3,8,8], index: 2, kind: input, shape index: {}]   ;;  %s10098_s3 = inlined_call_operand.vmem [shape: bf16[8,32], index: 3, kind: input, shape index: {}]   ;;  %s10099_s4 = inlined_call_operand.vmem [shape: f32[1,8], index: 4, kind: input, shape index: {}]   ;;  %s10100_s5 = inlined_call_operand.vmem [shape: f32[1,8], index: 5, kind: input, shape index: {}]   ;;  %s10101_s6 = inlined_call_operand.vmem [shape: f32[1,32], index: 6, kind: input, shape index: {}]   ;;  %s10102_s7 = inlined_call_operand.hbm [shape: f32[2,16,16,32], index: 7, kind: output, shape index: {}]  }
   0x1   :  { %14 = vsyncpa [#allocation4 + $0x1], 0 }
   0x2   :  { %15 = vsyncpa [#allocation7], 0 }
   0x3   :  { %16 = vsyncpa [#allocation5], 0 }
   0x4   :  { %18 = vsyncpa [#allocation5 + $0x1], 0  ;;  %s8204_s24 = smov 0   ;;  %s8206_s25 = smov 0  }
   0x5   :  { %s8208_s26 = smov 0   ;;  %s8210_s27 = smov 0  }
   0x6 LB: > { %s8225_s28 = sadd.s32 4294967295, %s8151_s27   ;;  %s6584_s29 = sadd.s32 4294967294, %s8151_s27   ;;  %s8151_s27 = sphi %s8210_s27, %s10138_s27   ;;  %s8147_s26 = sphi %s8208_s26, %s10137_s26   ;;  %s8143_s25 = sphi %s8206_s25, %s10136_s25   ;;  %s8139_s24 = sphi %s8204_s24, %s10135_s24  }
   0x7   : > { %p44_p0 = scmp.ne.s32.totalorder %s8143_s25, %s8139_s24  ;;  %p10103_p1 = scmp.eq.s32.totalorder %s8225_s28, 0 }
   0x8   : > { %p200_p3 = scmp.eq.s32.totalorder %s6584_s29, 1  ;;  %p6585_p5 = scmp.ge.s32.totalorder %s8151_s27, 1 }
   0x9   : > { %p8234_p4 = por %p10103_p1, %p44_p0  ;;  %p207_p7 = scmp.lt.s32.totalorder %s8151_s27, 3 }
   0xa   : > { %p8239_p6 = por %p200_p3, %p44_p0  ;;  %s8153_s10 = smov [#allocation6]  }
   0xb   : > { %s10106_s30 = scalar_select %p8234_p4, 1, 0 }
   0xc   : > { %s10107_s8 = scalar_select %p8239_p6, 1, 0 }
   0xd   : > { %p8244_p8 = pnand %p6585_p5, %p207_p7  ;;  %s222_s11 = sshll.u32 %s8153_s10, 4  ;;  %s8248_s11 = int_to_ptr.vmem [resolvable:$true] %s222_s11 }
   0xe   : > { %s8260_s13 = sadd.s32 1, %s8151_s27   ;;  %s31_s14 = sadd.s32 1, %s8147_s26 }
   0xf   : > { %s10108_s9 = scalar_select %p8244_p8, 1, 0 }
  0x10   : > { %p7880_p9 = pneg %p8244_p8  ;;  %s28_s15 = ssub.s32 %s8151_s27, %s8260_s13 }
  0x11   : > { %s8023_s18 = scalar_lea.hbm %s10097_s2, 576 }
  0x12   : > { %p8255_p11 = pnand %p7880_p9, %p10103_p1  ;;  %p8024_p12 = scmp.ne.s32.totalorder %s10097_s2, %s8023_s18 }
  0x13   : > { %p8030_p5 = scmp.lt.u32.totalorder %s8023_s18, %s10097_s2 }
  0x14   : > { %p8025_p13 = pneg %p8255_p11 }
  0x16   : > { %p8026_p0 = pnand %p8025_p13, %p8024_p12 }
  0x18   : > { %p8027_p3 = pneg %p8026_p0 }
  0x1a   : > { %p8032_p7 = pnand %p8030_p5, %p8027_p3 }
  0x1c   : > { %8035 = shalt.err (!%p8032_p7)
}
  0x1d   : > { %s8036_s23 = scalar_lea.vmem %s8248_s11, 576  ;;  %p8044_p2 = scmp.lt.s32.totalorder %s8248_s11, %s8248_s11 }
  0x1e   : > { %p8037_p9 = scmp.ne.s32.totalorder %s8248_s11, %s8036_s23  ;;  %p8045_p6 = scmp.lt.s32.totalorder %s8036_s23, %s8036_s23 }
  0x20   : > { %p8039_p10 = pnand %p8037_p9, %p8025_p13  ;;  %p8046_p4 = por %p8045_p6, %p8044_p2 }
  0x22   : > { %p8040_p1 = pneg %p8039_p10 }
  0x24   : > { %p8047_p8 = pnand %p8046_p4, %p8040_p1 }
  0x26   : > { %8050 = shalt.err (!%p8047_p8)
}
  0x27   : > { %s8154_s29 = smov 64   ;;  %s8155_s10 = smov 4  }
  0x28   : > { %7883 = dma.hbm_to_vmem [thread:$0]  (!%p8255_p11), %s10097_s2, 576, %s8248_s11, [#allocation7], %s8154_s29, %s8154_s29, %s8155_s10  }
  0x29   : > { %p29_p2 = scmp.eq.s32.totalorder %s28_s15, 0  ;;  %p38_p1 = scmp.ne.s32.totalorder %s8147_s26, %s8143_s25 }
  0x2a   : > { %p39_p4 = scmp.eq.s32.totalorder %s8151_s27, 0  ;;  %p7893_p6 = scmp.lt.s32.totalorder %s8151_s27, 2 }
  0x2b   : > { %s8291_s18 = scalar_select %p29_p2, %s8147_s26, %s31_s14  }
  0x2c   : > { %p40_p8 = por %p39_p4, %p38_p1  ;;  %p10110_p10 = scmp.eq.s32.totalorder %s8225_s28, 1 }
  0x2d   : > { %s248_s20 = sand.u32 1, %s8147_s26   ;;  %s7005_s21 = sshll.u32 %s8151_s27, 12 }
  0x2e   : > { %p8295_p12 = por %p10110_p10, %p38_p1  ;;  %s6588_s22 = sshll.u32 %s248_s20, 8 }
  0x2f   : > { %s8304_s16 = scalar_lea.hbm %s10095_s0, %s7005_s21  ;;  %s252_s11 = scalar_lea.vmem [#allocation3], %s6588_s22 }
  0x30   : > { %s259_s14 = sshll.u32 %s252_s11, 4  ;;  %p8306_p11 = pnand %p7893_p6, %p40_p8  ;;  %s8310_s14 = int_to_ptr.vmem [resolvable:$true] %s259_s14 }
  0x31   : > { %s8312_s29 = scalar_lea.sflag [#allocation4], %s248_s20  ;;  %s8051_s10 = scalar_lea.hbm %s8304_s16, 4096 }
  0x32   : > { %p8052_p13 = scmp.ne.s32.totalorder %s8304_s16, %s8051_s10  ;;  %p8053_p0 = pneg %p8306_p11 }
  0x33   : > { %s8056_s22 = scalar_lea.hbm %s10095_s0, 8192  ;;  %p8057_p7 = scmp.lt.u32.totalorder %s8304_s16, %s10095_s0 }
  0x34   : > { %p8054_p3 = pnand %p8053_p0, %p8052_p13  ;;  %p8058_p9 = scmp.lt.u32.totalorder %s8056_s22, %s8051_s10 }
  0x35   : > { %p8060_p1 = scmp.lt.u32.totalorder %s8051_s10, %s8304_s16 }
  0x36   : > { %p8055_p5 = pneg %p8054_p3  ;;  %p8059_p2 = por %p8058_p9, %p8057_p7 }
  0x38   : > { %p8061_p4 = por %p8060_p1, %p8059_p2 }
  0x3a   : > { %p8062_p6 = pnand %p8061_p4, %p8055_p5 }
  0x3c   : > { %8065 = shalt.err (!%p8062_p6)
}
  0x3d   : > { %s8066_s20 = scalar_lea.vmem %s8310_s14, 4096  ;;  %s8156_s11 = smov [#allocation3]  }
  0x3e   : > { %p8067_p8 = scmp.ne.s32.totalorder %s8310_s14, %s8066_s20  ;;  %s8071_s17 = sshll.u32 %s8156_s11, 4  ;;  %s8072_s17 = int_to_ptr.vmem [resolvable:$false] %s8071_s17 }
  0x3f   : > { %s8073_s21 = scalar_lea.vmem %s8072_s17, 8192  ;;  %p8074_p3 = scmp.lt.s32.totalorder %s8310_s14, %s8072_s17 }
  0x40   : > { %p8069_p10 = pnand %p8067_p8, %p8053_p0  ;;  %p8075_p7 = scmp.lt.s32.totalorder %s8073_s21, %s8066_s20 }
  0x42   : > { %p8070_p13 = pneg %p8069_p10  ;;  %p8076_p9 = por %p8075_p7, %p8074_p3 }
  0x44   : > { %p8077_p2 = pnand %p8076_p9, %p8070_p13 }
  0x46   : > { %8080 = shalt.err (!%p8077_p2)
}
  0x47   : > { %s8157_s10 = smov 128   ;;  %s8158_s22 = smov 8  }
  0x48   : > { %7887 = dma.hbm_to_vmem [thread:$0]  (!%p8306_p11), %s8304_s16, 4096, %s8310_s14, %s8312_s29, %s8157_s10, %s8157_s10, %s8158_s22  }
  0x49   : > { %p10113_p0 = scmp.ne.s32.totalorder %s10108_s9, 0 }
  0x4a   : > { %s8343_s12 = sand.u32 (!%p10113_p0), 1, %s8143_s25   ;;  %p10114_p5 = scmp.ne.s32.totalorder (!%p10113_p0), %s10106_s30, 0 }
  0x4b   : > { %271 = sbr.rel (%p10113_p0) target bundleno = 1279 (0x4ff), region = 48  ;;  %s6592_s23 = sshll.u32 (!%p10113_p0), %s8343_s12, 8 }
  0x4c   : > { %s274_s20 = scalar_lea.sflag (!%p10113_p0), [#allocation4], %s8343_s12  ;;  %s8349_s11 = scalar_lea.vmem (!%p10113_p0), [#allocation3], %s6592_s23 }
  0x52   : > { %8126 = dma.done.wait (%p10114_p5), %s274_s20, 4096  }
  0x53   : > { %8128 = vsyncadd (%p10114_p5), %s274_s20, 4294963200  ;;  %p10115_p11 = scmp.eq.s32.totalorder %s8225_s28, 0 }
  0x55   : > { %8130 = dma.done.wait (%p10115_p11), [#allocation7], 576   ;;  %p10116_p1 = pmov %p10115_p11 }
  0x56   : > { %v7937_v0 = vld [vmem:[%s10096_s1] sm:$0xff]   ;;  %v7938_v1 = vld [vmem:[%s10096_s1 + $0x8] sm:$0xff]   ;;  %v315_v2 = vld [vmem:[%s8349_s11] sm:$0xff]  ;;  %vm386_vm0 = vcmask 261120   ;;  %vm1447_vm1 = vcmask 1043456   ;;  %vm628_vm2 = vcmask 60416   ;;  %v1174_v53 = vlaneseq }
  0x57   : > { %8132 = vsyncadd (%p10116_p1), [#allocation7], 4294966720  ;;  %7227 = vmatprep.subr.bf16.mxu0 %v7937_v0  ;;  %v316_v3 = vld [vmem:[%s8349_s11 + $0x8] sm:$0xff]  ;;  %v317_v5 = vld [vmem:[%s8349_s11 + $0x10] sm:$0xff]  ;;  %vm631_vm3 = vcmask 57344   ;;  %v8159_v52 = vmov 0  }
  0x58   : > { %7228 = vmatpush3.bf16.msra.mxu0 %v7937_v0  ;;  %v347_v4 = vpack.c.bf16 %v316_v3, %v315_v2  ;;  %v318_v6 = vld [vmem:[%s8349_s11 + $0x18] sm:$0xff]  ;;  %v319_v7 = vld [vmem:[%s8349_s11 + $0x20] sm:$0xff]  ;;  %v320_v8 = vld [vmem:[%s8349_s11 + $0x28] sm:$0xff]  ;;  %629 = vst.msk [vmem:[#allocation2] sm:$0xf] %vm628_vm2, %v8159_v52  ;;  %v8421_v54 = vshrl.u32 %v1174_v53, 7 }
  0x59   : > { %7229 = vmatprep.subr.bf16.mxu0 %v7938_v1  ;;  %v348_v9 = vpack.c.bf16 %v318_v6, %v317_v5  ;;  %v349_v10 = vpack.c.bf16 %v320_v8, %v319_v7  ;;  %v321_v11 = vld [vmem:[%s8349_s11 + $0x30] sm:$0xff]  ;;  %v322_v12 = vld [vmem:[%s8349_s11 + $0x38] sm:$0xff]  ;;  %v323_v13 = vld [vmem:[%s8349_s11 + $0x40] sm:$0xff]  ;;  %630 = vst.msk [vmem:[#allocation2 + $0x4] sm:$0xf] %vm628_vm2, %v8159_v52  ;;  %vm8160_vm4 = vmmov 1  }
  0x5a   : > { %7231 = vmatprep.mubr.msk.bf16.mxu0 %vm386_vm0, %v347_v4  ;;  %v324_v14 = vld [vmem:[%s8349_s11 + $0x48] sm:$0xff]  ;;  %v350_v15 = vpack.c.bf16 %v322_v12, %v321_v11  ;;  %v325_v17 = vld [vmem:[%s8349_s11 + $0x50] sm:$0xff]  ;;  %v326_v18 = vld [vmem:[%s8349_s11 + $0x58] sm:$0xff]  ;;  %632 = vst.msk [vmem:[#allocation2 + $0x8] sm:$0x1] %vm631_vm3, %v8159_v52  ;;  %v1176_v55 = vadd.s32 8, %v8421_v54 }
  0x5b   : > { %v351_v16 = vpack.c.bf16 %v324_v14, %v323_v13  ;;  %v327_v19 = vld [vmem:[%s8349_s11 + $0x60] sm:$0xff]  ;;  %v328_v20 = vld [vmem:[%s8349_s11 + $0x68] sm:$0xff]  ;;  %v352_v21 = vpack.c.bf16 %v326_v18, %v325_v17  ;;  %v329_v23 = vld [vmem:[%s8349_s11 + $0x70] sm:$0xff]  ;;  %634 = vst.msk [vmem:[#allocation2 + $0xcc] sm:$0xf] %vm628_vm2, %v8159_v52  ;;  %vm4500_vm8 = vcmask 1040384  }
  0x5c   : > { %7230 = vmatpush3.bf16.msra.mxu0 %v7938_v1  ;;  %v353_v22 = vpack.c.bf16 %v328_v20, %v327_v19  ;;  %v330_v24 = vld [vmem:[%s8349_s11 + $0x78] sm:$0xff]  ;;  %v331_v25 = vld [vmem:[%s8349_s11 + $0x80] sm:$0xff]  ;;  %v332_v26 = vld [vmem:[%s8349_s11 + $0x88] sm:$0xff]  ;;  %635 = vst.msk [vmem:[#allocation2 + $0xd0] sm:$0xf] %vm628_vm2, %v8159_v52  ;;  %vm1180_vm6 = vcmp.lt.s32.totalorder %v1176_v55, 15 }
  0x5d   : > { %v354_v27 = vpack.c.bf16 %v330_v24, %v329_v23  ;;  %v355_v28 = vpack.c.bf16 %v332_v26, %v331_v25  ;;  %v333_v29 = vld [vmem:[%s8349_s11 + $0x90] sm:$0xff]  ;;  %v334_v30 = vld [vmem:[%s8349_s11 + $0x98] sm:$0xff]  ;;  %v335_v31 = vld [vmem:[%s8349_s11 + $0xa0] sm:$0xff]  ;;  %636 = vst.msk [vmem:[#allocation2 + $0xd4] sm:$0x1] %vm631_vm3, %v8159_v52  ;;  %vm4501_vm9 = vcmask 1044484  }
  0x5e   : > { %v336_v32 = vld [vmem:[%s8349_s11 + $0xa8] sm:$0xff]  ;;  %v356_v33 = vpack.c.bf16 %v334_v30, %v333_v29  ;;  %v337_v35 = vld [vmem:[%s8349_s11 + $0xb0] sm:$0xff]  ;;  %v338_v36 = vld [vmem:[%s8349_s11 + $0xb8] sm:$0xff]  ;;  %vm1058_vm11 = vsmask.f32 7938  ;;  %s9922_s16 = scalar_lea.vmem [#allocation8], %s6592_s23 }
  0x5f   : > { %7232 = vmatmul.mubr.msk.bf16.vlgmr.msra.gmra.mrb[0].mxu0 %vm386_vm0, %v348_v9  ;;  %v357_v34 = vpack.c.bf16 %v336_v32, %v335_v31  ;;  %v339_v37 = vld [vmem:[%s8349_s11 + $0xc0] sm:$0xff]  ;;  %v340_v38 = vld [vmem:[%s8349_s11 + $0xc8] sm:$0xff]  ;;  %v358_v39 = vpack.c.bf16 %v338_v36, %v337_v35  ;;  %v341_v41 = vld [vmem:[%s8349_s11 + $0xd0] sm:$0xff]  ;;  %vm733_vm12 = vsmask.f32 256  ;;  %s7038_s23 = sshll.u32 %s8225_s28, 12 }
  0x60   : > { %7235 = vmatprep.mubr.msk.bf16.mxu0 %vm386_vm0, %v349_v10  ;;  %v359_v40 = vpack.c.bf16 %v340_v38, %v339_v37  ;;  %v342_v42 = vld [vmem:[%s8349_s11 + $0xd8] sm:$0xff]  ;;  %v343_v43 = vld [vmem:[%s8349_s11 + $0xe0] sm:$0xff]  ;;  %v344_v44 = vld [vmem:[%s8349_s11 + $0xe8] sm:$0xff]  ;;  %vm734_vm13 = vsmask.f32 4368  ;;  %s6501_s14 = sshll.u32 %s9922_s16, 4  ;;  %s10043_s29 = scalar_lea.hbm %s10102_s7, %s7038_s23  ;;  %s10045_s14 = int_to_ptr.vmem [resolvable:$true] %s6501_s14 }
  0x61   : > { %v360_v45 = vpack.c.bf16 %v342_v42, %v341_v41  ;;  %v361_v46 = vpack.c.bf16 %v344_v44, %v343_v43  ;;  %v345_v47 = vld [vmem:[%s8349_s11 + $0xf0] sm:$0xff]  ;;  %v346_v48 = vld [vmem:[%s8349_s11 + $0xf8] sm:$0xff]  ;;  %v1317_v50 = vld [vmem:[#allocation6 + $0xc] sm:$0xf]  ;;  %s6488_s28 = scalar_lea.sflag [#allocation5], %s8343_s12  ;;  %s8161_s17 = smov [#allocation8]  }
  0x62   : > { %v362_v49 = vpack.c.bf16 %v346_v48, %v345_v47  ;;  %7861 = vmatprep.subr.msk.bf16.mxu0 %vm1447_vm1, %v1317_v50  ;;  %v1449_v51 = vsel %vm1447_vm1, %v1317_v50, 0  ;;  %vm8424_vm5 = vmpackc.low %vm8160_vm4, %vm8160_vm4  ;;  %v2731_v63 = vld [vmem:[#allocation6 + $0x4] sm:$0xf]  ;;  %v8442_v1 = vld [vmem:[#allocation6 + $0x10] sm:$0xf]  ;;  %s8085_s21 = sshll.u32 %s8161_s17, 4  ;;  %s8086_s21 = int_to_ptr.vmem [resolvable:$false] %s8085_s21 }
  0x63   : > { %7264 = vmatpush3.bf16.msra.mxu0 %v1449_v51  ;;  %vm4497_vm7 = vmpackc.low %vm1180_vm6, %vm1180_vm6  ;;  %v8430_v57 = vsel %vm8424_vm5, 65537, %v8159_v52  ;;  %7865 = vmatprep.subr.msk.bf16.mxu1 %vm1447_vm1, %v2731_v63  ;;  %v8439_v0 = vsel %vm1447_vm1, %v2731_v63, 0  ;;  %v8449_v2 = vld [vmem:[%s10099_s4] ss:$0 sm:$0xff]  ;;  %v1069_v26 = vld [vmem:[#allocation2 + $0x18] sm:$0xf]  ;;  %p8088_p10 = scmp.lt.s32.totalorder %s10045_s14, %s8086_s21 }
  0x64   : > { %v4499_v58 = vsel %vm4497_vm7, 65537, %v8159_v52  ;;  %v4503_v59 = vrot.slane %v8430_v57, 7  ;;  %vm4502_vm10 = vmor %vm4500_vm8, %vm4501_vm9  ;;  %7604 = vmatpush3.bf16.msra.mxu1 %v8439_v0  ;;  %v1251_v44 = vld [vmem:[#allocation6] sm:$0xf]  ;;  %v1073_v48 = vld [vmem:[#allocation2 + $0x20] sm:$0x1] }
  0x65   : > { %v4505_v60 = vrot.slane %v4499_v58, 7  ;;  %7866 = vmatprep.subr.msk.bf16.mxu1 %vm1447_vm1, %v8442_v1  ;;  %vm8460_vm14 = vmand %vm628_vm2, %vm1058_vm11  ;;  %7862 = vmatprep.subr.msk.bf16.mxu0 %vm1447_vm1, %v1251_v44  ;;  %v1066_v55 = vld [vmem:[#allocation2 + $0x14] sm:$0x1]  ;;  %vm1398_vm7 = vcmask 64512   ;;  %vm2343_vm8 = vsmask.f32 3328 }
  0x66   : > { %v4504_v61 = vrot.slane %v4503_v59, 4  ;;  %vm8467_vm15 = vmand %vm631_vm3, %vm733_vm12  ;;  %vm1177_vm3 = vcmp.ge.s32.totalorder %v8421_v54, 1  ;;  %vm2344_vm9 = vsmask.f32 7440  ;;  %s8087_s10 = scalar_lea.vmem %s8086_s21, 8192 }
  0x67   : > { %7236 = vmatmul.mubr.msk.bf16.gmra.mrb[4].mxu0 %vm386_vm0, %v350_v15  ;;  %v8455_v19 = vrot.slane %v4505_v60, 4  ;;  %vm8473_vm4 = vmor %vm733_vm12, %vm734_vm13  ;;  %vm4608_vm13 = vcmask 1046532  }
  0x68   : > { %7239 = vmatprep.mubr.msk.bf16.mxu0 %vm386_vm0, %v351_v16  ;;  %v8435_v62 = vsel %vm4502_vm10, %v4504_v61, %v4505_v60  ;;  %vm8543_vm6 = vmpackc.low %vm1177_vm3, %vm1177_vm3 }
  0x69   : > { %vm4509_vm10 = vcmp.ne.s16.totalorder %v8435_v62, 0  ;;  %vm4510_vm11 = vcmp.ne.s16.totalorder %v8455_v19, 0  ;;  %vm8695_vm12 = vmor %vm2343_vm8, %vm2344_vm9 }
  0x6f   : > { %7240 = vmatmul.mubr.msk.bf16.gmra.mrb[8].mxu0 %vm386_vm0, %v352_v21 }
  0x70   : > { %7243 = vmatprep.mubr.msk.bf16.mxu0 %vm386_vm0, %v353_v22 }
  0x77   : > { %7244 = vmatmul.mubr.msk.bf16.gmra.mrb[12].mxu0 %vm386_vm0, %v354_v27 }
  0x78   : > { %7247 = vmatprep.mubr.msk.bf16.mxu0 %vm386_vm0, %v355_v28 }
  0x7f   : > { %7248 = vmatmul.mubr.msk.bf16.gmra.mrb[16].mxu0 %vm386_vm0, %v356_v33  ;;  %v1060_v33 = vld [vmem:[#allocation2 + $0xc] sm:$0xf] }
  0x80   : > { %7251 = vmatprep.mubr.msk.bf16.mxu0 %vm386_vm0, %v357_v34 }
  0x87   : > { %7252 = vmatmul.mubr.msk.bf16.gmra.mrb[20].mxu0 %vm386_vm0, %v358_v39 }
  0x88   : > { %7255 = vmatprep.mubr.msk.bf16.mxu0 %vm386_vm0, %v359_v40 }
  0x8f   : > { %7256 = vmatmul.mubr.msk.bf16.gmra.mrb[24].mxu0 %vm386_vm0, %v360_v45 }
  0x90   : > { %7259 = vmatprep.mubr.msk.bf16.mxu0 %vm386_vm0, %v361_v46 }
  0x97   : > { %7260 = vmatmul.mubr.msk.bf16.gmra.mrb[28].mxu0 %vm386_vm0, %v362_v49 }
 0x132   : > { %v7233_v3 = vpop.f32.mrb[0].mxu0 }
 0x133   : > { %v478_v4 = vadd.f32 %v7233_v3, %v8449_v2  ;;  %v469_v5 = vpop.f32.mrb[1].mxu0 }
 0x134   : > { %v470_v6 = vadd.f32 %v8449_v2, %v469_v5  ;;  %v7234_v7 = vpop.f32.mrb[2].mxu0 }
 0x135   : > { %v598_v8 = vmax.f32 %v478_v4, 0.0  ;;  %v481_v9 = vadd.f32 %v7234_v7, %v8449_v2  ;;  %v472_v10 = vpop.f32.mrb[3].mxu0  ;;  %v8488_v7 = vsel %vm1447_vm1, %v8442_v1, 0 }
 0x136   : > { %v596_v11 = vmax.f32 %v470_v6, 0.0  ;;  %v473_v12 = vadd.f32 %v8449_v2, %v472_v10 }
 0x137   : > { %v7008_v13 = vpack.c.bf16 %v598_v8, %v598_v8  ;;  %v599_v14 = vmax.f32 %v481_v9, 0.0 }
 0x138   : > { %v7006_v15 = vpack.c.bf16 %v596_v11, %v596_v11  ;;  %v597_v16 = vmax.f32 %v473_v12, 0.0 }
 0x139   : > { %v754_v17 = vshrl.u32 %v7008_v13, 16  ;;  %v7009_v18 = vpack.c.bf16 %v599_v14, %v599_v14  ;;  %v757_v20 = vshll.u32 %v7008_v13, 16 }
 0x13a   : > { %v737_v21 = vshrl.u32 %v7006_v15, 16  ;;  %v740_v22 = vshll.u32 %v7006_v15, 16  ;;  %v7007_v23 = vpack.c.bf16 %v597_v16, %v597_v16  ;;  %v7237_v24 = vpop.f32.mrb[4].mxu0 }
 0x13b   : > { %v756_v25 = vrot.slane %v754_v17, 7  ;;  %v762_v27 = vshrl.u32 %v7009_v18, 16  ;;  %v765_v28 = vshll.u32 %v7009_v18, 16  ;;  %v494_v29 = vadd.f32 %v7237_v24, %v8449_v2  ;;  %v485_v30 = vpop.f32.mrb[5].mxu0  ;;  %v1083_v17 = vld [vmem:[#allocation2 + $0x30] sm:$0xf] }
 0x13c   : > { %v739_v32 = vrot.slane %v737_v21, 7  ;;  %v745_v34 = vshrl.u32 %v7007_v23, 16  ;;  %v748_v35 = vshll.u32 %v7007_v23, 16  ;;  %v486_v36 = vadd.f32 %v8449_v2, %v485_v30  ;;  %v7238_v37 = vpop.f32.mrb[6].mxu0 }
 0x13d   : > { %v759_v38 = vor.u32 %v757_v20, %v756_v25  ;;  %v760_v39 = vrot.slane %v756_v25, 4  ;;  %v764_v40 = vrot.slane %v762_v27, 7  ;;  %v602_v42 = vmax.f32 %v494_v29, 0.0  ;;  %v488_v43 = vpop.f32.mrb[7].mxu0 }
 0x13e   : > { %v742_v45 = vor.u32 %v740_v22, %v739_v32  ;;  %v743_v46 = vrot.slane %v739_v32, 4  ;;  %v747_v49 = vrot.slane %v745_v34, 7  ;;  %v600_v50 = vmax.f32 %v486_v36, 0.0 }
 0x13f   : > { %v1070_v51 = vsel %vm8460_vm14, %v759_v38, %v1069_v26  ;;  %v767_v52 = vor.u32 %v765_v28, %v764_v40  ;;  %v769_v53 = vrot.slane %v764_v40, 4  ;;  %v7012_v58 = vpack.c.bf16 %v602_v42, %v602_v42  ;;  %v1076_v26 = vld [vmem:[#allocation2 + $0x24] sm:$0xf] }
 0x140   : > { %1071 = vst [vmem:[#allocation2 + $0x18] sm:$0xf] %v1070_v51  ;;  %v1061_v60 = vsel %vm8460_vm14, %v742_v45, %v1060_v33  ;;  %v750_v61 = vor.u32 %v748_v35, %v747_v49  ;;  %v752_v63 = vrot.slane %v747_v49, 4  ;;  %v7010_v3 = vpack.c.bf16 %v600_v50, %v600_v50  ;;  %v1087_v49 = vld [vmem:[#allocation2 + $0x38] sm:$0x1] }
 0x141   : > { %1062 = vst [vmem:[#allocation2 + $0xc] sm:$0xf] %v1061_v60  ;;  %v768_v4 = vsel %vm8473_vm4, %v760_v39, %v767_v52  ;;  %v1074_v5 = vsel %vm8467_vm15, %v769_v53, %v1073_v48  ;;  %v788_v6 = vshrl.u32 %v7012_v58, 16  ;;  %v791_v10 = vshll.u32 %v7012_v58, 16  ;;  %v1080_v50 = vld [vmem:[#allocation2 + $0x2c] sm:$0x1] }
 0x142   : > { %1072 = vst.msk [vmem:[#allocation2 + $0x1c] sm:$0xf] %vm628_vm2, %v768_v4  ;;  %1075 = vst [vmem:[#allocation2 + $0x20] sm:$0x1] %v1074_v5  ;;  %v751_v8 = vsel %vm8473_vm4, %v743_v46, %v750_v61  ;;  %v1067_v9 = vsel %vm8467_vm15, %v752_v63, %v1066_v55  ;;  %v771_v11 = vshrl.u32 %v7010_v3, 16  ;;  %v7241_v12 = vpop.f32.mrb[8].mxu0  ;;  %v497_v1 = vadd.f32 %v7238_v37, %v8449_v2 }
 0x143   : > { %1063 = vst.msk [vmem:[#allocation2 + $0x10] sm:$0xf] %vm628_vm2, %v751_v8  ;;  %1068 = vst [vmem:[#allocation2 + $0x14] sm:$0x1] %v1067_v9  ;;  %v8496_v13 = vrot.slane %v788_v6, 7  ;;  %v489_v14 = vadd.f32 %v8449_v2, %v488_v43  ;;  %v510_v15 = vadd.f32 %v7241_v12, %v8449_v2  ;;  %v501_v16 = vpop.f32.mrb[9].mxu0 }
 0x144   : > { %v773_v18 = vrot.slane %v771_v11, 7  ;;  %v774_v20 = vshll.u32 %v7010_v3, 16  ;;  %v502_v21 = vadd.f32 %v8449_v2, %v501_v16  ;;  %v7242_v22 = vpop.f32.mrb[10].mxu0  ;;  %v8503_v23 = vsel %vm1447_vm1, %v1251_v44, 0  ;;  %v1097_v6 = vld [vmem:[#allocation2 + $0x48] sm:$0xf] }
 0x145   : > { %v793_v24 = vor.u32 %v791_v10, %v8496_v13  ;;  %v794_v25 = vrot.slane %v8496_v13, 4  ;;  %v603_v27 = vmax.f32 %v497_v1, 0.0  ;;  %v601_v28 = vmax.f32 %v489_v14, 0.0  ;;  %v504_v29 = vpop.f32.mrb[11].mxu0 }
 0x146   : > { %v776_v30 = vor.u32 %v774_v20, %v773_v18  ;;  %v777_v32 = vrot.slane %v773_v18, 4  ;;  %v606_v33 = vmax.f32 %v510_v15, 0.0  ;;  %v604_v34 = vmax.f32 %v502_v21, 0.0  ;;  %v1090_v15 = vld [vmem:[#allocation2 + $0x3c] sm:$0xf] }
 0x147   : > { %v1084_v35 = vsel %vm8460_vm14, %v793_v24, %v1083_v17  ;;  %v7013_v36 = vpack.c.bf16 %v603_v27, %v603_v27  ;;  %v7011_v37 = vpack.c.bf16 %v601_v28, %v601_v28  ;;  %v513_v38 = vadd.f32 %v7242_v22, %v8449_v2 }
 0x148   : > { %1085 = vst [vmem:[#allocation2 + $0x30] sm:$0xf] %v1084_v35  ;;  %v1077_v39 = vsel %vm8460_vm14, %v776_v30, %v1076_v26  ;;  %v7016_v40 = vpack.c.bf16 %v606_v33, %v606_v33  ;;  %v7014_v42 = vpack.c.bf16 %v604_v34, %v604_v34  ;;  %v505_v43 = vadd.f32 %v8449_v2, %v504_v29 }
 0x149   : > { %1078 = vst [vmem:[#allocation2 + $0x24] sm:$0xf] %v1077_v39  ;;  %v796_v44 = vshrl.u32 %v7013_v36, 16  ;;  %v799_v45 = vshll.u32 %v7013_v36, 16  ;;  %v779_v46 = vshrl.u32 %v7011_v37, 16  ;;  %v782_v48 = vshll.u32 %v7011_v37, 16 }
 0x14a   : > { %v822_v51 = vshrl.u32 %v7016_v40, 16  ;;  %v825_v52 = vshll.u32 %v7016_v40, 16  ;;  %v805_v53 = vshrl.u32 %v7014_v42, 16  ;;  %v808_v55 = vshll.u32 %v7014_v42, 16  ;;  %v7245_v58 = vpop.f32.mrb[12].mxu0 }
 0x14b   : > { %v798_v60 = vrot.slane %v796_v44, 7  ;;  %v781_v61 = vrot.slane %v779_v46, 7  ;;  %v607_v63 = vmax.f32 %v513_v38, 0.0  ;;  %v605_v3 = vmax.f32 %v505_v43, 0.0  ;;  %v517_v4 = vpop.f32.mrb[13].mxu0 }
 0x14c   : > { %v8514_v5 = vrot.slane %v822_v51, 7  ;;  %v8516_v8 = vrot.slane %v805_v53, 7  ;;  %v526_v9 = vadd.f32 %v7245_v58, %v8449_v2  ;;  %v518_v10 = vadd.f32 %v8449_v2, %v517_v4  ;;  %v7246_v11 = vpop.f32.mrb[14].mxu0  ;;  %v1252_v37 = vld [vmem:[#allocation2 + $0xc] sm:$0xf] }
 0x14d   : > { %v801_v12 = vor.u32 %v799_v45, %v798_v60  ;;  %v803_v13 = vrot.slane %v798_v60, 4  ;;  %v784_v1 = vor.u32 %v782_v48, %v781_v61  ;;  %v786_v14 = vrot.slane %v781_v61, 4  ;;  %v520_v16 = vpop.f32.mrb[15].mxu0  ;;  %v1253_v38 = vld [vmem:[#allocation2 + $0x10] sm:$0xf] }
 0x14e   : > { %v827_v17 = vor.u32 %v825_v52, %v8514_v5  ;;  %v828_v18 = vrot.slane %v8514_v5, 4  ;;  %v810_v20 = vor.u32 %v808_v55, %v8516_v8  ;;  %v811_v21 = vrot.slane %v8516_v8, 4  ;;  %v1101_v45 = vld [vmem:[#allocation2 + $0x50] sm:$0x1]  ;;  %v1094_v46 = vld [vmem:[#allocation2 + $0x44] sm:$0x1] }
 0x14f   : > { %v802_v22 = vsel %vm8473_vm4, %v794_v25, %v801_v12  ;;  %v1088_v24 = vsel %vm8467_vm15, %v803_v13, %v1087_v49  ;;  %v785_v26 = vsel %vm8473_vm4, %v777_v32, %v784_v1  ;;  %v1081_v27 = vsel %vm8467_vm15, %v786_v14, %v1080_v50 }
 0x150   : > { %1086 = vst.msk [vmem:[#allocation2 + $0x34] sm:$0xf] %vm628_vm2, %v802_v22  ;;  %1089 = vst [vmem:[#allocation2 + $0x38] sm:$0x1] %v1088_v24  ;;  %v1098_v28 = vsel %vm8460_vm14, %v827_v17, %v1097_v6  ;;  %v1091_v25 = vsel %vm8460_vm14, %v810_v20, %v1090_v15  ;;  %v7017_v29 = vpack.c.bf16 %v607_v63, %v607_v63  ;;  %v610_v32 = vmax.f32 %v526_v9, 0.0 }
 0x151   : > { %1079 = vst.msk [vmem:[#allocation2 + $0x28] sm:$0xf] %vm628_vm2, %v785_v26  ;;  %1082 = vst [vmem:[#allocation2 + $0x2c] sm:$0x1] %v1081_v27  ;;  %v7015_v30 = vpack.c.bf16 %v605_v3, %v605_v3  ;;  %v608_v33 = vmax.f32 %v518_v10, 0.0  ;;  %v529_v34 = vadd.f32 %v7246_v11, %v8449_v2  ;;  %v521_v35 = vadd.f32 %v8449_v2, %v520_v16 }
 0x152   : > { %1099 = vst [vmem:[#allocation2 + $0x48] sm:$0xf] %v1098_v28  ;;  %1092 = vst [vmem:[#allocation2 + $0x3c] sm:$0xf] %v1091_v25  ;;  %v830_v39 = vshrl.u32 %v7017_v29, 16  ;;  %v833_v40 = vshll.u32 %v7017_v29, 16  ;;  %v7020_v48 = vpack.c.bf16 %v610_v32, %v610_v32 }
 0x153   : > { %v813_v42 = vshrl.u32 %v7015_v30, 16  ;;  %v816_v43 = vshll.u32 %v7015_v30, 16  ;;  %v7249_v44 = vpop.f32.mrb[16].mxu0  ;;  %v7018_v49 = vpack.c.bf16 %v608_v33, %v608_v33  ;;  %v611_v50 = vmax.f32 %v529_v34, 0.0  ;;  %v1111_v20 = vld [vmem:[#allocation2 + $0x60] sm:$0xf] }
 0x154   : > { %v609_v51 = vmax.f32 %v521_v35, 0.0  ;;  %v533_v54 = vpop.f32.mrb[17].mxu0  ;;  %v832_v52 = vrot.slane %v830_v39, 7  ;;  %v1284_v55 = vsel %vm8543_vm6, %v1252_v37, 0  ;;  %v1285_v58 = vsel %vm8424_vm5, %v1253_v38, 0 }
 0x155   : > { %v815_v53 = vrot.slane %v813_v42, 7  ;;  %v7250_v60 = vpop.f32.mrb[18].mxu0  ;;  %v856_v61 = vshrl.u32 %v7020_v48, 16  ;;  %v859_v63 = vshll.u32 %v7020_v48, 16  ;;  %v839_v3 = vshrl.u32 %v7018_v49, 16 }
 0x156   : > { %v842_v4 = vshll.u32 %v7018_v49, 16  ;;  %v536_v5 = vpop.f32.mrb[19].mxu0  ;;  %v835_v6 = vor.u32 %v833_v40, %v832_v52  ;;  %v837_v8 = vrot.slane %v832_v52, 4  ;;  %v7021_v13 = vpack.c.bf16 %v611_v50, %v611_v50  ;;  %v1104_v22 = vld [vmem:[#allocation2 + $0x54] sm:$0xf] }
 0x157   : > { %v818_v9 = vor.u32 %v816_v43, %v815_v53  ;;  %v820_v10 = vrot.slane %v815_v53, 4  ;;  %v858_v11 = vrot.slane %v856_v61, 7  ;;  %v841_v12 = vrot.slane %v839_v3, 7  ;;  %v1254_v24 = vld [vmem:[#allocation2 + $0x18] sm:$0xf] }
 0x158   : > { %v7019_v1 = vpack.c.bf16 %v609_v51, %v609_v51  ;;  %v836_v14 = vsel %vm8473_vm4, %v828_v18, %v835_v6  ;;  %v1102_v15 = vsel %vm8467_vm15, %v837_v8, %v1101_v45  ;;  %v1255_v25 = vld [vmem:[#allocation2 + $0x1c] sm:$0xf]  ;;  %v864_v29 = vshrl.u32 %v7021_v13, 16  ;;  %v1115_v42 = vld [vmem:[#allocation2 + $0x68] sm:$0x1] }
 0x159   : > { %v819_v16 = vsel %vm8473_vm4, %v811_v21, %v818_v9  ;;  %v1095_v17 = vsel %vm8467_vm15, %v820_v10, %v1094_v46  ;;  %1100 = vst.msk [vmem:[#allocation2 + $0x4c] sm:$0xf] %vm628_vm2, %v836_v14  ;;  %1103 = vst [vmem:[#allocation2 + $0x50] sm:$0x1] %v1102_v15  ;;  %v861_v26 = vor.u32 %v859_v63, %v858_v11  ;;  %v862_v18 = vrot.slane %v858_v11, 4 }
 0x15a   : > { %1093 = vst.msk [vmem:[#allocation2 + $0x40] sm:$0xf] %vm628_vm2, %v819_v16  ;;  %1096 = vst [vmem:[#allocation2 + $0x44] sm:$0x1] %v1095_v17  ;;  %v844_v27 = vor.u32 %v842_v4, %v841_v12  ;;  %v845_v28 = vrot.slane %v841_v12, 4  ;;  %v867_v30 = vshll.u32 %v7021_v13, 16  ;;  %v6646_v37 = vcombine.low %v1284_v55, %v1285_v58 }
 0x15b   : > { %v847_v21 = vshrl.u32 %v7019_v1, 16  ;;  %v850_v32 = vshll.u32 %v7019_v1, 16  ;;  %v8561_v33 = vpop.f32.mrb[20].mxu0  ;;  %v1112_v34 = vsel %vm8460_vm14, %v861_v26, %v1111_v20  ;;  %v1286_v38 = vsel %vm8543_vm6, %v1254_v24, 0  ;;  %v1108_v49 = vld [vmem:[#allocation2 + $0x5c] sm:$0x1] }
 0x15c   : > { %v1105_v35 = vsel %vm8460_vm14, %v844_v27, %v1104_v22  ;;  %v8569_v39 = vpop.f32.mrb[21].mxu0  ;;  %1113 = vst [vmem:[#allocation2 + $0x60] sm:$0xf] %v1112_v34  ;;  %v866_v40 = vrot.slane %v864_v29, 7  ;;  %v1287_v45 = vsel %vm8424_vm5, %v1255_v25, 0  ;;  %v542_v46 = vadd.f32 %v7249_v44, %v8449_v2  ;;  %7265 = vmatprep.mubr.msk.bf16.mxu0 %vm1398_vm7, %v6646_v37 }
 0x15d   : > { %1106 = vst [vmem:[#allocation2 + $0x54] sm:$0xf] %v1105_v35  ;;  %v849_v43 = vrot.slane %v847_v21, 7  ;;  %v8574_v48 = vpop.f32.mrb[22].mxu0  ;;  %v6647_v50 = vcombine.low %v1286_v38, %v1287_v45  ;;  %v534_v51 = vadd.f32 %v8449_v2, %v533_v54  ;;  %v545_v52 = vadd.f32 %v7250_v60, %v8449_v2  ;;  %v1258_v55 = vld [vmem:[#allocation2 + $0x30] sm:$0xf] }
 0x15e   : > { %v537_v53 = vadd.f32 %v8449_v2, %v536_v5  ;;  %v8580_v58 = vpop.f32.mrb[23].mxu0  ;;  %v869_v61 = vor.u32 %v867_v30, %v866_v40  ;;  %v871_v63 = vrot.slane %v866_v40, 4  ;;  %v1256_v44 = vld [vmem:[#allocation2 + $0x24] sm:$0xf]  ;;  %v1257_v6 = vld [vmem:[#allocation2 + $0x28] sm:$0xf] }
 0x15f   : > { %v852_v3 = vor.u32 %v850_v32, %v849_v43  ;;  %v854_v4 = vrot.slane %v849_v43, 4  ;;  %7266 = vmatmul.mubr.msk.bf16.vlgmr.msra.gmra.mrb[32].mxu0 %vm1398_vm7, %v6647_v50  ;;  %v614_v8 = vmax.f32 %v542_v46, 0.0  ;;  %v612_v9 = vmax.f32 %v534_v51, 0.0  ;;  %v1259_v54 = vld [vmem:[#allocation2 + $0x34] sm:$0xf] }
 0x160   : > { %v615_v10 = vmax.f32 %v545_v52, 0.0  ;;  %v613_v11 = vmax.f32 %v537_v53, 0.0  ;;  %v870_v60 = vsel %vm8473_vm4, %v862_v18, %v869_v61  ;;  %v1116_v5 = vsel %vm8467_vm15, %v871_v63, %v1115_v42  ;;  %7298 = vmatpush3.bf16.msra.mxu0 %v8503_v23  ;;  %v1125_v43 = vld [vmem:[#allocation2 + $0x78] sm:$0xf]  ;;  %v1118_v45 = vld [vmem:[#allocation2 + $0x6c] sm:$0xf] }
 0x161   : > { %v853_v12 = vsel %vm8473_vm4, %v845_v28, %v852_v3  ;;  %v1109_v13 = vsel %vm8467_vm15, %v854_v4, %v1108_v49  ;;  %1114 = vst.msk [vmem:[#allocation2 + $0x64] sm:$0xf] %vm628_vm2, %v870_v60  ;;  %1117 = vst [vmem:[#allocation2 + $0x68] sm:$0x1] %v1116_v5  ;;  %v7024_v1 = vpack.c.bf16 %v614_v8, %v614_v8  ;;  %v1288_v17 = vsel %vm8543_vm6, %v1256_v44, 0 }
 0x162   : > { %1107 = vst.msk [vmem:[#allocation2 + $0x58] sm:$0xf] %vm628_vm2, %v853_v12  ;;  %1110 = vst [vmem:[#allocation2 + $0x5c] sm:$0x1] %v1109_v13  ;;  %v7022_v14 = vpack.c.bf16 %v612_v9, %v612_v9  ;;  %v7025_v15 = vpack.c.bf16 %v615_v10, %v615_v10  ;;  %v7023_v16 = vpack.c.bf16 %v613_v11, %v613_v11  ;;  %v1289_v20 = vsel %vm8424_vm5, %v1257_v6, 0  ;;  %v8602_v24 = vpop.f32.mrb[24].mxu0 }
 0x163   : > { %v1290_v22 = vsel %vm8543_vm6, %v1258_v55, 0  ;;  %v1291_v23 = vsel %vm8424_vm5, %v1259_v54, 0  ;;  %v890_v26 = vshrl.u32 %v7024_v1, 16  ;;  %v893_v18 = vshll.u32 %v7024_v1, 16  ;;  %v8604_v25 = vpop.f32.mrb[25].mxu0 }
 0x164   : > { %v873_v27 = vshrl.u32 %v7022_v14, 16  ;;  %v876_v28 = vshll.u32 %v7022_v14, 16  ;;  %v898_v29 = vshrl.u32 %v7025_v15, 16  ;;  %v901_v30 = vshll.u32 %v7025_v15, 16  ;;  %v8606_v34 = vpop.f32.mrb[26].mxu0 }
 0x165   : > { %v881_v21 = vshrl.u32 %v7023_v16, 16  ;;  %v884_v32 = vshll.u32 %v7023_v16, 16  ;;  %v892_v35 = vrot.slane %v890_v26, 7  ;;  %v6648_v38 = vcombine.low %v1288_v17, %v1289_v20  ;;  %v8608_v42 = vpop.f32.mrb[27].mxu0  ;;  %v1129_v63 = vld [vmem:[#allocation2 + $0x80] sm:$0x1] }
 0x166   : > { %v875_v37 = vrot.slane %v873_v27, 7  ;;  %v6649_v40 = vcombine.low %v1290_v22, %v1291_v23  ;;  %v900_v46 = vrot.slane %v898_v29, 7  ;;  %v558_v50 = vadd.f32 %v8561_v33, %v8449_v2  ;;  %v1122_v3 = vld [vmem:[#allocation2 + $0x74] sm:$0x1]  ;;  %v1260_v9 = vld [vmem:[#allocation2 + $0x3c] sm:$0xf] }
 0x167   : > { %v883_v49 = vrot.slane %v881_v21, 7  ;;  %v550_v51 = vadd.f32 %v8449_v2, %v8569_v39  ;;  %v895_v52 = vor.u32 %v893_v18, %v892_v35  ;;  %v896_v53 = vrot.slane %v892_v35, 4  ;;  %7269 = vmatprep.mubr.msk.bf16.mxu0 %vm1398_vm7, %v6648_v38  ;;  %v1262_v10 = vld [vmem:[#allocation2 + $0x48] sm:$0xf]  ;;  %v1261_v60 = vld [vmem:[#allocation2 + $0x40] sm:$0xf] }
 0x168   : > { %v878_v55 = vor.u32 %v876_v28, %v875_v37  ;;  %v879_v61 = vrot.slane %v875_v37, 4  ;;  %v903_v4 = vor.u32 %v901_v30, %v900_v46  ;;  %v905_v44 = vrot.slane %v900_v46, 4  ;;  %7270 = vmatmul.mubr.msk.bf16.gmra.mrb[36].mxu0 %vm1398_vm7, %v6649_v40  ;;  %v1263_v5 = vld [vmem:[#allocation2 + $0x4c] sm:$0xf]  ;;  %v2321_v31 = vld [vmem:[#allocation2 + $0x68] sm:$0x1] }
 0x169   : > { %v886_v6 = vor.u32 %v884_v32, %v883_v49  ;;  %v888_v8 = vrot.slane %v883_v49, 4  ;;  %v1126_v33 = vsel %vm8460_vm14, %v895_v52, %v1125_v43  ;;  %v618_v11 = vmax.f32 %v558_v50, 0.0  ;;  %v1139_v50 = vld [vmem:[#allocation2 + $0x90] sm:$0xf] }
 0x16a   : > { %v1119_v39 = vsel %vm8460_vm14, %v878_v55, %v1118_v45  ;;  %v616_v54 = vmax.f32 %v550_v51, 0.0  ;;  %1127 = vst [vmem:[#allocation2 + $0x78] sm:$0xf] %v1126_v33  ;;  %v904_v12 = vsel %vm8473_vm4, %v896_v53, %v903_v4  ;;  %v1130_v13 = vsel %vm8467_vm15, %v905_v44, %v1129_v63  ;;  %v8628_v15 = vpop.f32.mrb[28].mxu0  ;;  %v1132_v51 = vld [vmem:[#allocation2 + $0x84] sm:$0xf] }
 0x16b   : > { %1120 = vst [vmem:[#allocation2 + $0x6c] sm:$0xf] %v1119_v39  ;;  %v887_v1 = vsel %vm8473_vm4, %v879_v61, %v886_v6  ;;  %v1123_v14 = vsel %vm8467_vm15, %v888_v8, %v1122_v3  ;;  %1128 = vst.msk [vmem:[#allocation2 + $0x7c] sm:$0xf] %vm628_vm2, %v904_v12  ;;  %v7028_v16 = vpack.c.bf16 %v618_v11, %v618_v11  ;;  %v8636_v23 = vpop.f32.mrb[29].mxu0  ;;  %v1292_v26 = vsel %vm8543_vm6, %v1260_v9, 0 }
 0x16c   : > { %1131 = vst [vmem:[#allocation2 + $0x80] sm:$0x1] %v1130_v13  ;;  %1121 = vst.msk [vmem:[#allocation2 + $0x70] sm:$0xf] %vm628_vm2, %v887_v1  ;;  %v7026_v17 = vpack.c.bf16 %v616_v54, %v616_v54  ;;  %v561_v20 = vadd.f32 %v8574_v48, %v8449_v2  ;;  %v553_v22 = vadd.f32 %v8449_v2, %v8580_v58  ;;  %v1293_v18 = vsel %vm8424_vm5, %v1261_v60, 0  ;;  %v8646_v29 = vpop.f32.mrb[30].mxu0 }
 0x16d   : > { %1124 = vst [vmem:[#allocation2 + $0x74] sm:$0x1] %v1123_v14  ;;  %v1294_v27 = vsel %vm8543_vm6, %v1262_v10, 0  ;;  %v1295_v28 = vsel %vm8424_vm5, %v1263_v5, 0  ;;  %v924_v48 = vshrl.u32 %v7028_v16, 16  ;;  %v927_v30 = vshll.u32 %v7028_v16, 16 }
 0x16e   : > { %v907_v21 = vshrl.u32 %v7026_v17, 16  ;;  %v910_v58 = vshll.u32 %v7026_v17, 16  ;;  %v8648_v32 = vpop.f32.mrb[31].mxu0  ;;  %v619_v35 = vmax.f32 %v561_v20, 0.0  ;;  %v617_v37 = vmax.f32 %v553_v22, 0.0 }
 0x16f   : > { %v6650_v38 = vcombine.low %v1292_v26, %v1293_v18  ;;  %v6651_v40 = vcombine.low %v1294_v27, %v1295_v28  ;;  %v926_v43 = vrot.slane %v924_v48, 7  ;;  %v574_v46 = vadd.f32 %v8602_v24, %v8449_v2  ;;  %v2313_v9 = vld [vmem:[#allocation2 + $0x48] sm:$0xf]  ;;  %v1143_v5 = vld [vmem:[#allocation2 + $0x98] sm:$0x1] }
 0x170   : > { %v909_v45 = vrot.slane %v907_v21, 7  ;;  %v566_v49 = vadd.f32 %v8449_v2, %v8604_v25  ;;  %v7029_v52 = vpack.c.bf16 %v619_v35, %v619_v35  ;;  %v7027_v53 = vpack.c.bf16 %v617_v37, %v617_v37  ;;  %v1136_v12 = vld [vmem:[#allocation2 + $0x8c] sm:$0x1] }
 0x171   : > { %7273 = vmatprep.mubr.msk.bf16.mxu0 %vm1398_vm7, %v6650_v38  ;;  %v577_v55 = vadd.f32 %v8606_v34, %v8449_v2  ;;  %v569_v61 = vadd.f32 %v8449_v2, %v8608_v42  ;;  %v929_v63 = vor.u32 %v927_v30, %v926_v43  ;;  %v930_v3 = vrot.slane %v926_v43, 4  ;;  %v2314_v30 = vld [vmem:[#allocation2 + $0x4c] sm:$0xf]  ;;  %v8674_v38 = vld [vmem:[#allocation2] sm:$0xf] }
 0x172   : > { %v912_v4 = vor.u32 %v910_v58, %v909_v45  ;;  %v913_v44 = vrot.slane %v909_v45, 4  ;;  %7274 = vmatmul.mubr.msk.bf16.gmra.mrb[40].mxu0 %vm1398_vm7, %v6651_v40  ;;  %v932_v24 = vshrl.u32 %v7029_v52, 16  ;;  %v935_v25 = vshll.u32 %v7029_v52, 16  ;;  %v1153_v43 = vld [vmem:[#allocation2 + $0xa8] sm:$0xf] }
 0x173   : > { %v915_v6 = vshrl.u32 %v7027_v53, 16  ;;  %v918_v8 = vshll.u32 %v7027_v53, 16  ;;  %v1140_v10 = vsel %vm8460_vm14, %v929_v63, %v1139_v50  ;;  %v622_v33 = vmax.f32 %v574_v46, 0.0  ;;  %v1146_v50 = vld [vmem:[#allocation2 + $0x9c] sm:$0xf] }
 0x174   : > { %v1133_v34 = vsel %vm8460_vm14, %v912_v4, %v1132_v51  ;;  %v620_v39 = vmax.f32 %v566_v49, 0.0  ;;  %1141 = vst [vmem:[#allocation2 + $0x90] sm:$0xf] %v1140_v10  ;;  %v934_v42 = vrot.slane %v932_v24, 7  ;;  %v623_v54 = vmax.f32 %v577_v55, 0.0 }
 0x175   : > { %1134 = vst [vmem:[#allocation2 + $0x84] sm:$0xf] %v1133_v34  ;;  %v917_v11 = vrot.slane %v915_v6, 7  ;;  %v621_v60 = vmax.f32 %v569_v61, 0.0  ;;  %v7032_v13 = vpack.c.bf16 %v622_v33, %v622_v33  ;;  %v2491_v14 = vshrl.u32 %v2313_v9, 16 }
 0x176   : > { %v7030_v1 = vpack.c.bf16 %v620_v39, %v620_v39  ;;  %v2494_v16 = vshll.u32 %v2313_v9, 16  ;;  %v937_v17 = vor.u32 %v935_v25, %v934_v42  ;;  %v939_v20 = vrot.slane %v934_v42, 4  ;;  %v2315_v4 = vld [vmem:[#allocation2 + $0x50] sm:$0x1] }
 0x177   : > { %v920_v22 = vor.u32 %v918_v8, %v917_v11  ;;  %v922_v26 = vrot.slane %v917_v11, 4  ;;  %v958_v18 = vshrl.u32 %v7032_v13, 16  ;;  %v961_v27 = vshll.u32 %v7032_v13, 16  ;;  %v1157_v34 = vld [vmem:[#allocation2 + $0xb0] sm:$0x1] }
 0x178   : > { %v941_v28 = vshrl.u32 %v7030_v1, 16  ;;  %v944_v48 = vshll.u32 %v7030_v1, 16  ;;  %v938_v21 = vsel %vm8473_vm4, %v930_v3, %v937_v17  ;;  %v1144_v58 = vsel %vm8467_vm15, %v939_v20, %v1143_v5  ;;  %v1264_v5 = vld [vmem:[#allocation2 + $0x54] sm:$0xf]  ;;  %v1150_v13 = vld [vmem:[#allocation2 + $0xa4] sm:$0x1] }
 0x179   : > { %v921_v35 = vsel %vm8473_vm4, %v913_v44, %v920_v22  ;;  %v1137_v37 = vsel %vm8467_vm15, %v922_v26, %v1136_v12  ;;  %1142 = vst.msk [vmem:[#allocation2 + $0x94] sm:$0xf] %vm628_vm2, %v938_v21  ;;  %1145 = vst [vmem:[#allocation2 + $0x98] sm:$0x1] %v1144_v58  ;;  %v960_v40 = vrot.slane %v958_v18, 7  ;;  %v7033_v46 = vpack.c.bf16 %v623_v54, %v623_v54 }
 0x17a   : > { %1135 = vst.msk [vmem:[#allocation2 + $0x88] sm:$0xf] %vm628_vm2, %v921_v35  ;;  %1138 = vst [vmem:[#allocation2 + $0x8c] sm:$0x1] %v1137_v37  ;;  %v943_v45 = vrot.slane %v941_v28, 7  ;;  %v7031_v49 = vpack.c.bf16 %v621_v60, %v621_v60  ;;  %v2493_v51 = vrot.slane %v2491_v14, 4 }
 0x17b   : > { %v2496_v52 = vrot.slane %v2494_v16, 5  ;;  %v2500_v53 = vshll.u32 %v2314_v30, 16  ;;  %v2504_v55 = vshrl.u32 %v2314_v30, 16  ;;  %v963_v61 = vor.u32 %v961_v27, %v960_v40  ;;  %v1265_v27 = vld [vmem:[#allocation2 + $0x58] sm:$0xf] }
 0x17c   : > { %v964_v63 = vrot.slane %v960_v40, 4  ;;  %v946_v3 = vor.u32 %v944_v48, %v943_v45  ;;  %v1219_v44 = vsel %vm8543_vm6, %v8674_v38, 0  ;;  %v966_v24 = vshrl.u32 %v7033_v46, 16  ;;  %v1266_v28 = vld [vmem:[#allocation2 + $0x60] sm:$0xf] }
 0x17d   : > { %v969_v25 = vshll.u32 %v7033_v46, 16  ;;  %v949_v6 = vshrl.u32 %v7031_v49, 16  ;;  %v952_v8 = vshll.u32 %v7031_v49, 16  ;;  %v1154_v9 = vsel %vm8460_vm14, %v963_v61, %v1153_v43  ;;  %v1267_v35 = vld [vmem:[#allocation2 + $0x64] sm:$0xf] }
 0x17e   : > { %v1147_v10 = vsel %vm8460_vm14, %v946_v3, %v1146_v50  ;;  %v2497_v33 = vor.u32 %v2496_v52, %v2493_v51  ;;  %v2502_v39 = vrot.slane %v2500_v53, 5  ;;  %1155 = vst [vmem:[#allocation2 + $0xa8] sm:$0xf] %v1154_v9  ;;  %v968_v42 = vrot.slane %v966_v24, 7  ;;  %v1268_v52 = vld [vmem:[#allocation2 + $0x6c] sm:$0xf] }
 0x17f   : > { %1148 = vst [vmem:[#allocation2 + $0x9c] sm:$0xf] %v1147_v10  ;;  %v951_v11 = vrot.slane %v949_v6, 7  ;;  %v2506_v54 = vrot.slane %v2504_v55, 4  ;;  %v2510_v60 = vshll.u32 %v2315_v4, 16  ;;  %v947_v12 = vrot.slane %v943_v45, 4 }
 0x180   : > { %v2498_v1 = vrot.slane %v2497_v33, 4  ;;  %v8687_v14 = vsel %vm4509_vm10, %v2314_v30, 0  ;;  %v8691_v16 = vsel %vm4510_vm11, %v2315_v4, 0  ;;  %v971_v17 = vor.u32 %v969_v25, %v968_v42  ;;  %v1269_v3 = vld [vmem:[#allocation2 + $0x70] sm:$0xf] }
 0x181   : > { %v973_v20 = vrot.slane %v968_v42, 4  ;;  %v954_v22 = vor.u32 %v952_v8, %v951_v11  ;;  %v956_v26 = vrot.slane %v951_v11, 4  ;;  %v2507_v30 = vor.u32 %v2506_v54, %v2502_v39  ;;  %v2316_v4 = vld [vmem:[#allocation2 + $0x54] sm:$0xf] }
 0x182   : > { %v2503_v48 = vsel %vm8695_vm12, %v2498_v1, %v2502_v39  ;;  %v2512_v21 = vrot.slane %v2510_v60, 5  ;;  %v1296_v58 = vsel %vm8543_vm6, %v1264_v5, 0  ;;  %v972_v37 = vsel %vm8473_vm4, %v964_v63, %v971_v17 }
 0x183   : > { %v1158_v40 = vsel %vm8467_vm15, %v973_v20, %v1157_v34  ;;  %v955_v43 = vsel %vm8473_vm4, %v947_v12, %v954_v22  ;;  %v1151_v45 = vsel %vm8467_vm15, %v956_v26, %v1150_v13  ;;  %1156 = vst.msk [vmem:[#allocation2 + $0xac] sm:$0xf] %vm628_vm2, %v972_v37  ;;  %v2508_v46 = vrot.slane %v2507_v30, 4  ;;  %v2317_v34 = vld [vmem:[#allocation2 + $0x58] sm:$0xf] }
 0x184   : > { %1159 = vst [vmem:[#allocation2 + $0xb0] sm:$0x1] %v1158_v40  ;;  %1149 = vst.msk [vmem:[#allocation2 + $0xa0] sm:$0xf] %vm628_vm2, %v955_v43  ;;  %v4654_v49 = vrot.slane %v8687_v14, 5  ;;  %v1297_v50 = vsel %vm8424_vm5, %v1265_v27, 0  ;;  %v590_v61 = vadd.f32 %v8628_v15, %v8449_v2  ;;  %v582_v63 = vadd.f32 %v8449_v2, %v8636_v23 }
 0x185   : > { %1152 = vst [vmem:[#allocation2 + $0xa4] sm:$0x1] %v1151_v45  ;;  %v1298_v51 = vsel %vm8543_vm6, %v1266_v28, 0  ;;  %v6652_v53 = vcombine.low %v1296_v58, %v1297_v50  ;;  %v1299_v55 = vsel %vm8424_vm5, %v1267_v35, 0  ;;  %v2513_v24 = vsel %vm8695_vm12, %v2508_v46, %v2512_v21  ;;  %v2318_v26 = vld [vmem:[#allocation2 + $0x5c] sm:$0x1] }
 0x186   : > { %v6653_v25 = vcombine.low %v1298_v51, %v1299_v55  ;;  %v593_v6 = vadd.f32 %v8646_v29, %v8449_v2  ;;  %v585_v8 = vadd.f32 %v8449_v2, %v8648_v32  ;;  %v6748_v9 = vcombine.low %v2503_v48, %v2513_v24  ;;  %v1167_v58 = vld [vmem:[#allocation2 + $0xc0] sm:$0xf]  ;;  %v1160_v43 = vld [vmem:[#allocation2 + $0xb4] sm:$0xf] }
 0x187   : > { %7277 = vmatprep.mubr.msk.bf16.mxu0 %vm1398_vm7, %v6652_v53  ;;  %v626_v10 = vmax.f32 %v590_v61, 0.0  ;;  %v624_v15 = vmax.f32 %v582_v63, 0.0  ;;  %v1300_v23 = vsel %vm8543_vm6, %v1268_v52, 0  ;;  %v1301_v42 = vsel %vm8424_vm5, %v1269_v3, 0  ;;  %v1171_v63 = vld [vmem:[#allocation2 + $0xc8] sm:$0x1] }
 0x188   : > { %7278 = vmatmul.mubr.msk.bf16.gmra.mrb[44].mxu0 %vm1398_vm7, %v6653_v25  ;;  %v627_v33 = vmax.f32 %v593_v6, 0.0  ;;  %v625_v39 = vmax.f32 %v585_v8, 0.0  ;;  %v2515_v29 = vshrl.u32 %v2316_v4, 16  ;;  %7379 = vmatprep.mubr.msk.bf16.mxu1 %vm1398_vm7, %v6748_v9  ;;  %v6654_v11 = vcombine.low %v1300_v23, %v1301_v42  ;;  %v1164_v3 = vld [vmem:[#allocation2 + $0xbc] sm:$0x1] }
 0x189   : > { %v7036_v2 = vpack.c.bf16 %v626_v10, %v626_v10  ;;  %v7034_v32 = vpack.c.bf16 %v624_v15, %v624_v15  ;;  %v2518_v54 = vshll.u32 %v2316_v4, 16  ;;  %v2524_v13 = vshll.u32 %v2317_v34, 16  ;;  %v1270_v8 = vld [vmem:[#allocation2 + $0x78] sm:$0xf]  ;;  %v2319_v9 = vld [vmem:[#allocation2 + $0x60] sm:$0xf] }
 0x18a   : > { %v7037_v60 = vpack.c.bf16 %v627_v33, %v627_v33  ;;  %v7035_v5 = vpack.c.bf16 %v625_v39, %v625_v39  ;;  %v2517_v12 = vrot.slane %v2515_v29, 4  ;;  %7281 = vmatprep.mubr.msk.bf16.mxu0 %vm1398_vm7, %v6654_v11  ;;  %v2528_v50 = vshrl.u32 %v2317_v34, 16  ;;  %v1271_v33 = vld [vmem:[#allocation2 + $0x7c] sm:$0xf]  ;;  %v2320_v39 = vld [vmem:[#allocation2 + $0x64] sm:$0xf] }
 0x18b   : > { %v992_v1 = vshrl.u32 %v7036_v2, 16  ;;  %v995_v17 = vshll.u32 %v7036_v2, 16  ;;  %v975_v20 = vshrl.u32 %v7034_v32, 16  ;;  %v978_v22 = vshll.u32 %v7034_v32, 16 }
 0x18c   : > { %v1000_v27 = vshrl.u32 %v7037_v60, 16  ;;  %v1003_v28 = vshll.u32 %v7037_v60, 16  ;;  %v983_v48 = vshrl.u32 %v7035_v5, 16  ;;  %v986_v30 = vshll.u32 %v7035_v5, 16 }
 0x18d   : > { %v994_v21 = vrot.slane %v992_v1, 7  ;;  %v977_v35 = vrot.slane %v975_v20, 7  ;;  %v2520_v37 = vrot.slane %v2518_v54, 5  ;;  %v8738_v40 = vrot.slane %v2524_v13, 5 }
 0x18e   : > { %v1002_v45 = vrot.slane %v1000_v27, 7  ;;  %v985_v46 = vrot.slane %v983_v48, 7  ;;  %v2534_v51 = vshll.u32 %v2318_v26, 16  ;;  %v2530_v34 = vrot.slane %v2528_v50, 4  ;;  %v2323_v48 = vld [vmem:[#allocation2 + $0x70] sm:$0xf] }
 0x18f   : > { %v997_v52 = vor.u32 %v995_v17, %v994_v21  ;;  %v998_v53 = vrot.slane %v994_v21, 4  ;;  %v980_v55 = vor.u32 %v978_v22, %v977_v35  ;;  %v981_v61 = vrot.slane %v977_v35, 4  ;;  %v1273_v17 = vld [vmem:[#allocation2 + $0x88] sm:$0xf]  ;;  %v1274_v50 = vld [vmem:[#allocation2 + $0x90] sm:$0xf] }
 0x190   : > { %v1005_v4 = vor.u32 %v1003_v28, %v1002_v45  ;;  %v1007_v24 = vrot.slane %v1002_v45, 4  ;;  %v988_v25 = vor.u32 %v986_v30, %v985_v46  ;;  %v990_v6 = vrot.slane %v985_v46, 4  ;;  %v2322_v28 = vld [vmem:[#allocation2 + $0x6c] sm:$0xf] }
 0x191   : > { %v1168_v10 = vsel %vm8460_vm14, %v997_v52, %v1167_v58  ;;  %v1161_v15 = vsel %vm8460_vm14, %v980_v55, %v1160_v43  ;;  %v2521_v23 = vor.u32 %v2520_v37, %v2517_v12  ;;  %v2531_v54 = vor.u32 %v2530_v34, %v8738_v40  ;;  %v1272_v12 = vld [vmem:[#allocation2 + $0x84] sm:$0xf]  ;;  %v2324_v37 = vld [vmem:[#allocation2 + $0x74] sm:$0x1] }
 0x192   : > { %1169 = vst [vmem:[#allocation2 + $0xc0] sm:$0xf] %v1168_v10  ;;  %1162 = vst [vmem:[#allocation2 + $0xb4] sm:$0xf] %v1161_v15  ;;  %v1006_v42 = vsel %vm8473_vm4, %v998_v53, %v1005_v4  ;;  %v1172_v29 = vsel %vm8467_vm15, %v1007_v24, %v1171_v63  ;;  %v989_v2 = vsel %vm8473_vm4, %v981_v61, %v988_v25  ;;  %v2536_v60 = vrot.slane %v2534_v51, 5 }
 0x193   : > { %v1165_v32 = vsel %vm8467_vm15, %v990_v6, %v1164_v3  ;;  %1170 = vst.msk [vmem:[#allocation2 + $0xc4] sm:$0xf] %vm628_vm2, %v1006_v42  ;;  %1173 = vst [vmem:[#allocation2 + $0xc8] sm:$0x1] %v1172_v29  ;;  %v2522_v11 = vrot.slane %v2521_v23, 4  ;;  %v1302_v5 = vsel %vm8543_vm6, %v1270_v8, 0 }
 0x194   : > { %1163 = vst.msk [vmem:[#allocation2 + $0xb8] sm:$0xf] %vm628_vm2, %v989_v2  ;;  %1166 = vst [vmem:[#allocation2 + $0xbc] sm:$0x1] %v1165_v32  ;;  %v1303_v47 = vsel %vm8424_vm5, %v1271_v33, 0  ;;  %v2539_v41 = vshrl.u32 %v2319_v9, 16 }
 0x195   : > { %v2542_v13 = vshll.u32 %v2319_v9, 16  ;;  %v2548_v1 = vshll.u32 %v2320_v39, 16  ;;  %v2527_v20 = vsel %vm8695_vm12, %v2522_v11, %v8738_v40  ;;  %v2532_v22 = vrot.slane %v2531_v54, 4  ;;  %v8769_v61 = vld [vmem:[#allocation6 + $0x1c] sm:$0xf] }
 0x196   : > { %v6655_v26 = vcombine.low %v1302_v5, %v1303_v47  ;;  %v2552_v27 = vshrl.u32 %v2320_v39, 16  ;;  %v2541_v30 = vrot.slane %v2539_v41, 4  ;;  %v2558_v35 = vshll.u32 %v2321_v31, 16  ;;  %v1275_v25 = vld [vmem:[#allocation2 + $0x94] sm:$0xf] }
 0x197   : > { %v2544_v21 = vrot.slane %v2542_v13, 5  ;;  %v2550_v58 = vrot.slane %v2548_v1, 5  ;;  %v2537_v43 = vsel %vm8695_vm12, %v2532_v22, %v2536_v60  ;;  %v1304_v46 = vsel %vm8543_vm6, %v1272_v12, 0  ;;  %v2325_v15 = vld [vmem:[#allocation2 + $0x78] sm:$0xf] }
 0x198   : > { %7282 = vmatmul.mubr.msk.bf16.gmra.mrb[48].mxu0 %vm1398_vm7, %v6655_v26  ;;  %v2554_v45 = vrot.slane %v2552_v27, 4  ;;  %v1305_v40 = vsel %vm8424_vm5, %v1273_v17, 0  ;;  %v6749_v51 = vcombine.low %v2527_v20, %v2537_v43  ;;  %v2560_v53 = vrot.slane %v2558_v35, 5  ;;  %v2326_v42 = vld [vmem:[#allocation2 + $0x7c] sm:$0xf] }
 0x199   : > { %v2545_v52 = vor.u32 %v2544_v21, %v2541_v30  ;;  %v6656_v55 = vcombine.low %v1304_v46, %v1305_v40  ;;  %v2563_v3 = vshrl.u32 %v2322_v28, 16  ;;  %v2566_v4 = vshll.u32 %v2322_v28, 16  ;;  %v2327_v11 = vld [vmem:[#allocation2 + $0x80] sm:$0x1]  ;;  %v1276_v12 = vld [vmem:[#allocation2 + $0x9c] sm:$0xf] }
 0x19a   : > { %v2555_v63 = vor.u32 %v2554_v45, %v2550_v58  ;;  %v2572_v24 = vshll.u32 %v2323_v48, 16  ;;  %7380 = vmatmul.mubr.msk.bf16.vlgmr.msra.gmra.mrb[0].mxu1 %vm1398_vm7, %v6749_v51  ;;  %v2576_v8 = vshrl.u32 %v2323_v48, 16  ;;  %v2582_v9 = vshll.u32 %v2324_v37, 16  ;;  %v1277_v17 = vld [vmem:[#allocation2 + $0xa0] sm:$0xf] }
 0x19b   : > { %v2546_v6 = vrot.slane %v2545_v52, 4  ;;  %7285 = vmatprep.mubr.msk.bf16.mxu0 %vm1398_vm7, %v6656_v55  ;;  %v1306_v10 = vsel %vm8543_vm6, %v1274_v50, 0  ;;  %7400 = vmatpush3.bf16.msra.mxu1 %v8488_v7  ;;  %v2565_v34 = vrot.slane %v2563_v3, 4  ;;  %v2568_v33 = vrot.slane %v2566_v4, 5  ;;  %v2328_v28 = vld [vmem:[#allocation2 + $0x84] sm:$0xf] }
 0x19c   : > { %v2556_v23 = vrot.slane %v2555_v63, 4  ;;  %v2574_v39 = vrot.slane %v2572_v24, 5  ;;  %v2578_v2 = vrot.slane %v2576_v8, 4  ;;  %v2584_v32 = vrot.slane %v2582_v9, 5  ;;  %7867 = vmatprep.subr.msk.bf16.mxu1 %vm1447_vm1, %v8769_v61  ;;  %v2329_v35 = vld [vmem:[#allocation2 + $0x88] sm:$0xf] }
 0x19d   : > { %v2551_v29 = vsel %vm8695_vm12, %v2546_v6, %v2550_v58  ;;  %v1307_v31 = vsel %vm8424_vm5, %v1275_v25, 0  ;;  %v2569_v54 = vor.u32 %v2568_v33, %v2565_v34  ;;  %v2587_v5 = vshrl.u32 %v2325_v15, 16  ;;  %v2330_v40 = vld [vmem:[#allocation2 + $0x8c] sm:$0x1]  ;;  %v1278_v55 = vld [vmem:[#allocation2 + $0xa8] sm:$0xf] }
 0x19e   : > { %v2561_v7 = vsel %vm8695_vm12, %v2556_v23, %v2560_v53  ;;  %v6657_v60 = vcombine.low %v1306_v10, %v1307_v31  ;;  %v2579_v41 = vor.u32 %v2578_v2, %v2574_v39  ;;  %v2590_v13 = vshll.u32 %v2325_v15, 16  ;;  %v1279_v25 = vld [vmem:[#allocation2 + $0xac] sm:$0xf]  ;;  %v1970_v6 = vld [vmem:[#allocation6 + $0x18] sm:$0xf] }
 0x19f   : > { %v6750_v47 = vcombine.low %v2551_v29, %v2561_v7  ;;  %v2596_v1 = vshll.u32 %v2326_v42, 16  ;;  %v2570_v20 = vrot.slane %v2569_v54, 4  ;;  %v2589_v22 = vrot.slane %v2587_v5, 4  ;;  %v2331_v23 = vld [vmem:[#allocation2 + $0x90] sm:$0xf]  ;;  %7863 = vmatprep.subr.msk.bf16.mxu0 %vm1447_vm1, %v1970_v6 }
 0x1a0   : > { %7286 = vmatmul.mubr.msk.bf16.gmra.mrb[52].mxu0 %vm1398_vm7, %v6657_v60  ;;  %v2600_v26 = vshrl.u32 %v2326_v42, 16  ;;  %v2606_v27 = vshll.u32 %v2327_v11, 16  ;;  %v2580_v48 = vrot.slane %v2579_v41, 4  ;;  %v2592_v30 = vrot.slane %v2590_v13, 5  ;;  %v2332_v29 = vld [vmem:[#allocation2 + $0x94] sm:$0xf] }
 0x1a1   : > { %7383 = vmatprep.mubr.msk.bf16.mxu1 %vm1398_vm7, %v6750_v47  ;;  %v2598_v21 = vrot.slane %v2596_v1, 5  ;;  %v1308_v58 = vsel %vm8543_vm6, %v1276_v12, 0  ;;  %v2575_v37 = vsel %vm8695_vm12, %v2570_v20, %v2574_v39  ;;  %v1309_v46 = vsel %vm8424_vm5, %v1277_v17, 0  ;;  %v2333_v7 = vld [vmem:[#allocation2 + $0x98] sm:$0x1] }
 0x1a2   : > { %v2602_v43 = vrot.slane %v2600_v26, 4  ;;  %v2608_v45 = vrot.slane %v2606_v27, 5  ;;  %v2585_v50 = vsel %vm8695_vm12, %v2580_v48, %v2584_v32  ;;  %v2593_v51 = vor.u32 %v2592_v30, %v2589_v22  ;;  %v1280_v47 = vld [vmem:[#allocation2 + $0xb4] sm:$0xf]  ;;  %v1281_v20 = vld [vmem:[#allocation2 + $0xb8] sm:$0xf] }
 0x1a3   : > { %v6658_v52 = vcombine.low %v1308_v58, %v1309_v46  ;;  %v2611_v53 = vshrl.u32 %v2328_v28, 16  ;;  %v6751_v63 = vcombine.low %v2575_v37, %v2585_v50  ;;  %v2614_v4 = vshll.u32 %v2328_v28, 16  ;;  %v2334_v48 = vld [vmem:[#allocation2 + $0x9c] sm:$0xf]  ;;  %v2335_v37 = vld [vmem:[#allocation2 + $0xa0] sm:$0xf] }
 0x1a4   : > { %v2603_v3 = vor.u32 %v2602_v43, %v2598_v21  ;;  %v2620_v24 = vshll.u32 %v2329_v35, 16  ;;  %v2594_v8 = vrot.slane %v2593_v51, 4  ;;  %v2624_v10 = vshrl.u32 %v2329_v35, 16  ;;  %v2336_v50 = vld [vmem:[#allocation2 + $0xa4] sm:$0x1] }
 0x1a5   : > { %7289 = vmatprep.mubr.msk.bf16.mxu0 %vm1398_vm7, %v6658_v52  ;;  %v2613_v9 = vrot.slane %v2611_v53, 4  ;;  %v2630_v15 = vshll.u32 %v2330_v40, 16  ;;  %7384 = vmatmul.mubr.msk.bf16.gmra.mrb[4].mxu1 %vm1398_vm7, %v6751_v63  ;;  %v2616_v33 = vrot.slane %v2614_v4, 5  ;;  %v1310_v42 = vsel %vm8543_vm6, %v1278_v55, 0  ;;  %v1282_v63 = vld [vmem:[#allocation2 + $0xc0] sm:$0xf] }
 0x1a6   : > { %v2604_v34 = vrot.slane %v2603_v3, 4  ;;  %v2622_v39 = vrot.slane %v2620_v24, 5  ;;  %v2599_v2 = vsel %vm8695_vm12, %v2594_v8, %v2598_v21  ;;  %v2626_v32 = vrot.slane %v2624_v10, 4  ;;  %v1283_v6 = vld [vmem:[#allocation2 + $0xc4] sm:$0xf] }
 0x1a7   : > { %v2632_v31 = vrot.slane %v2630_v15, 5  ;;  %v1311_v11 = vsel %vm8424_vm5, %v1279_v25, 0  ;;  %v2617_v60 = vor.u32 %v2616_v33, %v2613_v9  ;;  %v2635_v12 = vshrl.u32 %v2331_v23, 16 }
 0x1a8   : > { %v2609_v54 = vsel %vm8695_vm12, %v2604_v34, %v2608_v45  ;;  %v6659_v5 = vcombine.low %v1310_v42, %v1311_v11  ;;  %v2627_v13 = vor.u32 %v2626_v32, %v2622_v39  ;;  %v2638_v1 = vshll.u32 %v2331_v23, 16  ;;  %v2337_v23 = vld [vmem:[#allocation2 + $0xa8] sm:$0xf] }
 0x1a9   : > { %v6752_v41 = vcombine.low %v2599_v2, %v2609_v54  ;;  %v2644_v17 = vshll.u32 %v2332_v29, 16  ;;  %v2618_v22 = vrot.slane %v2617_v60, 4  ;;  %v2637_v26 = vrot.slane %v2635_v12, 4 }
 0x1aa   : > { %7290 = vmatmul.mubr.msk.bf16.gmra.mrb[56].mxu0 %vm1398_vm7, %v6659_v5  ;;  %v2648_v27 = vshrl.u32 %v2332_v29, 16  ;;  %v2654_v28 = vshll.u32 %v2333_v7, 16  ;;  %v2628_v30 = vrot.slane %v2627_v13, 4  ;;  %v2640_v21 = vrot.slane %v2638_v1, 5  ;;  %v2338_v29 = vld [vmem:[#allocation2 + $0xac] sm:$0xf] }
 0x1ab   : > { %7387 = vmatprep.mubr.msk.bf16.mxu1 %vm1398_vm7, %v6752_v41  ;;  %v2646_v58 = vrot.slane %v2644_v17, 5  ;;  %v1312_v35 = vsel %vm8543_vm6, %v1280_v47, 0  ;;  %v2623_v43 = vsel %vm8695_vm12, %v2618_v22, %v2622_v39  ;;  %v1313_v40 = vsel %vm8424_vm5, %v1281_v20, 0  ;;  %v2339_v7 = vld [vmem:[#allocation2 + $0xb0] sm:$0x1] }
 0x1ac   : > { %v2650_v45 = vrot.slane %v2648_v27, 4  ;;  %v2656_v46 = vrot.slane %v2654_v28, 5  ;;  %v2633_v51 = vsel %vm8695_vm12, %v2628_v30, %v2632_v31  ;;  %v2641_v52 = vor.u32 %v2640_v21, %v2637_v26  ;;  %v1182_v47 = vld [vmem:[#allocation2 + $0x4] sm:$0xf]  ;;  %v2340_v28 = vld [vmem:[#allocation2 + $0xb4] sm:$0xf] }
 0x1ad   : > { %v6660_v53 = vcombine.low %v1312_v35, %v1313_v40  ;;  %v2659_v55 = vshrl.u32 %v2334_v48, 16  ;;  %v6753_v3 = vcombine.low %v2623_v43, %v2633_v51  ;;  %v2662_v24 = vshll.u32 %v2334_v48, 16  ;;  %v2341_v35 = vld [vmem:[#allocation2 + $0xb8] sm:$0xf]  ;;  %v2342_v40 = vld [vmem:[#allocation2 + $0xbc] sm:$0x1] }
 0x1ae   : > { %v2651_v4 = vor.u32 %v2650_v45, %v2646_v58  ;;  %v2668_v25 = vshll.u32 %v2335_v37, 16  ;;  %v2642_v8 = vrot.slane %v2641_v52, 4  ;;  %v2672_v10 = vshrl.u32 %v2335_v37, 16 }
 0x1af   : > { %7293 = vmatprep.mubr.msk.bf16.mxu0 %vm1398_vm7, %v6660_v53  ;;  %v2661_v9 = vrot.slane %v2659_v55, 4  ;;  %v2678_v15 = vshll.u32 %v2336_v50, 16  ;;  %7388 = vmatmul.mubr.msk.bf16.gmra.mrb[8].mxu1 %vm1398_vm7, %v6753_v3  ;;  %v2664_v33 = vrot.slane %v2662_v24, 5  ;;  %v1314_v42 = vsel %vm8543_vm6, %v1282_v63, 0  ;;  %v1183_v55 = vld [vmem:[#allocation2 + $0xc] sm:$0xf] }
 0x1b0   : > { %v2652_v34 = vrot.slane %v2651_v4, 4  ;;  %v2670_v39 = vrot.slane %v2668_v25, 5  ;;  %v2647_v2 = vsel %vm8695_vm12, %v2642_v8, %v2646_v58  ;;  %v2674_v32 = vrot.slane %v2672_v10, 4  ;;  %v1184_v25 = vld [vmem:[#allocation2 + $0x10] sm:$0xf] }
 0x1b1   : > { %v2680_v31 = vrot.slane %v2678_v15, 5  ;;  %v1315_v11 = vsel %vm8424_vm5, %v1283_v6, 0  ;;  %v2665_v60 = vor.u32 %v2664_v33, %v2661_v9  ;;  %v2683_v12 = vshrl.u32 %v2337_v23, 16  ;;  %v3025_v33 = vld [vmem:[#allocation2 + $0x10] sm:$0xf] }
 0x1b2   : > { %v2657_v54 = vsel %vm8695_vm12, %v2652_v34, %v2656_v46  ;;  %v6661_v5 = vcombine.low %v1314_v42, %v1315_v11  ;;  %v2675_v13 = vor.u32 %v2674_v32, %v2670_v39  ;;  %v2686_v1 = vshll.u32 %v2337_v23, 16  ;;  %v3026_v32 = vld [vmem:[#allocation2 + $0x14] sm:$0x1] }
 0x1b3   : > { %v6754_v41 = vcombine.low %v2647_v2, %v2657_v54  ;;  %v2692_v17 = vshll.u32 %v2338_v29, 16  ;;  %v2666_v20 = vrot.slane %v2665_v60, 4  ;;  %v2685_v22 = vrot.slane %v2683_v12, 4  ;;  %v1185_v60 = vld [vmem:[#allocation2 + $0x18] sm:$0xf] }
 0x1b4   : > { %7294 = vmatmul.mubr.msk.bf16.gmra.mrb[60].mxu0 %vm1398_vm7, %v6661_v5  ;;  %v2696_v26 = vshrl.u32 %v2338_v29, 16  ;;  %v2702_v27 = vshll.u32 %v2339_v7, 16  ;;  %v2676_v48 = vrot.slane %v2675_v13, 4  ;;  %v2688_v30 = vrot.slane %v2686_v1, 5  ;;  %v1186_v13 = vld [vmem:[#allocation2 + $0x1c] sm:$0xf] }
 0x1b5   : > { %7391 = vmatprep.mubr.msk.bf16.mxu1 %vm1398_vm7, %v6754_v41  ;;  %v2694_v21 = vrot.slane %v2692_v17, 5  ;;  %v1220_v58 = vsel %vm8424_vm5, %v1182_v47, 0  ;;  %v2671_v37 = vsel %vm8695_vm12, %v2666_v20, %v2670_v39  ;;  %v2707_v52 = vshrl.u32 %v2340_v28, 16 }
 0x1b6   : > { %v2698_v43 = vrot.slane %v2696_v26, 4  ;;  %v2704_v45 = vrot.slane %v2702_v27, 5  ;;  %v6678_v46 = vcombine.low %v1219_v44, %v1220_v58  ;;  %v2681_v50 = vsel %vm8695_vm12, %v2676_v48, %v2680_v31  ;;  %v3024_v44 = vld [vmem:[#allocation2 + $0xc] sm:$0xf]  ;;  %v3027_v26 = vld [vmem:[#allocation2 + $0x18] sm:$0xf] }
 0x1b7   : > { %v2689_v51 = vor.u32 %v2688_v30, %v2685_v22  ;;  %v2710_v53 = vshll.u32 %v2340_v28, 16  ;;  %v6755_v63 = vcombine.low %v2671_v37, %v2681_v50  ;;  %v2716_v4 = vshll.u32 %v2341_v35, 16 }
 0x1b8   : > { %v2699_v3 = vor.u32 %v2698_v43, %v2694_v21  ;;  %7299 = vmatprep.mubr.msk.bf16.mxu0 %vm1398_vm7, %v6678_v46  ;;  %v2720_v24 = vshrl.u32 %v2341_v35, 16  ;;  %v2709_v8 = vrot.slane %v2707_v52, 4  ;;  %v2726_v38 = vshll.u32 %v2342_v40, 16  ;;  %v1187_v52 = vld [vmem:[#allocation2 + $0x24] sm:$0xf] }
 0x1b9   : > { %v2690_v6 = vrot.slane %v2689_v51, 4  ;;  %v2712_v9 = vrot.slane %v2710_v53, 5  ;;  %7392 = vmatmul.mubr.msk.bf16.gmra.mrb[12].mxu1 %vm1398_vm7, %v6755_v63  ;;  %v2718_v15 = vrot.slane %v2716_v4, 5  ;;  %v1221_v34 = vsel %vm8543_vm6, %v1183_v55, 0  ;;  %v1188_v4 = vld [vmem:[#allocation2 + $0x28] sm:$0xf] }
 0x1ba   : > { %v2700_v10 = vrot.slane %v2699_v3, 4  ;;  %v2722_v23 = vrot.slane %v2720_v24, 4  ;;  %v2728_v29 = vrot.slane %v2726_v38, 5  ;;  %v1222_v2 = vsel %vm8424_vm5, %v1184_v25, 0 }
 0x1bb   : > { %v2695_v39 = vsel %vm8695_vm12, %v2690_v6, %v2694_v21  ;;  %v2713_v42 = vor.u32 %v2712_v9, %v2709_v8  ;;  %v6679_v7 = vcombine.low %v1221_v34, %v1222_v2  ;;  %v3073_v54 = vshrl.u32 %v3024_v44, 16  ;;  %v3028_v21 = vld [vmem:[#allocation2 + $0x1c] sm:$0xf]  ;;  %v3030_v9 = vld [vmem:[#allocation2 + $0x24] sm:$0xf] }
 0x1bc   : > { %v2705_v31 = vsel %vm8695_vm12, %v2700_v10, %v2704_v45  ;;  %v2723_v11 = vor.u32 %v2722_v23, %v2718_v15  ;;  %v3076_v47 = vshll.u32 %v3024_v44, 16  ;;  %v3082_v41 = vshll.u32 %v3025_v33, 16  ;;  %v3029_v45 = vld [vmem:[#allocation2 + $0x20] sm:$0x1]  ;;  %v3031_v23 = vld [vmem:[#allocation2 + $0x28] sm:$0xf] }
 0x1bd   : > { %v6756_v5 = vcombine.low %v2695_v39, %v2705_v31  ;;  %v2714_v12 = vrot.slane %v2713_v42, 4  ;;  %7300 = vmatmul.mubr.msk.bf16.vlgmr.msra.gmra.mrb[32].mxu0 %vm1398_vm7, %v6679_v7  ;;  %v3075_v17 = vrot.slane %v3073_v54, 4  ;;  %v3086_v20 = vshrl.u32 %v3025_v33, 16 }
 0x1be   : > { %v2724_v1 = vrot.slane %v2723_v11, 4  ;;  %v3092_v22 = vshll.u32 %v3026_v32, 16  ;;  %v3078_v28 = vrot.slane %v3076_v47, 5  ;;  %v3084_v48 = vrot.slane %v3082_v41, 5  ;;  %v1189_v11 = vld [vmem:[#allocation2 + $0x30] sm:$0xf] }
 0x1bf   : > { %7395 = vmatprep.mubr.msk.bf16.mxu1 %vm1398_vm7, %v6756_v5  ;;  %v2719_v27 = vsel %vm8695_vm12, %v2714_v12, %v2718_v15  ;;  %v1223_v30 = vsel %vm8543_vm6, %v1185_v60, 0  ;;  %v3088_v35 = vrot.slane %v3086_v20, 4  ;;  %v1224_v43 = vsel %vm8424_vm5, %v1186_v13, 0  ;;  %v3033_v12 = vld [vmem:[#allocation2 + $0x30] sm:$0xf] }
 0x1c0   : > { %v2729_v58 = vsel %vm8695_vm12, %v2724_v1, %v2728_v29  ;;  %v3094_v37 = vrot.slane %v3092_v22, 5  ;;  %v3079_v40 = vor.u32 %v3078_v28, %v3075_v17  ;;  %v6680_v50 = vcombine.low %v1223_v30, %v1224_v43  ;;  %v3032_v29 = vld [vmem:[#allocation2 + $0x2c] sm:$0x1]  ;;  %v1190_v17 = vld [vmem:[#allocation2 + $0x34] sm:$0xf] }
 0x1c1   : > { %v6757_v46 = vcombine.low %v2719_v27, %v2729_v58  ;;  %v3097_v51 = vshrl.u32 %v3027_v26, 16  ;;  %v3089_v53 = vor.u32 %v3088_v35, %v3084_v48  ;;  %v3100_v55 = vshll.u32 %v3027_v26, 16  ;;  %v3034_v28 = vld [vmem:[#allocation2 + $0x34] sm:$0xf]  ;;  %v3035_v35 = vld [vmem:[#allocation2 + $0x38] sm:$0x1] }
 0x1c2   : > { %v3106_v63 = vshll.u32 %v3028_v21, 16  ;;  %v3110_v3 = vshrl.u32 %v3028_v21, 16  ;;  %v3080_v24 = vrot.slane %v3079_v40, 4  ;;  %7303 = vmatprep.mubr.msk.bf16.mxu0 %vm1398_vm7, %v6680_v50  ;;  %v3116_v6 = vshll.u32 %v3029_v45, 16  ;;  %v1191_v40 = vld [vmem:[#allocation2 + $0x3c] sm:$0xf] }
 0x1c3   : > { %7396 = vmatmul.mubr.msk.bf16.gmra.mrb[16].mxu1 %vm1398_vm7, %v6757_v46  ;;  %v3099_v25 = vrot.slane %v3097_v51, 4  ;;  %v4281_v8 = vsel %vm1447_vm1, %v8769_v61, 0  ;;  %v3090_v38 = vrot.slane %v3089_v53, 4  ;;  %v3102_v44 = vrot.slane %v3100_v55, 5  ;;  %v1192_v55 = vld [vmem:[#allocation2 + $0x40] sm:$0xf] }
 0x1c4   : > { %v3108_v10 = vrot.slane %v3106_v63, 5  ;;  %v3112_v15 = vrot.slane %v3110_v3, 4  ;;  %v3085_v34 = vsel %vm8695_vm12, %v3080_v24, %v3084_v48  ;;  %v3118_v33 = vrot.slane %v3116_v6, 5  ;;  %v8879_v63 = vld [vmem:[#allocation6 + $0x8] sm:$0xf] }
 0x1c5   : > { %v1225_v39 = vsel %vm8543_vm6, %v1187_v52, 0  ;;  %v1226_v42 = vsel %vm8424_vm5, %v1188_v4, 0  ;;  %v3095_v61 = vsel %vm8695_vm12, %v3090_v38, %v3094_v37  ;;  %v3103_v2 = vor.u32 %v3102_v44, %v3099_v25  ;;  %v3036_v6 = vld [vmem:[#allocation2 + $0x3c] sm:$0xf] }
 0x1c6   : > { %v3113_v32 = vor.u32 %v3112_v15, %v3108_v10  ;;  %v6681_v31 = vcombine.low %v1225_v39, %v1226_v42  ;;  %v6774_v7 = vcombine.low %v3085_v34, %v3095_v61  ;;  %v3121_v54 = vshrl.u32 %v3030_v9, 16  ;;  %v3037_v15 = vld [vmem:[#allocation2 + $0x40] sm:$0xf]  ;;  %v3038_v42 = vld [vmem:[#allocation2 + $0x44] sm:$0x1] }
 0x1c7   : > { %v3124_v60 = vshll.u32 %v3030_v9, 16  ;;  %v3130_v5 = vshll.u32 %v3031_v23, 16  ;;  %v3104_v47 = vrot.slane %v3103_v2, 4  ;;  %v3134_v13 = vshrl.u32 %v3031_v23, 16 }
 0x1c8   : > { %v3114_v41 = vrot.slane %v3113_v32, 4  ;;  %7304 = vmatmul.mubr.msk.bf16.gmra.mrb[36].mxu0 %vm1398_vm7, %v6681_v31  ;;  %v3140_v1 = vshll.u32 %v3032_v29, 16  ;;  %7401 = vmatprep.mubr.msk.bf16.mxu1 %vm1398_vm7, %v6774_v7  ;;  %v3123_v20 = vrot.slane %v3121_v54, 4  ;;  %v1227_v27 = vsel %vm8543_vm6, %v1189_v11, 0  ;;  %v1193_v32 = vld [vmem:[#allocation2 + $0x48] sm:$0xf] }
 0x1c9   : > { %v3126_v22 = vrot.slane %v3124_v60, 5  ;;  %v3132_v26 = vrot.slane %v3130_v5, 5  ;;  %v3109_v48 = vsel %vm8695_vm12, %v3104_v47, %v3108_v10  ;;  %v3136_v21 = vrot.slane %v3134_v13, 4  ;;  %v1194_v60 = vld [vmem:[#allocation2 + $0x4c] sm:$0xf] }
 0x1ca   : > { %v3119_v30 = vsel %vm8695_vm12, %v3114_v41, %v3118_v33  ;;  %v3142_v58 = vrot.slane %v3140_v1, 5  ;;  %v1228_v45 = vsel %vm8424_vm5, %v1190_v17, 0  ;;  %v3145_v46 = vshrl.u32 %v3033_v12, 16  ;;  %v3039_v13 = vld [vmem:[#allocation2 + $0x48] sm:$0xf] }
 0x1cb   : > { %v6775_v37 = vcombine.low %v3109_v48, %v3119_v30  ;;  %v3127_v43 = vor.u32 %v3126_v22, %v3123_v20  ;;  %v3137_v50 = vor.u32 %v3136_v21, %v3132_v26  ;;  %v6682_v51 = vcombine.low %v1227_v27, %v1228_v45  ;;  %v3041_v21 = vld [vmem:[#allocation2 + $0x50] sm:$0x1]  ;;  %v1195_v45 = vld [vmem:[#allocation2 + $0x54] sm:$0xf] }
 0x1cc   : > { %v3148_v52 = vshll.u32 %v3033_v12, 16  ;;  %v3154_v53 = vshll.u32 %v3034_v28, 16  ;;  %v3147_v4 = vrot.slane %v3145_v46, 4  ;;  %v3158_v24 = vshrl.u32 %v3034_v28, 16 }
 0x1cd   : > { %7402 = vmatmul.mubr.msk.bf16.vlgmr.msra.gmra.mrb[20].mxu1 %vm1398_vm7, %v6775_v37  ;;  %v3128_v3 = vrot.slane %v3127_v43, 4  ;;  %v3164_v25 = vshll.u32 %v3035_v35, 16  ;;  %v3138_v9 = vrot.slane %v3137_v50, 4  ;;  %7307 = vmatprep.mubr.msk.bf16.mxu0 %vm1398_vm7, %v6682_v51  ;;  %v1229_v10 = vsel %vm8543_vm6, %v1191_v40, 0 }
 0x1ce   : > { %7434 = vmatpush3.bf16.msra.mxu1 %v4281_v8  ;;  %v3150_v38 = vrot.slane %v3148_v52, 5  ;;  %v3156_v44 = vrot.slane %v3154_v53, 5  ;;  %v3160_v34 = vrot.slane %v3158_v24, 4  ;;  %v1230_v39 = vsel %vm8424_vm5, %v1192_v55, 0  ;;  %v1196_v52 = vld [vmem:[#allocation2 + $0x58] sm:$0xf] }
 0x1cf   : > { %v3133_v23 = vsel %vm8695_vm12, %v3128_v3, %v3132_v26  ;;  %v3166_v33 = vrot.slane %v3164_v25, 5  ;;  %7868 = vmatprep.subr.msk.bf16.mxu1 %vm1447_vm1, %v8879_v63  ;;  %v3143_v8 = vsel %vm8695_vm12, %v3138_v9, %v3142_v58  ;;  %v6683_v61 = vcombine.low %v1229_v10, %v1230_v39  ;;  %v3040_v26 = vld [vmem:[#allocation2 + $0x4c] sm:$0xf]  ;;  %v3042_v24 = vld [vmem:[#allocation2 + $0x54] sm:$0xf] }
 0x1d0   : > { %v3151_v29 = vor.u32 %v3150_v38, %v3147_v4  ;;  %v3169_v2 = vshrl.u32 %v3036_v6, 16  ;;  %v6776_v31 = vcombine.low %v3133_v23, %v3143_v8  ;;  %v3161_v11 = vor.u32 %v3160_v34, %v3156_v44 }
 0x1d1   : > { %v3172_v7 = vshll.u32 %v3036_v6, 16  ;;  %v3178_v54 = vshll.u32 %v3037_v15, 16  ;;  %7308 = vmatmul.mubr.msk.bf16.gmra.mrb[40].mxu0 %vm1398_vm7, %v6683_v61  ;;  %v3182_v47 = vshrl.u32 %v3037_v15, 16  ;;  %v3188_v41 = vshll.u32 %v3038_v42, 16  ;;  %v1197_v61 = vld [vmem:[#allocation2 + $0x60] sm:$0xf] }
 0x1d2   : > { %v3152_v5 = vrot.slane %v3151_v29, 4  ;;  %v3171_v12 = vrot.slane %v3169_v2, 4  ;;  %7405 = vmatprep.mubr.msk.bf16.mxu1 %vm1398_vm7, %v6776_v31  ;;  %v3162_v1 = vrot.slane %v3161_v11, 4  ;;  %v1231_v22 = vsel %vm8543_vm6, %v1193_v32, 0 }
 0x1d3   : > { %v3174_v17 = vrot.slane %v3172_v7, 5  ;;  %v3180_v20 = vrot.slane %v3178_v54, 5  ;;  %v3184_v28 = vrot.slane %v3182_v47, 4  ;;  %v3190_v48 = vrot.slane %v3188_v41, 5  ;;  %v1198_v7 = vld [vmem:[#allocation2 + $0x64] sm:$0xf] }
 0x1d4   : > { %v3157_v27 = vsel %vm8695_vm12, %v3152_v5, %v3156_v44  ;;  %v1232_v30 = vsel %vm8424_vm5, %v1194_v60, 0  ;;  %v3167_v58 = vsel %vm8695_vm12, %v3162_v1, %v3166_v33  ;;  %v3193_v43 = vshrl.u32 %v3039_v13, 16  ;;  %v3043_v44 = vld [vmem:[#allocation2 + $0x58] sm:$0xf]  ;;  %v3044_v33 = vld [vmem:[#allocation2 + $0x5c] sm:$0x1] }
 0x1d5   : > { %v3175_v35 = vor.u32 %v3174_v17, %v3171_v12  ;;  %v6684_v37 = vcombine.low %v1231_v22, %v1232_v30  ;;  %v6777_v46 = vcombine.low %v3157_v27, %v3167_v58  ;;  %v3185_v40 = vor.u32 %v3184_v28, %v3180_v20  ;;  %v3045_v47 = vld [vmem:[#allocation2 + $0x60] sm:$0xf] }
 0x1d6   : > { %v3196_v50 = vshll.u32 %v3039_v13, 16  ;;  %v3202_v51 = vshll.u32 %v3040_v26, 16  ;;  %v3195_v55 = vrot.slane %v3193_v43, 4  ;;  %v3206_v3 = vshrl.u32 %v3040_v26, 16 }
 0x1d7   : > { %v3176_v53 = vrot.slane %v3175_v35, 4  ;;  %7311 = vmatprep.mubr.msk.bf16.mxu0 %vm1398_vm7, %v6684_v37  ;;  %v3212_v4 = vshll.u32 %v3041_v21, 16  ;;  %7406 = vmatmul.mubr.msk.bf16.gmra.mrb[24].mxu1 %vm1398_vm7, %v6777_v46  ;;  %v3186_v25 = vrot.slane %v3185_v40, 4  ;;  %v1233_v38 = vsel %vm8543_vm6, %v1195_v45, 0  ;;  %v1199_v37 = vld [vmem:[#allocation2 + $0x6c] sm:$0xf] }
 0x1d8   : > { %v3198_v6 = vrot.slane %v3196_v50, 5  ;;  %v3204_v9 = vrot.slane %v3202_v51, 5  ;;  %v3208_v15 = vrot.slane %v3206_v3, 4  ;;  %v1234_v34 = vsel %vm8424_vm5, %v1196_v52, 0  ;;  %v1200_v50 = vld [vmem:[#allocation2 + $0x70] sm:$0xf] }
 0x1d9   : > { %v3181_v10 = vsel %vm8695_vm12, %v3176_v53, %v3180_v20  ;;  %v3214_v23 = vrot.slane %v3212_v4, 5  ;;  %v3191_v39 = vsel %vm8695_vm12, %v3186_v25, %v3190_v48  ;;  %v6685_v8 = vcombine.low %v1233_v38, %v1234_v34  ;;  %v3046_v20 = vld [vmem:[#allocation2 + $0x64] sm:$0xf]  ;;  %v3047_v48 = vld [vmem:[#allocation2 + $0x68] sm:$0x1] }
 0x1da   : > { %v3199_v42 = vor.u32 %v3198_v6, %v3195_v55  ;;  %v3217_v29 = vshrl.u32 %v3042_v24, 16  ;;  %v6778_v2 = vcombine.low %v3181_v10, %v3191_v39  ;;  %v3209_v32 = vor.u32 %v3208_v15, %v3204_v9  ;;  %v3048_v3 = vld [vmem:[#allocation2 + $0x6c] sm:$0xf] }
 0x1db   : > { %v3220_v31 = vshll.u32 %v3042_v24, 16  ;;  %v3226_v11 = vshll.u32 %v3043_v44, 16  ;;  %7312 = vmatmul.mubr.msk.bf16.gmra.mrb[44].mxu0 %vm1398_vm7, %v6685_v8  ;;  %v3230_v5 = vshrl.u32 %v3043_v44, 16  ;;  %v3236_v12 = vshll.u32 %v3044_v33, 16  ;;  %v1201_v8 = vld [vmem:[#allocation2 + $0x78] sm:$0xf] }
 0x1dc   : > { %v3200_v54 = vrot.slane %v3199_v42, 4  ;;  %v3219_v60 = vrot.slane %v3217_v29, 4  ;;  %7409 = vmatprep.mubr.msk.bf16.mxu1 %vm1398_vm7, %v6778_v2  ;;  %v3210_v41 = vrot.slane %v3209_v32, 4  ;;  %v1235_v17 = vsel %vm8543_vm6, %v1197_v61, 0 }
 0x1dd   : > { %v3222_v13 = vrot.slane %v3220_v31, 5  ;;  %v3228_v1 = vrot.slane %v3226_v11, 5  ;;  %v3232_v26 = vrot.slane %v3230_v5, 4  ;;  %v3238_v27 = vrot.slane %v3236_v12, 5  ;;  %v1202_v31 = vld [vmem:[#allocation2 + $0x7c] sm:$0xf] }
 0x1de   : > { %v3205_v22 = vsel %vm8695_vm12, %v3200_v54, %v3204_v9  ;;  %v1236_v28 = vsel %vm8424_vm5, %v1198_v7, 0  ;;  %v3215_v30 = vsel %vm8695_vm12, %v3210_v41, %v3214_v23  ;;  %v3241_v35 = vshrl.u32 %v3045_v47, 16  ;;  %v3049_v9 = vld [vmem:[#allocation2 + $0x70] sm:$0xf]  ;;  %v3050_v23 = vld [vmem:[#allocation2 + $0x74] sm:$0x1] }
 0x1df   : > { %v3223_v21 = vor.u32 %v3222_v13, %v3219_v60  ;;  %v6686_v58 = vcombine.low %v1235_v17, %v1236_v28  ;;  %v6779_v43 = vcombine.low %v3205_v22, %v3215_v30  ;;  %v3233_v45 = vor.u32 %v3232_v26, %v3228_v1  ;;  %v3051_v5 = vld [vmem:[#allocation2 + $0x78] sm:$0xf] }
 0x1e0   : > { %v3244_v46 = vshll.u32 %v3045_v47, 16  ;;  %v3250_v40 = vshll.u32 %v3046_v20, 16  ;;  %v3243_v52 = vrot.slane %v3241_v35, 4  ;;  %v3254_v53 = vshrl.u32 %v3046_v20, 16 }
 0x1e1   : > { %v3224_v51 = vrot.slane %v3223_v21, 4  ;;  %7315 = vmatprep.mubr.msk.bf16.mxu0 %vm1398_vm7, %v6686_v58  ;;  %v3260_v55 = vshll.u32 %v3047_v48, 16  ;;  %7410 = vmatmul.mubr.msk.bf16.gmra.mrb[28].mxu1 %vm1398_vm7, %v6779_v43  ;;  %v3234_v4 = vrot.slane %v3233_v45, 4  ;;  %v1237_v6 = vsel %vm8543_vm6, %v1199_v37, 0  ;;  %v1203_v58 = vld [vmem:[#allocation2 + $0x84] sm:$0xf] }
 0x1e2   : > { %v3246_v24 = vrot.slane %v3244_v46, 5  ;;  %v3252_v25 = vrot.slane %v3250_v40, 5  ;;  %v3256_v44 = vrot.slane %v3254_v53, 4  ;;  %v1238_v15 = vsel %vm8424_vm5, %v1200_v50, 0  ;;  %v1204_v46 = vld [vmem:[#allocation2 + $0x88] sm:$0xf] }
 0x1e3   : > { %v3229_v38 = vsel %vm8695_vm12, %v3224_v51, %v3228_v1  ;;  %v3262_v10 = vrot.slane %v3260_v55, 5  ;;  %v3239_v34 = vsel %vm8695_vm12, %v3234_v4, %v3238_v27  ;;  %v6687_v39 = vcombine.low %v1237_v6, %v1238_v15  ;;  %v3052_v1 = vld [vmem:[#allocation2 + $0x7c] sm:$0xf]  ;;  %v3053_v27 = vld [vmem:[#allocation2 + $0x80] sm:$0x1] }
 0x1e4   : > { %v3247_v33 = vor.u32 %v3246_v24, %v3243_v52  ;;  %v3265_v42 = vshrl.u32 %v3048_v3, 16  ;;  %v6780_v29 = vcombine.low %v3229_v38, %v3239_v34  ;;  %v3257_v61 = vor.u32 %v3256_v44, %v3252_v25  ;;  %v3054_v53 = vld [vmem:[#allocation2 + $0x84] sm:$0xf] }
 0x1e5   : > { %v3268_v2 = vshll.u32 %v3048_v3, 16  ;;  %v3274_v32 = vshll.u32 %v3049_v9, 16  ;;  %7316 = vmatmul.mubr.msk.bf16.gmra.mrb[48].mxu0 %vm1398_vm7, %v6687_v39  ;;  %v3278_v54 = vshrl.u32 %v3049_v9, 16  ;;  %v3284_v60 = vshll.u32 %v3050_v23, 16  ;;  %v1205_v39 = vld [vmem:[#allocation2 + $0x90] sm:$0xf] }
 0x1e6   : > { %v3248_v11 = vrot.slane %v3247_v33, 4  ;;  %v3267_v7 = vrot.slane %v3265_v42, 4  ;;  %7413 = vmatprep.mubr.msk.bf16.mxu1 %vm1398_vm7, %v6780_v29  ;;  %v3258_v12 = vrot.slane %v3257_v61, 4  ;;  %v1239_v13 = vsel %vm8543_vm6, %v1201_v8, 0 }
 0x1e7   : > { %v3270_v47 = vrot.slane %v3268_v2, 5  ;;  %v3276_v41 = vrot.slane %v3274_v32, 5  ;;  %v3280_v20 = vrot.slane %v3278_v54, 4  ;;  %v3286_v22 = vrot.slane %v3284_v60, 5  ;;  %v1206_v2 = vld [vmem:[#allocation2 + $0x94] sm:$0xf] }
 0x1e8   : > { %v3253_v17 = vsel %vm8695_vm12, %v3248_v11, %v3252_v25  ;;  %v1240_v26 = vsel %vm8424_vm5, %v1202_v31, 0  ;;  %v3263_v28 = vsel %vm8695_vm12, %v3258_v12, %v3262_v10  ;;  %v3289_v21 = vshrl.u32 %v3051_v5, 16  ;;  %v3055_v25 = vld [vmem:[#allocation2 + $0x88] sm:$0xf]  ;;  %v3056_v10 = vld [vmem:[#allocation2 + $0x8c] sm:$0x1] }
 0x1e9   : > { %v3271_v48 = vor.u32 %v3270_v47, %v3267_v7  ;;  %v6688_v30 = vcombine.low %v1239_v13, %v1240_v26  ;;  %v6781_v35 = vcombine.low %v3253_v17, %v3263_v28  ;;  %v3281_v37 = vor.u32 %v3280_v20, %v3276_v41  ;;  %v3057_v54 = vld [vmem:[#allocation2 + $0x90] sm:$0xf] }
 0x1ea   : > { %v3292_v43 = vshll.u32 %v3051_v5, 16  ;;  %v3298_v45 = vshll.u32 %v3052_v1, 16  ;;  %v3291_v50 = vrot.slane %v3289_v21, 4  ;;  %v3302_v51 = vshrl.u32 %v3052_v1, 16 }
 0x1eb   : > { %v3272_v40 = vrot.slane %v3271_v48, 4  ;;  %7319 = vmatprep.mubr.msk.bf16.mxu0 %vm1398_vm7, %v6688_v30  ;;  %v3308_v52 = vshll.u32 %v3053_v27, 16  ;;  %7414 = vmatmul.mubr.msk.bf16.gmra.mrb[0].mxu1 %vm1398_vm7, %v6781_v35  ;;  %v3282_v55 = vrot.slane %v3281_v37, 4  ;;  %v1241_v24 = vsel %vm8543_vm6, %v1203_v58, 0  ;;  %v1207_v30 = vld [vmem:[#allocation2 + $0x9c] sm:$0xf] }
 0x1ec   : > { %v3294_v3 = vrot.slane %v3292_v43, 5  ;;  %v3300_v4 = vrot.slane %v3298_v45, 5  ;;  %v3304_v9 = vrot.slane %v3302_v51, 4  ;;  %v1242_v44 = vsel %vm8424_vm5, %v1204_v46, 0  ;;  %v1208_v43 = vld [vmem:[#allocation2 + $0xa0] sm:$0xf] }
 0x1ed   : > { %v3277_v6 = vsel %vm8695_vm12, %v3272_v40, %v3276_v41  ;;  %v3310_v38 = vrot.slane %v3308_v52, 5  ;;  %v3287_v15 = vsel %vm8695_vm12, %v3282_v55, %v3286_v22  ;;  %v6689_v34 = vcombine.low %v1241_v24, %v1242_v44  ;;  %v3058_v41 = vld [vmem:[#allocation2 + $0x94] sm:$0xf]  ;;  %v3059_v22 = vld [vmem:[#allocation2 + $0x98] sm:$0x1] }
 0x1ee   : > { %v3295_v23 = vor.u32 %v3294_v3, %v3291_v50  ;;  %v3313_v33 = vshrl.u32 %v3054_v53, 16  ;;  %v6782_v42 = vcombine.low %v3277_v6, %v3287_v15  ;;  %v3305_v8 = vor.u32 %v3304_v9, %v3300_v4  ;;  %v3060_v51 = vld [vmem:[#allocation2 + $0x9c] sm:$0xf] }
 0x1ef   : > { %v3316_v29 = vshll.u32 %v3054_v53, 16  ;;  %v3322_v61 = vshll.u32 %v3055_v25, 16  ;;  %7320 = vmatmul.mubr.msk.bf16.gmra.mrb[52].mxu0 %vm1398_vm7, %v6689_v34  ;;  %v3326_v11 = vshrl.u32 %v3055_v25, 16  ;;  %v3332_v7 = vshll.u32 %v3056_v10, 16  ;;  %v1209_v34 = vld [vmem:[#allocation2 + $0xa8] sm:$0xf] }
 0x1f0   : > { %v3296_v32 = vrot.slane %v3295_v23, 4  ;;  %v3315_v31 = vrot.slane %v3313_v33, 4  ;;  %7417 = vmatprep.mubr.msk.bf16.mxu1 %vm1398_vm7, %v6782_v42  ;;  %v3306_v60 = vrot.slane %v3305_v8, 4  ;;  %v1243_v47 = vsel %vm8543_vm6, %v1205_v39, 0 }
 0x1f1   : > { %v3318_v5 = vrot.slane %v3316_v29, 5  ;;  %v3324_v12 = vrot.slane %v3322_v61, 5  ;;  %v3328_v1 = vrot.slane %v3326_v11, 4  ;;  %v3334_v17 = vrot.slane %v3332_v7, 5  ;;  %v1210_v29 = vld [vmem:[#allocation2 + $0xac] sm:$0xf] }
 0x1f2   : > { %v3301_v13 = vsel %vm8695_vm12, %v3296_v32, %v3300_v4  ;;  %v1244_v20 = vsel %vm8424_vm5, %v1206_v2, 0  ;;  %v3311_v26 = vsel %vm8695_vm12, %v3306_v60, %v3310_v38  ;;  %v3337_v48 = vshrl.u32 %v3057_v54, 16  ;;  %v3061_v4 = vld [vmem:[#allocation2 + $0xa0] sm:$0xf]  ;;  %v3062_v38 = vld [vmem:[#allocation2 + $0xa4] sm:$0x1] }
 0x1f3   : > { %v3319_v27 = vor.u32 %v3318_v5, %v3315_v31  ;;  %v6690_v28 = vcombine.low %v1243_v47, %v1244_v20  ;;  %v6783_v21 = vcombine.low %v3301_v13, %v3311_v26  ;;  %v3329_v58 = vor.u32 %v3328_v1, %v3324_v12  ;;  %v3063_v11 = vld [vmem:[#allocation2 + $0xa8] sm:$0xf] }
 0x1f4   : > { %v3340_v35 = vshll.u32 %v3057_v54, 16  ;;  %v3346_v37 = vshll.u32 %v3058_v41, 16  ;;  %v3339_v46 = vrot.slane %v3337_v48, 4  ;;  %v3350_v40 = vshrl.u32 %v3058_v41, 16 }
 0x1f5   : > { %v3320_v45 = vrot.slane %v3319_v27, 4  ;;  %7323 = vmatprep.mubr.msk.bf16.mxu0 %vm1398_vm7, %v6690_v28  ;;  %v3356_v50 = vshll.u32 %v3059_v22, 16  ;;  %7418 = vmatmul.mubr.msk.bf16.gmra.mrb[4].mxu1 %vm1398_vm7, %v6783_v21  ;;  %v3330_v52 = vrot.slane %v3329_v58, 4  ;;  %v1245_v3 = vsel %vm8543_vm6, %v1207_v30, 0  ;;  %v1211_v28 = vld [vmem:[#allocation2 + $0xb4] sm:$0xf] }
 0x1f6   : > { %v3342_v53 = vrot.slane %v3340_v35, 5  ;;  %v3348_v55 = vrot.slane %v3346_v37, 5  ;;  %v3352_v25 = vrot.slane %v3350_v40, 4  ;;  %v1246_v9 = vsel %vm8424_vm5, %v1208_v43, 0  ;;  %v1212_v35 = vld [vmem:[#allocation2 + $0xb8] sm:$0xf] }
 0x1f7   : > { %v3325_v24 = vsel %vm8695_vm12, %v3320_v45, %v3324_v12  ;;  %v3358_v6 = vrot.slane %v3356_v50, 5  ;;  %v3335_v44 = vsel %vm8695_vm12, %v3330_v52, %v3334_v17  ;;  %v6691_v15 = vcombine.low %v1245_v3, %v1246_v9  ;;  %v3064_v12 = vld [vmem:[#allocation2 + $0xac] sm:$0xf]  ;;  %v3065_v17 = vld [vmem:[#allocation2 + $0xb0] sm:$0x1] }
 0x1f8   : > { %v3343_v10 = vor.u32 %v3342_v53, %v3339_v46  ;;  %v3361_v23 = vshrl.u32 %v3060_v51, 16  ;;  %v6784_v33 = vcombine.low %v3325_v24, %v3335_v44  ;;  %v3353_v39 = vor.u32 %v3352_v25, %v3348_v55  ;;  %v3066_v40 = vld [vmem:[#allocation2 + $0xb4] sm:$0xf] }
 0x1f9   : > { %v3364_v42 = vshll.u32 %v3060_v51, 16  ;;  %v3370_v8 = vshll.u32 %v3061_v4, 16  ;;  %7324 = vmatmul.mubr.msk.bf16.gmra.mrb[56].mxu0 %vm1398_vm7, %v6691_v15  ;;  %v3374_v32 = vshrl.u32 %v3061_v4, 16  ;;  %v3380_v31 = vshll.u32 %v3062_v38, 16  ;;  %v1905_v15 = vld [vmem:[#allocation2 + $0x18] sm:$0xf] }
 0x1fa   : > { %v3344_v61 = vrot.slane %v3343_v10, 4  ;;  %v3363_v2 = vrot.slane %v3361_v23, 4  ;;  %7421 = vmatprep.mubr.msk.bf16.mxu1 %vm1398_vm7, %v6784_v33  ;;  %v3354_v7 = vrot.slane %v3353_v39, 4  ;;  %v1247_v5 = vsel %vm8543_vm6, %v1209_v34, 0 }
 0x1fb   : > { %v3366_v54 = vrot.slane %v3364_v42, 5  ;;  %v3372_v60 = vrot.slane %v3370_v8, 5  ;;  %v3376_v41 = vrot.slane %v3374_v32, 4  ;;  %v3382_v13 = vrot.slane %v3380_v31, 5  ;;  %v1906_v42 = vld [vmem:[#allocation2 + $0x1c] sm:$0xf] }
 0x1fc   : > { %v3349_v47 = vsel %vm8695_vm12, %v3344_v61, %v3348_v55  ;;  %v1248_v1 = vsel %vm8424_vm5, %v1210_v29, 0  ;;  %v3359_v20 = vsel %vm8695_vm12, %v3354_v7, %v3358_v6  ;;  %v3385_v27 = vshrl.u32 %v3063_v11, 16  ;;  %v3067_v55 = vld [vmem:[#allocation2 + $0xb8] sm:$0xf]  ;;  %v3068_v6 = vld [vmem:[#allocation2 + $0xbc] sm:$0x1] }
 0x1fd   : > { %v3367_v22 = vor.u32 %v3366_v54, %v3363_v2  ;;  %v6692_v26 = vcombine.low %v1247_v5, %v1248_v1  ;;  %v6785_v48 = vcombine.low %v3349_v47, %v3359_v20  ;;  %v3377_v30 = vor.u32 %v3376_v41, %v3372_v60  ;;  %v3069_v32 = vld [vmem:[#allocation2 + $0xc0] sm:$0xf] }
 0x1fe   : > { %v3388_v21 = vshll.u32 %v3063_v11, 16  ;;  %v3394_v58 = vshll.u32 %v3064_v12, 16  ;;  %v3387_v43 = vrot.slane %v3385_v27, 4  ;;  %v3398_v45 = vshrl.u32 %v3064_v12, 16  ;;  %v1907_v27 = vld [vmem:[#allocation2 + $0x24] sm:$0xf] }
 0x1ff   : > { %v3368_v37 = vrot.slane %v3367_v22, 4  ;;  %7327 = vmatprep.mubr.msk.bf16.mxu0 %vm1398_vm7, %v6692_v26  ;;  %v3404_v46 = vshll.u32 %v3065_v17, 16  ;;  %7422 = vmatmul.mubr.msk.bf16.gmra.mrb[8].mxu1 %vm1398_vm7, %v6785_v48  ;;  %v3378_v50 = vrot.slane %v3377_v30, 4  ;;  %v1249_v53 = vsel %vm8543_vm6, %v1211_v28, 0  ;;  %v7939_v22 = vld [vmem:[#allocation6 + $0x18] sm:$0xf] }
 0x200   : > { %v3390_v51 = vrot.slane %v3388_v21, 5  ;;  %v3396_v52 = vrot.slane %v3394_v58, 5  ;;  %v3400_v4 = vrot.slane %v3398_v45, 4  ;;  %v1250_v25 = vsel %vm8424_vm5, %v1212_v35, 0  ;;  %v1908_v58 = vld [vmem:[#allocation2 + $0x28] sm:$0xf] }
 0x201   : > { %v3373_v3 = vsel %vm8695_vm12, %v3368_v37, %v3372_v60  ;;  %v3406_v24 = vrot.slane %v3404_v46, 5  ;;  %v3383_v9 = vsel %vm8695_vm12, %v3378_v50, %v3382_v13  ;;  %v6693_v44 = vcombine.low %v1249_v53, %v1250_v25  ;;  %v3070_v60 = vld [vmem:[#allocation2 + $0xc4] sm:$0xf]  ;;  %v3071_v13 = vld [vmem:[#allocation2 + $0xc8] sm:$0x1] }
 0x202   : > { %v3391_v38 = vor.u32 %v3390_v51, %v3387_v43  ;;  %v3409_v10 = vshrl.u32 %v3066_v40, 16  ;;  %v6786_v23 = vcombine.low %v3373_v3, %v3383_v9  ;;  %v3401_v34 = vor.u32 %v3400_v4, %v3396_v52  ;;  %v3750_v46 = vld [vmem:[#allocation2 + $0x18] sm:$0xf]  ;;  %v3751_v25 = vld [vmem:[#allocation2 + $0x1c] sm:$0xf] }
 0x203   : > { %v3412_v33 = vshll.u32 %v3066_v40, 16  ;;  %v3418_v39 = vshll.u32 %v3067_v55, 16  ;;  %7328 = vmatmul.mubr.msk.bf16.gmra.mrb[60].mxu0 %vm1398_vm7, %v6693_v44  ;;  %v3422_v61 = vshrl.u32 %v3067_v55, 16  ;;  %v3428_v2 = vshll.u32 %v3068_v6, 16  ;;  %v7940_v40 = vld [vmem:[#allocation6 + $0x4] sm:$0xf] }
 0x204   : > { %v3392_v8 = vrot.slane %v3391_v38, 4  ;;  %v3411_v29 = vrot.slane %v3409_v10, 4  ;;  %7425 = vmatprep.mubr.msk.bf16.mxu1 %vm1398_vm7, %v6786_v23  ;;  %v3402_v31 = vrot.slane %v3401_v34, 4  ;;  %v1937_v54 = vsel %vm8543_vm6, %v1905_v15, 0  ;;  %v3752_v44 = vld [vmem:[#allocation2 + $0x20] sm:$0x1] }
 0x205   : > { %v3414_v11 = vrot.slane %v3412_v33, 5  ;;  %v3420_v7 = vrot.slane %v3418_v39, 5  ;;  %v3424_v12 = vrot.slane %v3422_v61, 4  ;;  %v3430_v47 = vrot.slane %v3428_v2, 5  ;;  %v1909_v15 = vld [vmem:[#allocation2 + $0x30] sm:$0xf] }
 0x206   : > { %v3397_v5 = vsel %vm8695_vm12, %v3392_v8, %v3396_v52  ;;  %v1938_v41 = vsel %vm8424_vm5, %v1906_v42, 0  ;;  %v3407_v1 = vsel %vm8695_vm12, %v3402_v31, %v3406_v24  ;;  %v2100_v26 = vsel %vm1447_vm1, %v7939_v22, 0  ;;  %v1910_v42 = vld [vmem:[#allocation2 + $0x34] sm:$0xf] }
 0x207   : > { %v3415_v17 = vor.u32 %v3414_v11, %v3411_v29  ;;  %v6710_v20 = vcombine.low %v1937_v54, %v1938_v41  ;;  %v6787_v28 = vcombine.low %v3397_v5, %v3407_v1  ;;  %v3425_v48 = vor.u32 %v3424_v12, %v3420_v7  ;;  %7332 = vmatpush3.bf16.msra.mxu0 %v2100_v26 }
 0x208   : > { %v3433_v30 = vshrl.u32 %v3069_v32, 16  ;;  %v3436_v21 = vshll.u32 %v3069_v32, 16  ;;  %v3442_v37 = vshll.u32 %v3070_v60, 16  ;;  %v3446_v43 = vshrl.u32 %v3070_v60, 16  ;;  %7864 = vmatprep.subr.msk.bf16.mxu0 %vm1447_vm1, %v7940_v40  ;;  %v3753_v32 = vld [vmem:[#allocation2 + $0x24] sm:$0xf] }
 0x209   : > { %v3416_v35 = vrot.slane %v3415_v17, 4  ;;  %7333 = vmatprep.mubr.msk.bf16.mxu0 %vm1398_vm7, %v6710_v20  ;;  %v3452_v45 = vshll.u32 %v3071_v13, 16  ;;  %7426 = vmatmul.mubr.msk.bf16.gmra.mrb[12].mxu1 %vm1398_vm7, %v6787_v28  ;;  %v3426_v50 = vrot.slane %v3425_v48, 4  ;;  %v1939_v53 = vsel %vm8543_vm6, %v1907_v27, 0  ;;  %v3754_v60 = vld [vmem:[#allocation2 + $0x28] sm:$0xf] }
 0x20a   : > { %v3435_v51 = vrot.slane %v3433_v30, 4  ;;  %v3438_v52 = vrot.slane %v3436_v21, 5  ;;  %v3444_v3 = vrot.slane %v3442_v37, 5  ;;  %v3448_v4 = vrot.slane %v3446_v43, 4  ;;  %v3755_v13 = vld [vmem:[#allocation2 + $0x2c] sm:$0x1] }
 0x20b   : > { %v3421_v55 = vsel %vm8695_vm12, %v3416_v35, %v3420_v7  ;;  %v3454_v24 = vrot.slane %v3452_v45, 5  ;;  %v3431_v6 = vsel %vm8695_vm12, %v3426_v50, %v3430_v47  ;;  %v1940_v38 = vsel %vm8424_vm5, %v1908_v58, 0  ;;  %v1911_v30 = vld [vmem:[#allocation2 + $0x3c] sm:$0xf]  ;;  %v1912_v43 = vld [vmem:[#allocation2 + $0x40] sm:$0xf] }
 0x20c   : > { %v3439_v9 = vor.u32 %v3438_v52, %v3435_v51  ;;  %v3799_v10 = vshrl.u32 %v3750_v46, 16  ;;  %v6788_v23 = vcombine.low %v3421_v55, %v3431_v6  ;;  %v3449_v34 = vor.u32 %v3448_v4, %v3444_v3  ;;  %v3756_v50 = vld [vmem:[#allocation2 + $0x30] sm:$0xf] }
 0x20d   : > { %v6711_v33 = vcombine.low %v1939_v53, %v1940_v38  ;;  %v3802_v39 = vshll.u32 %v3750_v46, 16  ;;  %v3808_v61 = vshll.u32 %v3751_v25, 16  ;;  %v3812_v2 = vshrl.u32 %v3751_v25, 16 }
 0x20e   : > { %v3440_v8 = vrot.slane %v3439_v9, 4  ;;  %v3801_v29 = vrot.slane %v3799_v10, 4  ;;  %7429 = vmatprep.mubr.msk.bf16.mxu1 %vm1398_vm7, %v6788_v23  ;;  %v3450_v31 = vrot.slane %v3449_v34, 4  ;;  %v3818_v7 = vshll.u32 %v3752_v44, 16  ;;  %v3758_v9 = vld [vmem:[#allocation2 + $0x38] sm:$0x1] }
 0x20f   : > { %7334 = vmatmul.mubr.msk.bf16.vlgmr.msra.gmra.mrb[32].mxu0 %vm1398_vm7, %v6711_v33  ;;  %v3804_v11 = vrot.slane %v3802_v39, 5  ;;  %v1941_v54 = vsel %vm8543_vm6, %v1909_v15, 0  ;;  %v3810_v12 = vrot.slane %v3808_v61, 5  ;;  %v3814_v47 = vrot.slane %v3812_v2, 4  ;;  %v1914_v23 = vld [vmem:[#allocation2 + $0x4c] sm:$0xf] }
 0x210   : > { %v3445_v5 = vsel %vm8695_vm12, %v3440_v8, %v3444_v3  ;;  %v1942_v41 = vsel %vm8424_vm5, %v1910_v42, 0  ;;  %7366 = vmatpush3.bf16.msra.mxu0 %v8439_v0  ;;  %v3455_v1 = vsel %vm8695_vm12, %v3450_v31, %v3454_v24  ;;  %v3820_v20 = vrot.slane %v3818_v7, 5  ;;  %v3757_v3 = vld [vmem:[#allocation2 + $0x34] sm:$0xf]  ;;  %v3759_v8 = vld [vmem:[#allocation2 + $0x3c] sm:$0xf] }
 0x211   : > { %v3805_v17 = vor.u32 %v3804_v11, %v3801_v29  ;;  %v6712_v22 = vcombine.low %v1941_v54, %v1942_v41  ;;  %v6789_v26 = vcombine.low %v3445_v5, %v3455_v1  ;;  %v3815_v27 = vor.u32 %v3814_v47, %v3810_v12  ;;  %v3760_v31 = vld [vmem:[#allocation2 + $0x40] sm:$0xf]  ;;  %v3761_v5 = vld [vmem:[#allocation2 + $0x44] sm:$0x1]  ;;  %v1915_v1 = vld [vmem:[#allocation2 + $0x54] sm:$0xf] }
 0x212   : > { %v3823_v28 = vshrl.u32 %v3753_v32, 16  ;;  %v3826_v48 = vshll.u32 %v3753_v32, 16  ;;  %v3832_v58 = vshll.u32 %v3754_v60, 16  ;;  %v3836_v35 = vshrl.u32 %v3754_v60, 16 }
 0x213   : > { %v3806_v21 = vrot.slane %v3805_v17, 4  ;;  %7337 = vmatprep.mubr.msk.bf16.mxu0 %vm1398_vm7, %v6712_v22  ;;  %v3842_v37 = vshll.u32 %v3755_v13, 16  ;;  %7430 = vmatmul.mubr.msk.bf16.gmra.mrb[16].mxu1 %vm1398_vm7, %v6789_v26  ;;  %v3816_v0 = vrot.slane %v3815_v27, 4  ;;  %v4821_v40 = vsel %vm1447_vm1, %v8879_v63, 0  ;;  %v1913_v63 = vld [vmem:[#allocation2 + $0x48] sm:$0xf] }
 0x214   : > { %v3825_v45 = vrot.slane %v3823_v28, 4  ;;  %v3828_v46 = vrot.slane %v3826_v48, 5  ;;  %v3834_v52 = vrot.slane %v3832_v58, 5  ;;  %v3838_v53 = vrot.slane %v3836_v35, 4  ;;  %v1916_v27 = vld [vmem:[#allocation2 + $0x58] sm:$0xf] }
 0x215   : > { %v3811_v51 = vsel %vm8695_vm12, %v3806_v21, %v3810_v12  ;;  %v3844_v55 = vrot.slane %v3842_v37, 5  ;;  %v3821_v4 = vsel %vm8695_vm12, %v3816_v0, %v3820_v20  ;;  %v1943_v25 = vsel %vm8543_vm6, %v1911_v30, 0  ;;  %v3762_v28 = vld [vmem:[#allocation2 + $0x48] sm:$0xf]  ;;  %v9048_v35 = vld [vmem:[#allocation6 + $0x14] sm:$0xf] }
 0x216   : > { %v3829_v24 = vor.u32 %v3828_v46, %v3825_v45  ;;  %v1944_v6 = vsel %vm8424_vm5, %v1912_v43, 0  ;;  %v6806_v38 = vcombine.low %v3811_v51, %v3821_v4  ;;  %v3839_v44 = vor.u32 %v3838_v53, %v3834_v52  ;;  %v3763_v46 = vld [vmem:[#allocation2 + $0x4c] sm:$0xf] }
 0x217   : > { %v6713_v10 = vcombine.low %v1943_v25, %v1944_v6  ;;  %v3847_v15 = vshrl.u32 %v3756_v50, 16  ;;  %v3850_v33 = vshll.u32 %v3756_v50, 16  ;;  %v3856_v39 = vshll.u32 %v3757_v3, 16  ;;  %v1917_v6 = vld [vmem:[#allocation2 + $0x60] sm:$0xf] }
 0x218   : > { %v3830_v34 = vrot.slane %v3829_v24, 4  ;;  %v3860_v42 = vshrl.u32 %v3757_v3, 16  ;;  %7435 = vmatprep.mubr.msk.bf16.mxu1 %vm1398_vm7, %v6806_v38  ;;  %v3840_v29 = vrot.slane %v3839_v44, 4  ;;  %v3866_v2 = vshll.u32 %v3758_v9, 16  ;;  %v1918_v44 = vld [vmem:[#allocation2 + $0x64] sm:$0xf] }
 0x219   : > { %7338 = vmatmul.mubr.msk.bf16.gmra.mrb[36].mxu0 %vm1398_vm7, %v6713_v10  ;;  %v3849_v61 = vrot.slane %v3847_v15, 4  ;;  %v1945_v32 = vsel %vm8543_vm6, %v1913_v63, 0  ;;  %v3852_v7 = vrot.slane %v3850_v33, 5  ;;  %v3858_v54 = vrot.slane %v3856_v39, 5  ;;  %v3765_v33 = vld [vmem:[#allocation2 + $0x54] sm:$0xf] }
 0x21a   : > { %v3835_v11 = vsel %vm8695_vm12, %v3830_v34, %v3834_v52  ;;  %v3862_v60 = vrot.slane %v3860_v42, 4  ;;  %v3845_v12 = vsel %vm8695_vm12, %v3840_v29, %v3844_v55  ;;  %v3868_v47 = vrot.slane %v3866_v2, 5  ;;  %v3764_v55 = vld [vmem:[#allocation2 + $0x50] sm:$0x1] }
 0x21b   : > { %v1946_v41 = vsel %vm8424_vm5, %v1914_v23, 0  ;;  %v3871_v13 = vshrl.u32 %v3759_v8, 16  ;;  %v6807_v17 = vcombine.low %v3835_v11, %v3845_v12  ;;  %v3853_v20 = vor.u32 %v3852_v7, %v3849_v61  ;;  %v3766_v11 = vld [vmem:[#allocation2 + $0x58] sm:$0xf] }
 0x21c   : > { %v3863_v22 = vor.u32 %v3862_v60, %v3858_v54  ;;  %v6714_v26 = vcombine.low %v1945_v32, %v1946_v41  ;;  %v3874_v30 = vshll.u32 %v3759_v8, 16  ;;  %v3880_v21 = vshll.u32 %v3760_v31, 16 }
 0x21d   : > { %v3873_v48 = vrot.slane %v3871_v13, 4  ;;  %v3884_v58 = vshrl.u32 %v3760_v31, 16  ;;  %7436 = vmatmul.mubr.msk.bf16.vlgmr.msra.gmra.mrb[20].mxu1 %vm1398_vm7, %v6807_v17  ;;  %v3854_v37 = vrot.slane %v3853_v20, 4  ;;  %v3890_v0 = vshll.u32 %v3761_v5, 16  ;;  %v3767_v5 = vld [vmem:[#allocation2 + $0x5c] sm:$0x1] }
 0x21e   : > { %v3864_v43 = vrot.slane %v3863_v22, 4  ;;  %7341 = vmatprep.mubr.msk.bf16.mxu0 %vm1398_vm7, %v6714_v26  ;;  %v1947_v45 = vsel %vm8543_vm6, %v1915_v1, 0  ;;  %7468 = vmatpush3.bf16.msra.mxu1 %v4821_v40  ;;  %v3876_v50 = vrot.slane %v3874_v30, 5  ;;  %v3882_v51 = vrot.slane %v3880_v21, 5  ;;  %v1920_v20 = vld [vmem:[#allocation2 + $0x70] sm:$0xf] }
 0x21f   : > { %v3886_v52 = vrot.slane %v3884_v58, 4  ;;  %v1948_v53 = vsel %vm8424_vm5, %v1916_v27, 0  ;;  %v3859_v3 = vsel %vm8695_vm12, %v3854_v37, %v3858_v54  ;;  %v3892_v24 = vrot.slane %v3890_v0, 5  ;;  %7869 = vmatprep.subr.msk.bf16.mxu1 %vm1447_vm1, %v9048_v35 }
 0x220   : > { %v3869_v4 = vsel %vm8695_vm12, %v3864_v43, %v3868_v47  ;;  %v6715_v25 = vcombine.low %v1947_v45, %v1948_v53  ;;  %v3877_v9 = vor.u32 %v3876_v50, %v3873_v48  ;;  %v3895_v38 = vshrl.u32 %v3762_v28, 16  ;;  %v1919_v47 = vld [vmem:[#allocation2 + $0x6c] sm:$0xf]  ;;  %v3768_v48 = vld [vmem:[#allocation2 + $0x60] sm:$0xf] }
 0x221   : > { %v6808_v40 = vcombine.low %v3859_v3, %v3869_v4  ;;  %v3887_v63 = vor.u32 %v3886_v52, %v3882_v51  ;;  %v3898_v10 = vshll.u32 %v3762_v28, 16  ;;  %v3904_v15 = vshll.u32 %v3763_v46, 16  ;;  %v3769_v43 = vld [vmem:[#allocation2 + $0x64] sm:$0xf]  ;;  %v1921_v4 = vld [vmem:[#allocation2 + $0x78] sm:$0xf] }
 0x222   : > { %7342 = vmatmul.mubr.msk.bf16.gmra.mrb[40].mxu0 %vm1398_vm7, %v6715_v25  ;;  %v3908_v23 = vshrl.u32 %v3763_v46, 16  ;;  %v3914_v34 = vshll.u32 %v3764_v55, 16  ;;  %v3878_v39 = vrot.slane %v3877_v9, 4  ;;  %v3897_v8 = vrot.slane %v3895_v38, 4  ;;  %v1922_v9 = vld [vmem:[#allocation2 + $0x7c] sm:$0xf] }
 0x223   : > { %7439 = vmatprep.mubr.msk.bf16.mxu1 %vm1398_vm7, %v6808_v40  ;;  %v3888_v42 = vrot.slane %v3887_v63, 4  ;;  %v1949_v29 = vsel %vm8543_vm6, %v1917_v6, 0  ;;  %v3900_v61 = vrot.slane %v3898_v10, 5  ;;  %v3906_v2 = vrot.slane %v3904_v15, 5  ;;  %v3771_v15 = vld [vmem:[#allocation2 + $0x6c] sm:$0xf] }
 0x224   : > { %v3910_v32 = vrot.slane %v3908_v23, 4  ;;  %v3916_v31 = vrot.slane %v3914_v34, 5  ;;  %v3883_v7 = vsel %vm8695_vm12, %v3878_v39, %v3882_v51  ;;  %v1950_v60 = vsel %vm8424_vm5, %v1918_v44, 0  ;;  %v3770_v51 = vld [vmem:[#allocation2 + $0x68] sm:$0x1] }
 0x225   : > { %v3893_v54 = vsel %vm8695_vm12, %v3888_v42, %v3892_v24  ;;  %v3919_v12 = vshrl.u32 %v3765_v33, 16  ;;  %v3901_v13 = vor.u32 %v3900_v61, %v3897_v8  ;;  %v6716_v17 = vcombine.low %v1949_v29, %v1950_v60  ;;  %v1923_v60 = vld [vmem:[#allocation2 + $0x84] sm:$0xf] }
 0x226   : > { %v6809_v41 = vcombine.low %v3883_v7, %v3893_v54  ;;  %v3911_v1 = vor.u32 %v3910_v32, %v3906_v2  ;;  %v3922_v26 = vshll.u32 %v3765_v33, 16  ;;  %v3928_v27 = vshll.u32 %v3766_v11, 16  ;;  %v3773_v7 = vld [vmem:[#allocation2 + $0x74] sm:$0x1] }
 0x227   : > { %v3921_v22 = vrot.slane %v3919_v12, 4  ;;  %v3932_v28 = vshrl.u32 %v3766_v11, 16  ;;  %v3902_v30 = vrot.slane %v3901_v13, 4  ;;  %7345 = vmatprep.mubr.msk.bf16.mxu0 %vm1398_vm7, %v6716_v17  ;;  %v3938_v58 = vshll.u32 %v3767_v5, 16  ;;  %v1924_v13 = vld [vmem:[#allocation2 + $0x88] sm:$0xf] }
 0x228   : > { %7440 = vmatmul.mubr.msk.bf16.gmra.mrb[24].mxu1 %vm1398_vm7, %v6809_v41  ;;  %v3912_v21 = vrot.slane %v3911_v1, 4  ;;  %v1951_v37 = vsel %vm8543_vm6, %v1919_v47, 0  ;;  %v3924_v0 = vrot.slane %v3922_v26, 5  ;;  %v3930_v45 = vrot.slane %v3928_v27, 5  ;;  %v3774_v26 = vld [vmem:[#allocation2 + $0x78] sm:$0xf] }
 0x229   : > { %v3934_v46 = vrot.slane %v3932_v28, 4  ;;  %v1952_v50 = vsel %vm8424_vm5, %v1920_v20, 0  ;;  %v3907_v52 = vsel %vm8695_vm12, %v3902_v30, %v3906_v2  ;;  %v3940_v55 = vrot.slane %v3938_v58, 5  ;;  %v3772_v2 = vld [vmem:[#allocation2 + $0x70] sm:$0xf] }
 0x22a   : > { %v3917_v53 = vsel %vm8695_vm12, %v3912_v21, %v3916_v31  ;;  %v6717_v3 = vcombine.low %v1951_v37, %v1952_v50  ;;  %v3925_v25 = vor.u32 %v3924_v0, %v3921_v22  ;;  %v3943_v40 = vshrl.u32 %v3768_v48, 16  ;;  %v3775_v21 = vld [vmem:[#allocation2 + $0x7c] sm:$0xf] }
 0x22b   : > { %v6810_v24 = vcombine.low %v3907_v52, %v3917_v53  ;;  %v3935_v6 = vor.u32 %v3934_v46, %v3930_v45  ;;  %v3946_v63 = vshll.u32 %v3768_v48, 16  ;;  %v3952_v38 = vshll.u32 %v3769_v43, 16  ;;  %v1925_v53 = vld [vmem:[#allocation2 + $0x90] sm:$0xf] }
 0x22c   : > { %7346 = vmatmul.mubr.msk.bf16.gmra.mrb[44].mxu0 %vm1398_vm7, %v6717_v3  ;;  %v3956_v44 = vshrl.u32 %v3769_v43, 16  ;;  %v3962_v10 = vshll.u32 %v3770_v51, 16  ;;  %v3926_v23 = vrot.slane %v3925_v25, 4  ;;  %v3945_v33 = vrot.slane %v3943_v40, 4  ;;  %v1926_v25 = vld [vmem:[#allocation2 + $0x94] sm:$0xf] }
 0x22d   : > { %7443 = vmatprep.mubr.msk.bf16.mxu1 %vm1398_vm7, %v6810_v24  ;;  %v3936_v34 = vrot.slane %v3935_v6, 4  ;;  %v1953_v39 = vsel %vm8543_vm6, %v1921_v4, 0  ;;  %v3948_v42 = vrot.slane %v3946_v63, 5  ;;  %v3954_v8 = vrot.slane %v3952_v38, 5  ;;  %v3777_v38 = vld [vmem:[#allocation2 + $0x84] sm:$0xf] }
 0x22e   : > { %v3958_v29 = vrot.slane %v3956_v44, 4  ;;  %v3964_v61 = vrot.slane %v3962_v10, 5  ;;  %v3931_v32 = vsel %vm8695_vm12, %v3926_v23, %v3930_v45  ;;  %v1954_v11 = vsel %vm8424_vm5, %v1922_v9, 0  ;;  %v3776_v45 = vld [vmem:[#allocation2 + $0x80] sm:$0x1] }
 0x22f   : > { %v3941_v31 = vsel %vm8695_vm12, %v3936_v34, %v3940_v55  ;;  %v3967_v54 = vshrl.u32 %v3771_v15, 16  ;;  %v3949_v12 = vor.u32 %v3948_v42, %v3945_v33  ;;  %v6718_v41 = vcombine.low %v1953_v39, %v1954_v11  ;;  %v1927_v11 = vld [vmem:[#allocation2 + $0x9c] sm:$0xf] }
 0x230   : > { %v6811_v5 = vcombine.low %v3931_v32, %v3941_v31  ;;  %v3959_v47 = vor.u32 %v3958_v29, %v3954_v8  ;;  %v3970_v17 = vshll.u32 %v3771_v15, 16  ;;  %v3976_v20 = vshll.u32 %v3772_v2, 16  ;;  %v3779_v32 = vld [vmem:[#allocation2 + $0x8c] sm:$0x1] }
 0x231   : > { %v3969_v1 = vrot.slane %v3967_v54, 4  ;;  %v3980_v22 = vshrl.u32 %v3772_v2, 16  ;;  %v3950_v27 = vrot.slane %v3949_v12, 4  ;;  %7349 = vmatprep.mubr.msk.bf16.mxu0 %vm1398_vm7, %v6718_v41  ;;  %v3986_v48 = vshll.u32 %v3773_v7, 16  ;;  %v1928_v12 = vld [vmem:[#allocation2 + $0xa0] sm:$0xf] }
 0x232   : > { %7444 = vmatmul.mubr.msk.bf16.gmra.mrb[28].mxu1 %vm1398_vm7, %v6811_v5  ;;  %v3960_v28 = vrot.slane %v3959_v47, 4  ;;  %v1955_v30 = vsel %vm8543_vm6, %v1923_v60, 0  ;;  %v3972_v58 = vrot.slane %v3970_v17, 5  ;;  %v3978_v37 = vrot.slane %v3976_v20, 5  ;;  %v3780_v17 = vld [vmem:[#allocation2 + $0x90] sm:$0xf] }
 0x233   : > { %v3982_v43 = vrot.slane %v3980_v22, 4  ;;  %v1956_v0 = vsel %vm8424_vm5, %v1924_v13, 0  ;;  %v3955_v46 = vsel %vm8695_vm12, %v3950_v27, %v3954_v8  ;;  %v3988_v51 = vrot.slane %v3986_v48, 5  ;;  %v3778_v8 = vld [vmem:[#allocation2 + $0x88] sm:$0xf] }
 0x234   : > { %v3965_v50 = vsel %vm8695_vm12, %v3960_v28, %v3964_v61  ;;  %v6719_v52 = vcombine.low %v1955_v30, %v1956_v0  ;;  %v3973_v3 = vor.u32 %v3972_v58, %v3969_v1  ;;  %v3991_v24 = vshrl.u32 %v3774_v26, 16  ;;  %v3781_v28 = vld [vmem:[#allocation2 + $0x94] sm:$0xf] }
 0x235   : > { %v6812_v55 = vcombine.low %v3955_v46, %v3965_v50  ;;  %v3983_v4 = vor.u32 %v3982_v43, %v3978_v37  ;;  %v3994_v6 = vshll.u32 %v3774_v26, 16  ;;  %v4000_v40 = vshll.u32 %v3775_v21, 16  ;;  %v1929_v50 = vld [vmem:[#allocation2 + $0xa8] sm:$0xf] }
 0x236   : > { %7350 = vmatmul.mubr.msk.bf16.gmra.mrb[48].mxu0 %vm1398_vm7, %v6719_v52  ;;  %v4004_v9 = vshrl.u32 %v3775_v21, 16  ;;  %v4010_v63 = vshll.u32 %v3776_v45, 16  ;;  %v3974_v44 = vrot.slane %v3973_v3, 4  ;;  %v3993_v15 = vrot.slane %v3991_v24, 4  ;;  %v1930_v3 = vld [vmem:[#allocation2 + $0xac] sm:$0xf] }
 0x237   : > { %7447 = vmatprep.mubr.msk.bf16.mxu1 %vm1398_vm7, %v6812_v55  ;;  %v3984_v10 = vrot.slane %v3983_v4, 4  ;;  %v1957_v23 = vsel %vm8543_vm6, %v1925_v53, 0  ;;  %v3996_v34 = vrot.slane %v3994_v6, 5  ;;  %v4002_v33 = vrot.slane %v4000_v40, 5  ;;  %v3783_v40 = vld [vmem:[#allocation2 + $0x9c] sm:$0xf] }
 0x238   : > { %v4006_v39 = vrot.slane %v4004_v9, 4  ;;  %v4012_v42 = vrot.slane %v4010_v63, 5  ;;  %v3979_v29 = vsel %vm8695_vm12, %v3974_v44, %v3978_v37  ;;  %v1958_v2 = vsel %vm8424_vm5, %v1926_v25, 0  ;;  %v3782_v37 = vld [vmem:[#allocation2 + $0x98] sm:$0x1] }
 0x239   : > { %v3989_v61 = vsel %vm8695_vm12, %v3984_v10, %v3988_v51  ;;  %v4015_v31 = vshrl.u32 %v3777_v38, 16  ;;  %v3997_v54 = vor.u32 %v3996_v34, %v3993_v15  ;;  %v6720_v5 = vcombine.low %v1957_v23, %v1958_v2  ;;  %v1931_v2 = vld [vmem:[#allocation2 + $0xb4] sm:$0xf] }
 0x23a   : > { %v6813_v7 = vcombine.low %v3979_v29, %v3989_v61  ;;  %v4007_v60 = vor.u32 %v4006_v39, %v4002_v33  ;;  %v4018_v41 = vshll.u32 %v3777_v38, 16  ;;  %v4024_v13 = vshll.u32 %v3778_v8, 16  ;;  %v3785_v29 = vld [vmem:[#allocation2 + $0xa4] sm:$0x1] }
 0x23b   : > { %v4017_v47 = vrot.slane %v4015_v31, 4  ;;  %v4028_v1 = vshrl.u32 %v3778_v8, 16  ;;  %v3998_v20 = vrot.slane %v3997_v54, 4  ;;  %7353 = vmatprep.mubr.msk.bf16.mxu0 %vm1398_vm7, %v6720_v5  ;;  %v4034_v26 = vshll.u32 %v3779_v32, 16  ;;  %v1932_v54 = vld [vmem:[#allocation2 + $0xb8] sm:$0xf] }
 0x23c   : > { %7448 = vmatmul.mubr.msk.bf16.gmra.mrb[0].mxu1 %vm1398_vm7, %v6813_v7  ;;  %v4008_v22 = vrot.slane %v4007_v60, 4  ;;  %v1959_v27 = vsel %vm8543_vm6, %v1927_v11, 0  ;;  %v4020_v48 = vrot.slane %v4018_v41, 5  ;;  %v4026_v30 = vrot.slane %v4024_v13, 5  ;;  %v3786_v41 = vld [vmem:[#allocation2 + $0xa8] sm:$0xf] }
 0x23d   : > { %v4030_v21 = vrot.slane %v4028_v1, 4  ;;  %v1960_v58 = vsel %vm8424_vm5, %v1928_v12, 0  ;;  %v4003_v43 = vsel %vm8695_vm12, %v3998_v20, %v4002_v33  ;;  %v4036_v45 = vrot.slane %v4034_v26, 5  ;;  %v3784_v33 = vld [vmem:[#allocation2 + $0xa0] sm:$0xf] }
 0x23e   : > { %v4013_v0 = vsel %vm8695_vm12, %v4008_v22, %v4012_v42  ;;  %v6721_v46 = vcombine.low %v1959_v27, %v1960_v58  ;;  %v4021_v52 = vor.u32 %v4020_v48, %v4017_v47  ;;  %v4039_v55 = vshrl.u32 %v3780_v17, 16  ;;  %v3787_v22 = vld [vmem:[#allocation2 + $0xac] sm:$0xf] }
 0x23f   : > { %v6814_v51 = vcombine.low %v4003_v43, %v4013_v0  ;;  %v4031_v53 = vor.u32 %v4030_v21, %v4026_v30  ;;  %v4042_v4 = vshll.u32 %v3780_v17, 16  ;;  %v4048_v24 = vshll.u32 %v3781_v28, 16  ;;  %v1933_v0 = vld [vmem:[#allocation2 + $0xc0] sm:$0xf] }
 0x240   : > { %7354 = vmatmul.mubr.msk.bf16.gmra.mrb[52].mxu0 %vm1398_vm7, %v6721_v46  ;;  %v4052_v25 = vshrl.u32 %v3781_v28, 16  ;;  %v4058_v6 = vshll.u32 %v3782_v37, 16  ;;  %v4022_v9 = vrot.slane %v4021_v52, 4  ;;  %v4041_v38 = vrot.slane %v4039_v55, 4  ;;  %v1934_v52 = vld [vmem:[#allocation2 + $0xc4] sm:$0xf] }
 0x241   : > { %7451 = vmatprep.mubr.msk.bf16.mxu1 %vm1398_vm7, %v6814_v51  ;;  %v4032_v63 = vrot.slane %v4031_v53, 4  ;;  %v1961_v44 = vsel %vm8543_vm6, %v1929_v50, 0  ;;  %v4044_v10 = vrot.slane %v4042_v4, 5  ;;  %v4050_v15 = vrot.slane %v4048_v24, 5  ;;  %v3789_v24 = vld [vmem:[#allocation2 + $0xb4] sm:$0xf] }
 0x242   : > { %v4054_v23 = vrot.slane %v4052_v25, 4  ;;  %v4060_v34 = vrot.slane %v4058_v6, 5  ;;  %v4027_v39 = vsel %vm8695_vm12, %v4022_v9, %v4026_v30  ;;  %v1962_v8 = vsel %vm8424_vm5, %v1930_v3, 0  ;;  %v3788_v30 = vld [vmem:[#allocation2 + $0xb0] sm:$0x1] }
 0x243   : > { %v4037_v42 = vsel %vm8695_vm12, %v4032_v63, %v4036_v45  ;;  %v4063_v61 = vshrl.u32 %v3783_v40, 16  ;;  %v4045_v31 = vor.u32 %v4044_v10, %v4041_v38  ;;  %v6722_v7 = vcombine.low %v1961_v44, %v1962_v8  ;;  %v1935_v8 = vld [vmem:[#allocation2 + $0xcc] sm:$0xf] }
 0x244   : > { %v6815_v32 = vcombine.low %v4027_v39, %v4037_v42  ;;  %v4055_v11 = vor.u32 %v4054_v23, %v4050_v15  ;;  %v4066_v5 = vshll.u32 %v3783_v40, 16  ;;  %v4072_v12 = vshll.u32 %v3784_v33, 16  ;;  %v3791_v39 = vld [vmem:[#allocation2 + $0xbc] sm:$0x1] }
 0x245   : > { %v4065_v60 = vrot.slane %v4063_v61, 4  ;;  %v4076_v47 = vshrl.u32 %v3784_v33, 16  ;;  %v4046_v13 = vrot.slane %v4045_v31, 4  ;;  %7357 = vmatprep.mubr.msk.bf16.mxu0 %vm1398_vm7, %v6722_v7  ;;  %v4082_v17 = vshll.u32 %v3785_v29, 16  ;;  %v1936_v31 = vld [vmem:[#allocation2 + $0xd0] sm:$0xf] }
 0x246   : > { %7452 = vmatmul.mubr.msk.bf16.gmra.mrb[4].mxu1 %vm1398_vm7, %v6815_v32  ;;  %v4056_v1 = vrot.slane %v4055_v11, 4  ;;  %v1963_v20 = vsel %vm8543_vm6, %v1931_v2, 0  ;;  %v4068_v26 = vrot.slane %v4066_v5, 5  ;;  %v4074_v27 = vrot.slane %v4072_v12, 5  ;;  %v3792_v5 = vld [vmem:[#allocation2 + $0xc0] sm:$0xf] }
 0x247   : > { %v4078_v28 = vrot.slane %v4076_v47, 4  ;;  %v1964_v48 = vsel %vm8424_vm5, %v1932_v54, 0  ;;  %v4051_v21 = vsel %vm8695_vm12, %v4046_v13, %v4050_v15  ;;  %v4084_v37 = vrot.slane %v4082_v17, 5  ;;  %v3790_v15 = vld [vmem:[#allocation2 + $0xb8] sm:$0xf] }
 0x248   : > { %v4061_v58 = vsel %vm8695_vm12, %v4056_v1, %v4060_v34  ;;  %v6723_v43 = vcombine.low %v1963_v20, %v1964_v48  ;;  %v4069_v46 = vor.u32 %v4068_v26, %v4065_v60  ;;  %v4087_v51 = vshrl.u32 %v3786_v41, 16  ;;  %v3793_v1 = vld [vmem:[#allocation2 + $0xc4] sm:$0xf] }
 0x249   : > { %v6816_v45 = vcombine.low %v4051_v21, %v4061_v58  ;;  %v4079_v50 = vor.u32 %v4078_v28, %v4074_v27  ;;  %v4090_v53 = vshll.u32 %v3786_v41, 16  ;;  %v4096_v55 = vshll.u32 %v3787_v22, 16  ;;  %v2295_v58 = vld [vmem:[#allocation2] sm:$0xf] }
 0x24a   : > { %7358 = vmatmul.mubr.msk.bf16.gmra.mrb[56].mxu0 %vm1398_vm7, %v6723_v43  ;;  %v4100_v3 = vshrl.u32 %v3787_v22, 16  ;;  %v4106_v4 = vshll.u32 %v3788_v30, 16  ;;  %v4070_v25 = vrot.slane %v4069_v46, 4  ;;  %v4089_v40 = vrot.slane %v4087_v51, 4  ;;  %v9163_v51 = vld [vmem:[#allocation2 + $0x4] sm:$0xf] }
 0x24b   : > { %7455 = vmatprep.mubr.msk.bf16.mxu1 %vm1398_vm7, %v6816_v45  ;;  %v4080_v6 = vrot.slane %v4079_v50, 4  ;;  %v1965_v9 = vsel %vm8543_vm6, %v1933_v0, 0  ;;  %v4092_v63 = vrot.slane %v4090_v53, 5  ;;  %v4098_v38 = vrot.slane %v4096_v55, 5 }
 0x24c   : > { %v4102_v44 = vrot.slane %v4100_v3, 4  ;;  %v4108_v10 = vrot.slane %v4106_v4, 5  ;;  %v4075_v23 = vsel %vm8695_vm12, %v4070_v25, %v4074_v27  ;;  %v1966_v33 = vsel %vm8424_vm5, %v1934_v52, 0  ;;  %v3794_v27 = vld [vmem:[#allocation2 + $0xc8] sm:$0x1] }
 0x24d   : > { %v4085_v34 = vsel %vm8695_vm12, %v4080_v6, %v4084_v37  ;;  %v4111_v42 = vshrl.u32 %v3789_v24, 16  ;;  %v4093_v61 = vor.u32 %v4092_v63, %v4089_v40  ;;  %v6724_v32 = vcombine.low %v1965_v9, %v1966_v33  ;;  %v9166_v3 = vld [vmem:[#allocation2 + $0x8] sm:$0x1]  ;;  %v3795_v9 = vld [vmem:[#allocation2 + $0xcc] sm:$0xf] }
 0x24e   : > { %v6817_v29 = vcombine.low %v4075_v23, %v4085_v34  ;;  %v4103_v2 = vor.u32 %v4102_v44, %v4098_v38  ;;  %v4114_v7 = vshll.u32 %v3789_v24, 16  ;;  %v4120_v54 = vshll.u32 %v3790_v15, 16 }
 0x24f   : > { %v4113_v11 = vrot.slane %v4111_v42, 4  ;;  %v4124_v60 = vshrl.u32 %v3790_v15, 16  ;;  %v4094_v12 = vrot.slane %v4093_v61, 4  ;;  %7361 = vmatprep.mubr.msk.bf16.mxu0 %vm1398_vm7, %v6724_v32  ;;  %v4130_v41 = vshll.u32 %v3791_v39, 16 }
 0x250   : > { %7456 = vmatmul.mubr.msk.bf16.gmra.mrb[8].mxu1 %vm1398_vm7, %v6817_v29  ;;  %v4104_v47 = vrot.slane %v4103_v2, 4  ;;  %v1967_v13 = vsel %vm8543_vm6, %v1935_v8, 0  ;;  %v4116_v17 = vrot.slane %v4114_v7, 5  ;;  %v4122_v20 = vrot.slane %v4120_v54, 5  ;;  %v3796_v29 = vld [vmem:[#allocation2 + $0xd0] sm:$0xf] }
 0x251   : > { %v4126_v22 = vrot.slane %v4124_v60, 4  ;;  %v1968_v26 = vsel %vm8424_vm5, %v1936_v31, 0  ;;  %v4099_v28 = vsel %vm8695_vm12, %v4094_v12, %v4098_v38  ;;  %v4132_v30 = vrot.slane %v4130_v41, 5  ;;  %v2298_v7 = vld [vmem:[#allocation2 + $0xc] sm:$0xf] }
 0x252   : > { %v4109_v48 = vsel %vm8695_vm12, %v4104_v47, %v4108_v10  ;;  %v6725_v21 = vcombine.low %v1967_v13, %v1968_v26  ;;  %v4117_v36 = vor.u32 %v4116_v17, %v4113_v11  ;;  %v4135_v0 = vshrl.u32 %v3792_v5, 16  ;;  %v3797_v12 = vld [vmem:[#allocation2 + $0xd4] sm:$0x1] }
 0x253   : > { %v6818_v37 = vcombine.low %v4099_v28, %v4109_v48  ;;  %v4127_v43 = vor.u32 %v4126_v22, %v4122_v20  ;;  %v4138_v45 = vshll.u32 %v3792_v5, 16  ;;  %v4144_v46 = vshll.u32 %v3793_v1, 16  ;;  %v9180_v28 = vld [vmem:[#allocation2 + $0x10] sm:$0xf] }
 0x254   : > { %7362 = vmatmul.mubr.msk.bf16.gmra.mrb[60].mxu0 %vm1398_vm7, %v6725_v21  ;;  %v4148_v56 = vshrl.u32 %v3793_v1, 16  ;;  %v4154_v50 = vshll.u32 %v3794_v27, 16  ;;  %v4118_v52 = vrot.slane %v4117_v36, 4  ;;  %v4137_v55 = vrot.slane %v4135_v0, 4 }
 0x255   : > { %7459 = vmatprep.mubr.msk.bf16.mxu1 %vm1398_vm7, %v6818_v37  ;;  %v4128_v53 = vrot.slane %v4127_v43, 4  ;;  %v2347_v4 = vshrl.u32 %v2295_v58, 16  ;;  %v4140_v24 = vrot.slane %v4138_v45, 5  ;;  %v4146_v25 = vrot.slane %v4144_v46, 5  ;;  %v2300_v45 = vld [vmem:[#allocation2 + $0x14] sm:$0x1] }
 0x256   : > { %v4150_v6 = vrot.slane %v4148_v56, 4  ;;  %v4156_v40 = vrot.slane %v4154_v50, 5  ;;  %v4123_v63 = vsel %vm8695_vm12, %v4118_v52, %v4122_v20  ;;  %v2350_v10 = vshll.u32 %v2295_v58, 16  ;;  %v2301_v52 = vld [vmem:[#allocation2 + $0x18] sm:$0xf] }
 0x257   : > { %v4133_v38 = vsel %vm8695_vm12, %v4128_v53, %v4132_v30  ;;  %v2349_v44 = vrot.slane %v2347_v4, 4  ;;  %v4141_v23 = vor.u32 %v4140_v24, %v4137_v55  ;;  %v2356_v33 = vshll.u32 %v9163_v51, 16 }
 0x258   : > { %v6819_v15 = vcombine.low %v4123_v63, %v4133_v38  ;;  %v4151_v34 = vor.u32 %v4150_v6, %v4146_v25  ;;  %v2352_v39 = vrot.slane %v2350_v10, 5  ;;  %v2360_v42 = vshrl.u32 %v9163_v51, 16 }
 0x259   : > { %v2366_v8 = vshll.u32 %v9166_v3, 16  ;;  %v4159_v61 = vshrl.u32 %v3795_v9, 16  ;;  %v4142_v2 = vrot.slane %v4141_v23, 4  ;;  %v2358_v31 = vrot.slane %v2356_v33, 5 }
 0x25a   : > { %7460 = vmatmul.mubr.msk.bf16.gmra.mrb[12].mxu1 %vm1398_vm7, %v6819_v15  ;;  %v4152_v32 = vrot.slane %v4151_v34, 4  ;;  %v4162_v11 = vshll.u32 %v3795_v9, 16  ;;  %v2353_v54 = vor.u32 %v2352_v39, %v2349_v44  ;;  %v2362_v60 = vrot.slane %v2360_v42, 4  ;;  %v9199_v15 = vld [vmem:[#allocation2 + $0x20] sm:$0x1] }
 0x25b   : > { %v2368_v5 = vrot.slane %v2366_v8, 5  ;;  %v4161_v47 = vrot.slane %v4159_v61, 4  ;;  %v4147_v41 = vsel %vm8695_vm12, %v4142_v2, %v4146_v25  ;;  %v4168_v17 = vshll.u32 %v3796_v29, 16  ;;  %v9195_v25 = vld [vmem:[#allocation2 + $0x1c] sm:$0xf] }
 0x25c   : > { %v4157_v13 = vsel %vm8695_vm12, %v4152_v32, %v4156_v40  ;;  %v4164_v1 = vrot.slane %v4162_v11, 5  ;;  %v2354_v22 = vrot.slane %v2353_v54, 4  ;;  %v2363_v26 = vor.u32 %v2362_v60, %v2358_v31  ;;  %v4476_v8 = vld [vmem:[#allocation2] sm:$0xe] }
 0x25d   : > { %v6820_v20 = vcombine.low %v4147_v41, %v4157_v13  ;;  %v4172_v27 = vshrl.u32 %v3796_v29, 16  ;;  %vm9184_vm2 = vcmp.ne.s16.totalorder %v4503_v59, 0  ;;  %v4170_v21 = vrot.slane %v4168_v17, 5 }
 0x25e   : > { %v4165_v30 = vor.u32 %v4164_v1, %v4161_v47  ;;  %v4178_v58 = vshll.u32 %v3797_v12, 16  ;;  %v2371_v37 = vshrl.u32 %v2298_v7, 16  ;;  %v2359_v36 = vsel %vm8695_vm12, %v2354_v22, %v2358_v31 }
 0x25f   : > { %7463 = vmatprep.mubr.msk.bf16.mxu1 %vm1398_vm7, %v6820_v20  ;;  %v2364_v43 = vrot.slane %v2363_v26, 4  ;;  %v4174_v0 = vrot.slane %v4172_v27, 4  ;;  %v2374_v46 = vshll.u32 %v2298_v7, 16  ;;  %v2380_v59 = vshll.u32 %v9180_v28, 16  ;;  %v4477_v20 = vld [vmem:[#allocation2 + $0xc] sm:$0xe] }
 0x260   : > { %v4166_v56 = vrot.slane %v4165_v30, 4  ;;  %v4180_v50 = vrot.slane %v4178_v58, 5  ;;  %v2373_v57 = vrot.slane %v2371_v37, 4  ;;  %v2384_v24 = vshrl.u32 %v9180_v28, 16 }
 0x261   : > { %v2369_v53 = vsel %vm8695_vm12, %v2364_v43, %v2368_v5  ;;  %v4175_v55 = vor.u32 %v4174_v0, %v4170_v21  ;;  %v2376_v4 = vrot.slane %v2374_v46, 5  ;;  %v2382_v9 = vrot.slane %v2380_v59, 5  ;;  %v2304_v43 = vld [vmem:[#allocation2 + $0x24] sm:$0xf]  ;;  %v9236_v59 = vld [vmem:[#allocation2 + $0x28] sm:$0xf] }
 0x262   : > { %v6742_v6 = vcombine.low %v2359_v36, %v2369_v53  ;;  %v4171_v40 = vsel %vm8695_vm12, %v4166_v56, %v4170_v21  ;;  %v2390_v63 = vshll.u32 %v2300_v45, 16  ;;  %v2386_v10 = vrot.slane %v2384_v24, 4  ;;  %v9837_v56 = vld [vmem:[%s10100_s5] ss:$0 sm:$0xff] }
 0x263   : > { %v4176_v38 = vrot.slane %v4175_v55, 4  ;;  %v2377_v44 = vor.u32 %v2376_v4, %v2373_v57  ;;  %v2395_v23 = vshrl.u32 %v2301_v52, 16  ;;  %v2398_v33 = vshll.u32 %v2301_v52, 16  ;;  %v4478_v4 = vld [vmem:[#allocation2 + $0x18] sm:$0xe] }
 0x264   : > { %7367 = vmatprep.mubr.msk.bf16.mxu0 %vm1398_vm7, %v6742_v6  ;;  %v2392_v34 = vrot.slane %v2390_v63, 5  ;;  %v2404_v39 = vshll.u32 %v9195_v25, 16  ;;  %v2408_v42 = vshrl.u32 %v9195_v25, 16  ;;  %v2387_v2 = vor.u32 %v2386_v10, %v2382_v9 }
 0x265   : > { %v4181_v29 = vsel %vm8695_vm12, %v4176_v38, %v4180_v50  ;;  %v2378_v61 = vrot.slane %v2377_v44, 4  ;;  %v2397_v32 = vrot.slane %v2395_v23, 4  ;;  %v2400_v11 = vrot.slane %v2398_v33, 5 }
 0x266   : > { %v6821_v31 = vcombine.low %v4171_v40, %v4181_v29  ;;  %v2406_v7 = vrot.slane %v2404_v39, 5  ;;  %v2410_v54 = vrot.slane %v2408_v42, 4  ;;  %v2388_v5 = vrot.slane %v2387_v2, 4  ;;  %v2306_v40 = vld [vmem:[#allocation2 + $0x2c] sm:$0x1] }
 0x267   : > { %v2383_v60 = vsel %vm8695_vm12, %v2378_v61, %v2382_v9  ;;  %v2414_v12 = vshll.u32 %v9199_v15, 16  ;;  %v4511_v47 = vsel %vm9184_vm2, %v4476_v8, 0  ;;  %v2401_v41 = vor.u32 %v2400_v11, %v2397_v32  ;;  %v2307_v61 = vld [vmem:[#allocation2 + $0x30] sm:$0xf] }
 0x268   : > { %7464 = vmatmul.mubr.msk.bf16.gmra.mrb[16].mxu1 %vm1398_vm7, %v6821_v31  ;;  %v2411_v13 = vor.u32 %v2410_v54, %v2406_v7  ;;  %v4512_v1 = vsel %vm4509_vm10, %v9163_v51, 0  ;;  %v4513_v17 = vsel %vm4510_vm11, %v9166_v3, 0  ;;  %v2393_v22 = vsel %vm8695_vm12, %v2388_v5, %v2392_v34 }
 0x269   : > { %v2416_v26 = vrot.slane %v2414_v12, 5  ;;  %vm4607_vm5 = vcmask 1042432   ;;  %v6743_v27 = vcombine.low %v2383_v60, %v2393_v22  ;;  %v2402_v30 = vrot.slane %v2401_v41, 4 }
 0x26a   : > { %v2412_v21 = vrot.slane %v2411_v13, 4  ;;  %v6838_v58 = vrot.slane %v4511_v47, 9  ;;  %v4612_v37 = vrot.slane %v4512_v1, 5  ;;  %v4615_v36 = vrot.slane %v4513_v17, 5  ;;  %vm9230_vm14 = vmor %vm4607_vm5, %vm4608_vm13  ;;  %v9262_v47 = vld [vmem:[#allocation6 + $0x20] sm:$0xf] }
 0x26b   : > { %v4514_v51 = vsel %vm9184_vm2, %v4477_v20, 0  ;;  %v4515_v3 = vsel %vm4509_vm10, %v9180_v28, 0  ;;  %7368 = vmatmul.mubr.msk.bf16.vlgmr.msra.gmra.mrb[32].mxu0 %vm1398_vm7, %v6743_v27  ;;  %v2407_v0 = vsel %vm8695_vm12, %v2402_v30, %v2406_v7  ;;  %v4516_v50 = vsel %vm4510_vm11, %v2300_v45, 0  ;;  %v9257_v7 = vld [vmem:[#allocation2 + $0x34] sm:$0xf] }
 0x26c   : > { %v2417_v46 = vsel %vm8695_vm12, %v2412_v21, %v2416_v26  ;;  %v6839_v57 = vrot.slane %v4514_v51, 9  ;;  %v4613_v52 = vsel %vm9230_vm14, %v6838_v58, %v4612_v37  ;;  %v4614_v53 = vrot.slane %v4612_v37, 4  ;;  %v2309_v17 = vld [vmem:[#allocation2 + $0x38] sm:$0x1] }
 0x26d   : > { %v6744_v28 = vcombine.low %v2407_v0, %v2417_v46  ;;  %v4619_v55 = vrot.slane %v4515_v3, 5  ;;  %v4622_v24 = vrot.slane %v4516_v50, 5  ;;  %v5339_v6 = vsel %vm1447_vm1, %v9048_v35, 0 }
 0x26e   : > { %v2419_v9 = vshrl.u32 %v2304_v43, 16  ;;  %v2422_v63 = vshll.u32 %v2304_v43, 16  ;;  %v4616_v45 = vsel %vm9230_vm14, %v4614_v53, %v4615_v36  ;;  %v2428_v10 = vshll.u32 %v9236_v59, 16 }
 0x26f   : > { %7371 = vmatprep.mubr.msk.bf16.mxu0 %vm1398_vm7, %v6744_v28  ;;  %v4620_v38 = vsel %vm9230_vm14, %v6839_v57, %v4619_v55  ;;  %v4621_v44 = vrot.slane %v4619_v55, 4  ;;  %v6854_v23 = vcombine.low %v4613_v52, %v4616_v45  ;;  %v2432_v39 = vshrl.u32 %v9236_v59, 16  ;;  %v2310_v28 = vld [vmem:[#allocation2 + $0x3c] sm:$0xf] }
 0x270   : > { %v2421_v34 = vrot.slane %v2419_v9, 4  ;;  %v2424_v33 = vrot.slane %v2422_v63, 5  ;;  %v2430_v42 = vrot.slane %v2428_v10, 5  ;;  %v2438_v8 = vshll.u32 %v2306_v40, 16  ;;  %v2312_v10 = vld [vmem:[#allocation2 + $0x44] sm:$0x1] }
 0x271   : > { %v4623_v35 = vsel %vm9230_vm14, %v4621_v44, %v4622_v24  ;;  %v4517_v29 = vsel %vm9184_vm2, %v4478_v4, 0  ;;  %7469 = vmatprep.mubr.msk.bf16.mxu1 %vm1398_vm7, %v6854_v23  ;;  %v2434_v31 = vrot.slane %v2432_v39, 4  ;;  %v4518_v11 = vsel %vm4509_vm10, %v9195_v25, 0  ;;  %v2311_v24 = vld [vmem:[#allocation2 + $0x40] sm:$0xf] }
 0x272   : > { %v6855_v2 = vcombine.low %v4620_v38, %v4623_v35  ;;  %v2425_v32 = vor.u32 %v2424_v33, %v2421_v34  ;;  %v2440_v54 = vrot.slane %v2438_v8, 5  ;;  %v4519_v60 = vsel %vm4510_vm11, %v9199_v15, 0  ;;  %v4479_v15 = vld [vmem:[#allocation2 + $0x24] sm:$0xe] }
 0x273   : > { %v6840_v5 = vrot.slane %v4517_v29, 9  ;;  %v4626_v12 = vrot.slane %v4518_v11, 5  ;;  %v2435_v13 = vor.u32 %v2434_v31, %v2430_v42  ;;  %v4629_v1 = vrot.slane %v4519_v60, 5 }
 0x274   : > { %7470 = vmatmul.mubr.msk.bf16.vlgmr.msra.gmra.mrb[20].mxu1 %vm1398_vm7, %v6855_v2  ;;  %v2426_v41 = vrot.slane %v2425_v32, 4  ;;  %v2443_v20 = vshrl.u32 %v2307_v61, 16  ;;  %v2446_v26 = vshll.u32 %v2307_v61, 16  ;;  %v2452_v27 = vshll.u32 %v9257_v7, 16  ;;  %v4480_v61 = vld [vmem:[#allocation2 + $0x30] sm:$0xe] }
 0x275   : > { %7502 = vmatpush3.bf16.msra.mxu1 %v5339_v6  ;;  %v4627_v25 = vsel %vm9230_vm14, %v6840_v5, %v4626_v12  ;;  %v4628_v22 = vrot.slane %v4626_v12, 4  ;;  %v2436_v21 = vrot.slane %v2435_v13, 4  ;;  %v2456_v37 = vshrl.u32 %v9257_v7, 16 }
 0x276   : > { %v2431_v30 = vsel %vm8695_vm12, %v2426_v41, %v2430_v42  ;;  %v2445_v58 = vrot.slane %v2443_v20, 4  ;;  %7870 = vmatprep.subr.msk.bf16.mxu1 %vm1447_vm1, %v9262_v47  ;;  %v2448_v51 = vrot.slane %v2446_v26, 5  ;;  %v2454_v3 = vrot.slane %v2452_v27, 5  ;;  %v4481_v41 = vld [vmem:[#allocation2 + $0x3c] sm:$0xe] }
 0x277   : > { %v4630_v36 = vsel %vm9230_vm14, %v4628_v22, %v4629_v1  ;;  %v2462_v43 = vshll.u32 %v2309_v17, 16  ;;  %v2441_v0 = vsel %vm8695_vm12, %v2436_v21, %v2440_v54  ;;  %v2458_v50 = vrot.slane %v2456_v37, 4 }
 0x278   : > { %v6856_v46 = vcombine.low %v4627_v25, %v4630_v36  ;;  %v4520_v57 = vsel %vm9184_vm2, %v4479_v15, 0  ;;  %v6745_v52 = vcombine.low %v2431_v30, %v2441_v0  ;;  %v2449_v53 = vor.u32 %v2448_v51, %v2445_v58  ;;  %v4482_v30 = vld [vmem:[#allocation2 + $0x48] sm:$0xe] }
 0x279   : > { %v2464_v55 = vrot.slane %v2462_v43, 5  ;;  %v4521_v4 = vsel %vm4509_vm10, %v9236_v59, 0  ;;  %v2459_v6 = vor.u32 %v2458_v50, %v2454_v3  ;;  %v4522_v9 = vsel %vm4510_vm11, %v2306_v40, 0 }
 0x27a   : > { %7473 = vmatprep.mubr.msk.bf16.mxu1 %vm1398_vm7, %v6856_v46  ;;  %v6841_v63 = vrot.slane %v4520_v57, 9  ;;  %v4633_v45 = vrot.slane %v4521_v4, 5  ;;  %7372 = vmatmul.mubr.msk.bf16.gmra.mrb[36].mxu0 %vm1398_vm7, %v6745_v52  ;;  %v2450_v38 = vrot.slane %v2449_v53, 4  ;;  %v4636_v44 = vrot.slane %v4522_v9, 5  ;;  %v7941_v9 = vld [vmem:[#allocation2 + $0x58] sm:$0xf] }
 0x27b   : > { %v2467_v23 = vshrl.u32 %v2310_v28, 16  ;;  %v2470_v34 = vshll.u32 %v2310_v28, 16  ;;  %v2460_v33 = vrot.slane %v2459_v6, 4  ;;  %v2476_v35 = vshll.u32 %v2311_v24, 16 }
 0x27c   : > { %v4634_v59 = vsel %vm9230_vm14, %v6841_v63, %v4633_v45  ;;  %v4635_v39 = vrot.slane %v4633_v45, 4  ;;  %v2455_v42 = vsel %vm8695_vm12, %v2450_v38, %v2454_v3  ;;  %v2480_v29 = vshrl.u32 %v2311_v24, 16 }
 0x27d   : > { %v2469_v8 = vrot.slane %v2467_v23, 4  ;;  %v2472_v40 = vrot.slane %v2470_v34, 5  ;;  %v2465_v2 = vsel %vm8695_vm12, %v2460_v33, %v2464_v55  ;;  %v2478_v31 = vrot.slane %v2476_v35, 5  ;;  %v4484_v33 = vld [vmem:[#allocation2 + $0x60] sm:$0xe] }
 0x27e   : > { %v4637_v32 = vsel %vm9230_vm14, %v4635_v39, %v4636_v44  ;;  %v2486_v11 = vshll.u32 %v2312_v10, 16  ;;  %v6746_v54 = vcombine.low %v2455_v42, %v2465_v2  ;;  %v2482_v12 = vrot.slane %v2480_v29, 4  ;;  %v4483_v44 = vld [vmem:[#allocation2 + $0x54] sm:$0xe]  ;;  %v7944_v35 = vld [vmem:[#allocation2 + $0x68] sm:$0x1] }
 0x27f   : > { %v6857_v60 = vcombine.low %v4634_v59, %v4637_v32  ;;  %v2473_v5 = vor.u32 %v2472_v40, %v2469_v8  ;;  %v4657_v13 = vrot.slane %v8691_v16, 5  ;;  %v4523_v1 = vsel %vm9184_vm2, %v4480_v61, 0  ;;  %v7943_v59 = vld [vmem:[#allocation2 + $0x64] sm:$0xf]  ;;  %v7945_v32 = vld [vmem:[#allocation2 + $0x70] sm:$0xf] }
 0x280   : > { %v4524_v20 = vsel %vm4509_vm10, %v9257_v7, 0  ;;  %v4525_v25 = vsel %vm4510_vm11, %v2309_v17, 0  ;;  %7375 = vmatprep.mubr.msk.bf16.mxu0 %vm1398_vm7, %v6746_v54  ;;  %v2483_v26 = vor.u32 %v2482_v12, %v2478_v31  ;;  %v2488_v27 = vrot.slane %v2486_v11, 5 }
 0x281   : > { %7474 = vmatmul.mubr.msk.bf16.gmra.mrb[24].mxu1 %vm1398_vm7, %v6857_v60  ;;  %v2474_v22 = vrot.slane %v2473_v5, 4  ;;  %v4640_v15 = vrot.slane %v4524_v20, 5  ;;  %v6842_v16 = vrot.slane %v4523_v1, 9  ;;  %v4643_v21 = vrot.slane %v4525_v25, 5 }
 0x282   : > { %v4526_v58 = vsel %vm9184_vm2, %v4481_v41, 0  ;;  %v4527_v7 = vsel %vm4509_vm10, %v2311_v24, 0  ;;  %v2484_v37 = vrot.slane %v2483_v26, 4  ;;  %v4528_v51 = vsel %vm4510_vm11, %v2312_v10, 0  ;;  %v7942_v10 = vld [vmem:[#allocation2 + $0x5c] sm:$0x1] }
 0x283   : > { %v2479_v17 = vsel %vm8695_vm12, %v2474_v22, %v2478_v31  ;;  %v4642_v36 = vrot.slane %v4640_v15, 4  ;;  %v4641_v3 = vsel %vm9230_vm14, %v6842_v16, %v4640_v15  ;;  %v6843_v43 = vrot.slane %v4526_v58, 9  ;;  %v7946_v41 = vld [vmem:[#allocation2 + $0x7c] sm:$0xf]  ;;  %v4485_v22 = vld [vmem:[#allocation2 + $0x6c] sm:$0xe] }
 0x284   : > { %v4647_v0 = vrot.slane %v4527_v7, 5  ;;  %v4529_v46 = vsel %vm9184_vm2, %v4482_v30, 0  ;;  %v2489_v50 = vsel %vm8695_vm12, %v2484_v37, %v2488_v27  ;;  %v4656_v52 = vrot.slane %v4654_v49, 4  ;;  %v7947_v30 = vld [vmem:[#allocation2 + $0x74] sm:$0x1] }
 0x285   : > { %v4644_v57 = vsel %vm9230_vm14, %v4642_v36, %v4643_v21  ;;  %v6844_v28 = vrot.slane %v4529_v46, 9  ;;  %v6747_v53 = vcombine.low %v2479_v17, %v2489_v50  ;;  %v4650_v24 = vrot.slane %v4528_v51, 5  ;;  %v4486_v21 = vld [vmem:[#allocation2 + $0x78] sm:$0xe]  ;;  %v7948_v17 = vld [vmem:[#allocation2 + $0x80] sm:$0x1] }
 0x286   : > { %v6858_v55 = vcombine.low %v4641_v3, %v4644_v57  ;;  %v4649_v4 = vrot.slane %v4647_v0, 4  ;;  %v4658_v18 = vsel %vm9230_vm14, %v4656_v52, %v4657_v13  ;;  %v4533_v63 = vsel %vm4509_vm10, %v7941_v9, 0  ;;  %v7949_v3 = vld [vmem:[#allocation2 + $0x88] sm:$0xf]  ;;  %v7950_v50 = vld [vmem:[#allocation2 + $0x94] sm:$0xf] }
 0x287   : > { %v4655_v6 = vsel %vm9230_vm14, %v6844_v28, %v4654_v49  ;;  %7376 = vmatmul.mubr.msk.bf16.gmra.mrb[40].mxu0 %vm1398_vm7, %v6747_v53  ;;  %v4648_v45 = vsel %vm9230_vm14, %v6843_v43, %v4647_v0  ;;  %v4534_v23 = vsel %vm4510_vm11, %v7942_v10, 0  ;;  %v4661_v34 = vrot.slane %v4533_v63, 5  ;;  %v4487_v9 = vld [vmem:[#allocation2 + $0x84] sm:$0xe] }
 0x288   : > { %7477 = vmatprep.mubr.msk.bf16.mxu1 %vm1398_vm7, %v6858_v55  ;;  %v4651_v14 = vsel %vm9230_vm14, %v4649_v4, %v4650_v24  ;;  %v6860_v38 = vcombine.low %v4655_v6, %v4658_v18  ;;  %v4536_v39 = vsel %vm4509_vm10, %v7943_v59, 0  ;;  %v4537_v42 = vsel %vm4510_vm11, %v7944_v35, 0 }
 0x289   : > { %v6859_v49 = vcombine.low %v4648_v45, %v4651_v14  ;;  %v4532_v8 = vsel %vm9184_vm2, %v4483_v44, 0  ;;  %v4663_v40 = vrot.slane %v4661_v34, 4  ;;  %v4668_v29 = vrot.slane %v4536_v39, 5  ;;  %v7951_v14 = vld [vmem:[#allocation2 + $0x8c] sm:$0x1] }
 0x28a   : > { %v4664_v61 = vrot.slane %v4534_v23, 5  ;;  %v4535_v2 = vsel %vm9184_vm2, %v4484_v33, 0  ;;  %v4539_v31 = vsel %vm4509_vm10, %v7945_v32, 0  ;;  %v4671_v54 = vrot.slane %v4537_v42, 5  ;;  %v4488_v44 = vld [vmem:[#allocation2 + $0x90] sm:$0xe] }
 0x28b   : > { %7478 = vmatmul.mubr.msk.bf16.gmra.mrb[28].mxu1 %vm1398_vm7, %v6859_v49  ;;  %v4670_v11 = vrot.slane %v4668_v29, 4  ;;  %v6845_v60 = vrot.slane %v4532_v8, 9  ;;  %v4675_v12 = vrot.slane %v4539_v31, 5  ;;  %v4542_v13 = vsel %vm4509_vm10, %v7946_v41, 0  ;;  %v7952_v23 = vld [vmem:[#allocation2 + $0x98] sm:$0x1] }
 0x28c   : > { %7481 = vmatprep.mubr.msk.bf16.mxu1 %vm1398_vm7, %v6860_v38  ;;  %v4665_v5 = vsel %vm9230_vm14, %v4663_v40, %v4664_v61  ;;  %v6846_v1 = vrot.slane %v4535_v2, 9  ;;  %v4682_v26 = vrot.slane %v4542_v13, 5  ;;  %v4540_v16 = vsel %vm4510_vm11, %v7947_v30, 0  ;;  %v7953_v39 = vld [vmem:[#allocation2 + $0xa0] sm:$0xf] }
 0x28d   : > { %v4672_v20 = vsel %vm9230_vm14, %v4670_v11, %v4671_v54  ;;  %v4662_v25 = vsel %vm9230_vm14, %v6845_v60, %v4661_v34  ;;  %v4677_v7 = vrot.slane %v4675_v12, 4  ;;  %v4543_v37 = vsel %vm4510_vm11, %v7948_v17, 0  ;;  %v7954_v40 = vld [vmem:[#allocation2 + $0xac] sm:$0xf] }
 0x28e   : > { %v6861_v27 = vcombine.low %v4662_v25, %v4665_v5  ;;  %v4669_v15 = vsel %vm9230_vm14, %v6846_v1, %v4668_v29  ;;  %v4538_v36 = vsel %vm9184_vm2, %v4485_v22, 0  ;;  %v4684_v51 = vrot.slane %v4682_v26, 4  ;;  %v7955_v1 = vld [vmem:[#allocation2 + $0xa4] sm:$0x1]  ;;  %v4490_v25 = vld [vmem:[#allocation2 + $0xa8] sm:$0xe] }
 0x28f   : > { %v6862_v58 = vcombine.low %v4669_v15, %v4672_v20  ;;  %v4545_v43 = vsel %vm4509_vm10, %v7949_v3, 0  ;;  %v4678_v0 = vrot.slane %v4540_v16, 5  ;;  %v4541_v46 = vsel %vm9184_vm2, %v4486_v21, 0  ;;  %v7957_v21 = vld [vmem:[#allocation2 + $0xb8] sm:$0xf] }
 0x290   : > { %v4548_v57 = vsel %vm4509_vm10, %v7950_v50, 0  ;;  %v4685_v28 = vrot.slane %v4543_v37, 5  ;;  %v6847_v52 = vrot.slane %v4538_v36, 9  ;;  %v4689_v55 = vrot.slane %v4545_v43, 5  ;;  %v7958_v37 = vld [vmem:[#allocation2 + $0x10] sm:$0xf] }
 0x291   : > { %v4679_v53 = vsel %vm9230_vm14, %v4677_v7, %v4678_v0  ;;  %v6848_v4 = vrot.slane %v4541_v46, 9  ;;  %v4696_v6 = vrot.slane %v4548_v57, 5  ;;  %v4546_v38 = vsel %vm4510_vm11, %v7951_v14, 0 }
 0x292   : > { %v4686_v24 = vsel %vm9230_vm14, %v4684_v51, %v4685_v28  ;;  %v4676_v18 = vsel %vm9230_vm14, %v6847_v52, %v4675_v12  ;;  %v4691_v10 = vrot.slane %v4689_v55, 4  ;;  %v4549_v34 = vsel %vm4510_vm11, %v7952_v23, 0  ;;  %v4489_v12 = vld [vmem:[#allocation2 + $0x9c] sm:$0xe]  ;;  %v4491_v52 = vld [vmem:[#allocation2 + $0xb4] sm:$0xe] }
 0x293   : > { %7482 = vmatmul.mubr.msk.bf16.gmra.mrb[0].mxu1 %vm1398_vm7, %v6861_v27  ;;  %v6863_v63 = vcombine.low %v4676_v18, %v4679_v53  ;;  %v4683_v45 = vsel %vm9230_vm14, %v6848_v4, %v4682_v26  ;;  %v4544_v33 = vsel %vm9184_vm2, %v4487_v9, 0  ;;  %v4698_v59 = vrot.slane %v4696_v6, 4  ;;  %v7956_v27 = vld [vmem:[#allocation2 + $0xb0] sm:$0x1]  ;;  %v7959_v4 = vld [vmem:[#allocation2 + $0xbc] sm:$0x1] }
 0x294   : > { %7485 = vmatprep.mubr.msk.bf16.mxu1 %vm1398_vm7, %v6862_v58  ;;  %v6864_v49 = vcombine.low %v4683_v45, %v4686_v24  ;;  %v4551_v35 = vsel %vm4509_vm10, %v7953_v39, 0  ;;  %v4692_v42 = vrot.slane %v4546_v38, 5  ;;  %v4547_v8 = vsel %vm9184_vm2, %v4488_v44, 0  ;;  %v7961_v44 = vld [vmem:[#allocation2 + $0x1c] sm:$0xf] }
 0x295   : > { %v4554_v29 = vsel %vm4509_vm10, %v7954_v40, 0  ;;  %v4699_v61 = vrot.slane %v4549_v34, 5  ;;  %v6849_v2 = vrot.slane %v4544_v33, 9  ;;  %v4703_v31 = vrot.slane %v4551_v35, 5  ;;  %v7962_v34 = vld [vmem:[#allocation2 + $0x28] sm:$0xf] }
 0x296   : > { %v4693_v32 = vsel %vm9230_vm14, %v4691_v10, %v4692_v42  ;;  %v6850_v11 = vrot.slane %v4547_v8, 9  ;;  %v4710_v60 = vrot.slane %v4554_v29, 5  ;;  %v4552_v20 = vsel %vm4510_vm11, %v7955_v1, 0 }
 0x297   : > { %v4700_v54 = vsel %vm9230_vm14, %v4698_v59, %v4699_v61  ;;  %v4690_v5 = vsel %vm9230_vm14, %v6849_v2, %v4689_v55  ;;  %v4705_v26 = vrot.slane %v4703_v31, 4  ;;  %v4555_v15 = vsel %vm4510_vm11, %v7956_v27, 0  ;;  %v5017_v2 = vld [vmem:[#allocation2 + $0x18] sm:$0xe] }
 0x298   : > { %v6865_v41 = vcombine.low %v4690_v5, %v4693_v32  ;;  %v4697_v13 = vsel %vm9230_vm14, %v6850_v11, %v4696_v6  ;;  %v4550_v30 = vsel %vm9184_vm2, %v4489_v12, 0  ;;  %v4712_v16 = vrot.slane %v4710_v60, 4  ;;  %v5016_v6 = vld [vmem:[#allocation2 + $0xc] sm:$0xe]  ;;  %v7963_v11 = vld [vmem:[#allocation2 + $0x20] sm:$0x1] }
 0x299   : > { %v6866_v22 = vcombine.low %v4697_v13, %v4700_v54  ;;  %v4557_v58 = vsel %vm4509_vm10, %v7957_v21, 0  ;;  %v4706_v7 = vrot.slane %v4552_v20, 5  ;;  %v4553_v17 = vsel %vm9184_vm2, %v4490_v25, 0  ;;  %v7965_v25 = vld [vmem:[#allocation2 + $0x34] sm:$0xf] }
 0x29a   : > { %v5033_v36 = vsel %vm4509_vm10, %v7958_v37, 0  ;;  %v4713_v51 = vrot.slane %v4555_v15, 5  ;;  %v6851_v3 = vrot.slane %v4550_v30, 9  ;;  %v4717_v0 = vrot.slane %v4557_v58, 5  ;;  %v7966_v15 = vld [vmem:[#allocation2 + $0x40] sm:$0xf] }
 0x29b   : > { %7486 = vmatmul.mubr.msk.bf16.gmra.mrb[4].mxu1 %vm1398_vm7, %v6863_v63  ;;  %v4707_v43 = vsel %vm9230_vm14, %v4705_v26, %v4706_v7  ;;  %v6852_v46 = vrot.slane %v4553_v17, 9  ;;  %v5130_v57 = vrot.slane %v5033_v36, 5  ;;  %v4558_v24 = vsel %vm4510_vm11, %v7959_v4, 0  ;;  %v7960_v63 = vld [vmem:[#allocation2 + $0x14] sm:$0x1] }
 0x29c   : > { %7489 = vmatprep.mubr.msk.bf16.mxu1 %vm1398_vm7, %v6864_v49  ;;  %v4714_v50 = vsel %vm9230_vm14, %v4712_v16, %v4713_v51  ;;  %v4704_v28 = vsel %vm9230_vm14, %v6851_v3, %v4703_v31  ;;  %v4719_v9 = vrot.slane %v4717_v0, 4  ;;  %v5034_v45 = vsel %vm4510_vm11, %v7960_v63, 0  ;;  %v5019_v3 = vld [vmem:[#allocation2 + $0x30] sm:$0xe] }
 0x29d   : > { %v6867_v53 = vcombine.low %v4704_v28, %v4707_v43  ;;  %v4711_v55 = vsel %vm9230_vm14, %v6852_v46, %v4710_v60  ;;  %v4556_v14 = vsel %vm9184_vm2, %v4491_v52, 0  ;;  %v5132_v38 = vrot.slane %v5130_v57, 4  ;;  %v5018_v60 = vld [vmem:[#allocation2 + $0x24] sm:$0xe]  ;;  %v5020_v28 = vld [vmem:[#allocation2 + $0x3c] sm:$0xe] }
 0x29e   : > { %v6868_v18 = vcombine.low %v4711_v55, %v4714_v50  ;;  %v5036_v49 = vsel %vm4509_vm10, %v7961_v44, 0  ;;  %v4720_v10 = vrot.slane %v4558_v24, 5  ;;  %v5032_v23 = vsel %vm9184_vm2, %v5016_v6, 0  ;;  %v7967_v50 = vld [vmem:[#allocation2 + $0x38] sm:$0x1] }
 0x29f   : > { %v5039_v33 = vsel %vm4509_vm10, %v7962_v34, 0  ;;  %v5133_v59 = vrot.slane %v5034_v45, 5  ;;  %v6853_v39 = vrot.slane %v4556_v14, 9  ;;  %v5137_v42 = vrot.slane %v5036_v49, 5  ;;  %v7968_v55 = vld [vmem:[#allocation2 + $0x44] sm:$0x1] }
 0x2a0   : > { %v4721_v35 = vsel %vm9230_vm14, %v4719_v9, %v4720_v10  ;;  %v6886_v8 = vrot.slane %v5032_v23, 9  ;;  %v5144_v29 = vrot.slane %v5039_v33, 5  ;;  %v5037_v54 = vsel %vm4510_vm11, %v7963_v11, 0  ;;  %v7969_v6 = vld [vmem:[#allocation2 + $0x4c] sm:$0xf] }
 0x2a1   : > { %v5134_v40 = vsel %vm9230_vm14, %v5132_v38, %v5133_v59  ;;  %v4718_v61 = vsel %vm9230_vm14, %v6853_v39, %v4717_v0  ;;  %v5139_v12 = vrot.slane %v5137_v42, 4  ;;  %v5035_v1 = vsel %vm9184_vm2, %v5017_v2, 0  ;;  %v7970_v45 = vld [vmem:[#allocation2 + $0x58] sm:$0xf]  ;;  %v5021_v39 = vld [vmem:[#allocation2 + $0x48] sm:$0xe] }
 0x2a2   : > { %v6869_v32 = vcombine.low %v4718_v61, %v4721_v35  ;;  %v5131_v31 = vsel %vm9230_vm14, %v6886_v8, %v5130_v57  ;;  %v5146_v20 = vrot.slane %v5144_v29, 4  ;;  %v5140_v26 = vrot.slane %v5037_v54, 5  ;;  %v7971_v8 = vld [vmem:[#allocation2 + $0x50] sm:$0x1] }
 0x2a3   : > { %7490 = vmatmul.mubr.msk.bf16.gmra.mrb[8].mxu1 %vm1398_vm7, %v6865_v41  ;;  %v6902_v5 = vcombine.low %v5131_v31, %v5134_v40  ;;  %v7964_v41 = vld [vmem:[#allocation2 + $0x2c] sm:$0x1]  ;;  %v5038_v27 = vsel %vm9184_vm2, %v5018_v60, 0  ;;  %v5045_v30 = vsel %vm4509_vm10, %v7966_v15, 0  ;;  %v6887_v21 = vrot.slane %v5035_v1, 9 }
 0x2a4   : > { %7493 = vmatprep.mubr.msk.bf16.mxu1 %vm1398_vm7, %v6866_v22  ;;  %v5040_v13 = vsel %vm4510_vm11, %v7964_v41, 0  ;;  %v5042_v22 = vsel %vm4509_vm10, %v7965_v25, 0  ;;  %v5141_v58 = vsel %vm9230_vm14, %v5139_v12, %v5140_v26  ;;  %v6888_v17 = vrot.slane %v5038_v27, 9  ;;  %v7973_v60 = vld [vmem:[#allocation2 + $0x64] sm:$0xf] }
 0x2a5   : > { %v5147_v16 = vrot.slane %v5040_v13, 5  ;;  %v5151_v7 = vrot.slane %v5042_v22, 5  ;;  %v5158_v36 = vrot.slane %v5045_v30, 5  ;;  %v5138_v51 = vsel %vm9230_vm14, %v6887_v21, %v5137_v42  ;;  %v7974_v13 = vld [vmem:[#allocation2 + $0x70] sm:$0xf] }
 0x2a6   : > { %v6903_v43 = vcombine.low %v5138_v51, %v5141_v58  ;;  %v5857_v0 = vsel %vm1447_vm1, %v9262_v47, 0  ;;  %v5145_v46 = vsel %vm9230_vm14, %v6888_v17, %v5144_v29  ;;  %v5043_v57 = vsel %vm4510_vm11, %v7967_v50, 0  ;;  %v5022_v29 = vld [vmem:[#allocation2 + $0x54] sm:$0xe]  ;;  %v5023_v21 = vld [vmem:[#allocation2 + $0x60] sm:$0xe] }
 0x2a7   : > { %v5148_v37 = vsel %vm9230_vm14, %v5146_v20, %v5147_v16  ;;  %v5046_v4 = vsel %vm4510_vm11, %v7968_v55, 0  ;;  %v5041_v24 = vsel %vm9184_vm2, %v5019_v3, 0  ;;  %v5160_v47 = vrot.slane %v5158_v36, 4  ;;  %v7975_v17 = vld [vmem:[#allocation2 + $0x68] sm:$0x1] }
 0x2a8   : > { %v6904_v52 = vcombine.low %v5145_v46, %v5148_v37  ;;  %v5154_v9 = vrot.slane %v5043_v57, 5  ;;  %v5044_v63 = vsel %vm9184_vm2, %v5020_v28, 0  ;;  %v5051_v14 = vsel %vm4509_vm10, %v7970_v45, 0  ;;  %v7977_v57 = vld [vmem:[#allocation2 + $0x7c] sm:$0xf] }
 0x2a9   : > { %v5161_v38 = vrot.slane %v5046_v4, 5  ;;  %v6889_v44 = vrot.slane %v5041_v24, 9  ;;  %v6890_v23 = vrot.slane %v5044_v63, 9  ;;  %v5172_v33 = vrot.slane %v5051_v14, 5  ;;  %v7978_v55 = vld [vmem:[#allocation2 + $0x88] sm:$0xf] }
 0x2aa   : > { %v5049_v40 = vsel %vm4510_vm11, %v7971_v8, 0  ;;  %v5047_v11 = vsel %vm9184_vm2, %v5021_v39, 0  ;;  %v5050_v41 = vsel %vm9184_vm2, %v5022_v29, 0  ;;  %v5057_v1 = vsel %vm4509_vm10, %v7974_v13, 0  ;;  %v7980_v39 = vld [vmem:[#allocation2 + $0x8c] sm:$0x1] }
 0x2ab   : > { %7494 = vmatmul.mubr.msk.bf16.gmra.mrb[12].mxu1 %vm1398_vm7, %v6867_v53  ;;  %v5153_v53 = vrot.slane %v5151_v7, 4  ;;  %v5162_v34 = vsel %vm9230_vm14, %v5160_v47, %v5161_v38  ;;  %v5152_v59 = vsel %vm9230_vm14, %v6889_v44, %v5151_v7  ;;  %v5159_v42 = vsel %vm9230_vm14, %v6890_v23, %v5158_v36  ;;  %v5024_v36 = vld [vmem:[#allocation2 + $0x6c] sm:$0xe]  ;;  %v5025_v38 = vld [vmem:[#allocation2 + $0x78] sm:$0xe] }
 0x2ac   : > { %7497 = vmatprep.mubr.msk.bf16.mxu1 %vm1398_vm7, %v6868_v18  ;;  %v5048_v18 = vsel %vm4509_vm10, %v7969_v6, 0  ;;  %v6906_v61 = vcombine.low %v5159_v42, %v5162_v34  ;;  %v5174_v54 = vrot.slane %v5172_v33, 4  ;;  %v5168_v12 = vrot.slane %v5049_v40, 5  ;;  %v5026_v34 = vld [vmem:[#allocation2 + $0x84] sm:$0xe] }
 0x2ad   : > { %v5155_v49 = vsel %vm9230_vm14, %v5153_v53, %v5154_v9  ;;  %v5165_v10 = vrot.slane %v5048_v18, 5  ;;  %v6891_v25 = vrot.slane %v5047_v11, 9  ;;  %v6892_v27 = vrot.slane %v5050_v41, 9  ;;  %v7981_v40 = vld [vmem:[#allocation2 + $0x94] sm:$0xf] }
 0x2ae   : > { %v6905_v35 = vcombine.low %v5152_v59, %v5155_v49  ;;  %v5186_v30 = vrot.slane %v5057_v1, 5  ;;  %v5055_v37 = vsel %vm4510_vm11, %v7975_v17, 0  ;;  %v5053_v46 = vsel %vm9184_vm2, %v5023_v21, 0  ;;  %v7984_v21 = vld [vmem:[#allocation2 + $0xa4] sm:$0x1] }
 0x2af   : > { %v5167_v2 = vrot.slane %v5165_v10, 4  ;;  %v5166_v16 = vsel %vm9230_vm14, %v6891_v25, %v5165_v10  ;;  %v5173_v7 = vsel %vm9230_vm14, %v6892_v27, %v5172_v33  ;;  %v5060_v28 = vsel %vm4509_vm10, %v7977_v57, 0  ;;  %v7979_v10 = vld [vmem:[#allocation2 + $0x80] sm:$0x1] }
 0x2b0   : > { %v5188_v50 = vrot.slane %v5186_v30, 4  ;;  %v5056_v53 = vsel %vm9184_vm2, %v5024_v36, 0  ;;  %v5063_v4 = vsel %vm4509_vm10, %v7978_v55, 0  ;;  %v6893_v47 = vrot.slane %v5053_v46, 9 }
 0x2b1   : > { %v5169_v22 = vsel %vm9230_vm14, %v5167_v2, %v5168_v12  ;;  %v5193_v18 = vrot.slane %v5060_v28, 5  ;;  %v6894_v9 = vrot.slane %v5056_v53, 9  ;;  %v5200_v45 = vrot.slane %v5063_v4, 5 }
 0x2b2   : > { %v6907_v58 = vcombine.low %v5166_v16, %v5169_v22  ;;  %v5061_v23 = vsel %vm4510_vm11, %v7979_v10, 0  ;;  %v5059_v42 = vsel %vm9184_vm2, %v5025_v38, 0  ;;  %v5066_v29 = vsel %vm4509_vm10, %v7981_v40, 0 }
 0x2b3   : > { %7498 = vmatmul.mubr.msk.bf16.gmra.mrb[16].mxu1 %vm1398_vm7, %v6869_v32  ;;  %v7972_v32 = vld [vmem:[#allocation2 + $0x5c] sm:$0x1]  ;;  %v5187_v49 = vsel %vm9230_vm14, %v6894_v9, %v5186_v30  ;;  %v5195_v59 = vrot.slane %v5193_v18, 4  ;;  %v5202_v8 = vrot.slane %v5200_v45, 4  ;;  %v5062_v2 = vsel %vm9184_vm2, %v5026_v34, 0 }
 0x2b4   : > { %7503 = vmatprep.mubr.msk.bf16.mxu1 %vm1398_vm7, %v6902_v5  ;;  %v5052_v31 = vsel %vm4510_vm11, %v7972_v32, 0  ;;  %v5054_v5 = vsel %vm4509_vm10, %v7973_v60, 0  ;;  %v7982_v32 = vld [vmem:[#allocation2 + $0xa0] sm:$0xf]  ;;  %v6896_v12 = vrot.slane %v5062_v2, 9 }
 0x2b5   : > { %v5175_v20 = vrot.slane %v5052_v31, 5  ;;  %v5179_v26 = vrot.slane %v5054_v5, 5  ;;  %v5069_v31 = vsel %vm4509_vm10, %v7982_v32, 0  ;;  %v5207_v5 = vrot.slane %v5066_v29, 5  ;;  %v7987_v9 = vld [vmem:[#allocation2 + $0xb0] sm:$0x1] }
 0x2b6   : > { %v5214_v13 = vrot.slane %v5069_v31, 5  ;;  %v5201_v22 = vsel %vm9230_vm14, %v6896_v12, %v5200_v45  ;;  %v5030_v45 = vld [vmem:[#allocation2 + $0xb4] sm:$0xe]  ;;  %v7989_v34 = vld [vmem:[#allocation2 + $0xc4] sm:$0xf] }
 0x2b7   : > { %v5176_v15 = vsel %vm9230_vm14, %v5174_v54, %v5175_v20  ;;  %v5181_v3 = vrot.slane %v5179_v26, 4  ;;  %v5180_v14 = vsel %vm9230_vm14, %v6893_v47, %v5179_v26  ;;  %v6895_v54 = vrot.slane %v5059_v42, 9  ;;  %v5027_v20 = vld [vmem:[#allocation2 + $0x90] sm:$0xe]  ;;  %v7983_v26 = vld [vmem:[#allocation2 + $0x98] sm:$0x1] }
 0x2b8   : > { %v6908_v51 = vcombine.low %v5173_v7, %v5176_v15  ;;  %v5067_v27 = vsel %vm4510_vm11, %v7983_v26, 0  ;;  %v5028_v15 = vld [vmem:[#allocation2 + $0x9c] sm:$0xe]  ;;  %v5209_v16 = vrot.slane %v5207_v5, 4  ;;  %v5065_v7 = vsel %vm9184_vm2, %v5027_v20, 0 }
 0x2b9   : > { %v5194_v1 = vsel %vm9230_vm14, %v6895_v54, %v5193_v18  ;;  %v5216_v17 = vrot.slane %v5214_v13, 4  ;;  %v5029_v47 = vld [vmem:[#allocation2 + $0xa8] sm:$0xe]  ;;  %v5031_v54 = vld [vmem:[#allocation2 + $0xc0] sm:$0xe] }
 0x2ba   : > { %v5071_v10 = vsel %vm9184_vm2, %v5029_v47, 0  ;;  %v7991_v12 = vld [vmem:[#allocation2 + $0xc8] sm:$0x1]  ;;  %v5077_v26 = vsel %vm9184_vm2, %v5031_v54, 0 }
 0x2bb   : > { %7504 = vmatmul.mubr.msk.bf16.vlgmr.msra.gmra.mrb[20].mxu1 %vm1398_vm7, %v6903_v43  ;;  %v7976_v43 = vld [vmem:[#allocation2 + $0x74] sm:$0x1]  ;;  %v6899_v40 = vrot.slane %v5071_v10, 9 }
 0x2bc   : > { %7536 = vmatpush3.bf16.msra.mxu1 %v5857_v0  ;;  %7507 = vmatprep.mubr.msk.bf16.mxu1 %vm1398_vm7, %v6904_v52  ;;  %v5058_v0 = vsel %vm4510_vm11, %v7976_v43, 0  ;;  %v5182_v52 = vrot.slane %v5055_v37, 5  ;;  %v7985_v37 = vld [vmem:[#allocation2 + $0xac] sm:$0xf]  ;;  %v7986_v43 = vld [vmem:[#allocation2 + $0xb8] sm:$0xf] }
 0x2bd   : > { %v5189_v24 = vrot.slane %v5058_v0, 5  ;;  %v5072_v36 = vsel %vm4509_vm10, %v7985_v37, 0  ;;  %v5075_v0 = vsel %vm4509_vm10, %v7986_v43, 0 }
 0x2be   : > { %v5183_v6 = vsel %vm9230_vm14, %v5181_v3, %v5182_v52  ;;  %v5068_v3 = vsel %vm9184_vm2, %v5028_v15, 0  ;;  %v5221_v28 = vrot.slane %v5072_v36, 5  ;;  %v6139_v52 = vld [vmem:[%s10098_s3] sm:$0xf]  ;;  %v5228_v4 = vrot.slane %v5075_v0, 5 }
 0x2bf   : > { %v5190_v63 = vsel %vm9230_vm14, %v5188_v50, %v5189_v24  ;;  %v6909_v44 = vcombine.low %v5180_v14, %v5183_v6  ;;  %v6897_v50 = vrot.slane %v5065_v7, 9  ;;  %v6898_v53 = vrot.slane %v5068_v3, 9  ;;  %7871 = vmatprep.subr.msk.bf16.mxu0 %vm1447_vm1, %v6139_v52  ;;  %v7993_v15 = vld [vmem:[#allocation2 + $0x28] sm:$0xf] }
 0x2c0   : > { %v6910_v33 = vcombine.low %v5187_v49, %v5190_v63  ;;  %v5073_v63 = vsel %vm4510_vm11, %v7987_v9, 0  ;;  %v5223_v38 = vrot.slane %v5221_v28, 4  ;;  %v6196_v37 = vsel %vm1447_vm1, %v6139_v52, 0  ;;  %v7995_v52 = vld [vmem:[#allocation2 + $0x2c] sm:$0x1] }
 0x2c1   : > { %v5208_v24 = vsel %vm9230_vm14, %v6897_v50, %v5207_v5  ;;  %v5215_v18 = vsel %vm9230_vm14, %v6898_v53, %v5214_v13  ;;  %v5534_v13 = vld [vmem:[#allocation2 + $0x18] sm:$0xe]  ;;  %v6901_v36 = vrot.slane %v5077_v26, 9  ;;  %7570 = vmatpush3.bf16.msra.mxu0 %v6196_v37 }
 0x2c3   : > { %7508 = vmatmul.mubr.msk.bf16.gmra.mrb[24].mxu1 %vm1398_vm7, %v6905_v35  ;;  %v5064_v35 = vsel %vm4510_vm11, %v7980_v39, 0  ;;  %v5074_v39 = vsel %vm9184_vm2, %v5030_v45, 0  ;;  %v7997_v45 = vld [vmem:[#allocation2 + $0x40] sm:$0xf] }
 0x2c4   : > { %7511 = vmatprep.mubr.msk.bf16.mxu1 %vm1398_vm7, %v6906_v61  ;;  %v5196_v61 = vrot.slane %v5061_v23, 5  ;;  %v5203_v11 = vrot.slane %v5064_v35, 5  ;;  %v5230_v23 = vrot.slane %v5228_v4, 4  ;;  %v7990_v35 = vld [vmem:[#allocation2 + $0x1c] sm:$0xf]  ;;  %v6900_v2 = vrot.slane %v5074_v39, 9 }
 0x2c5   : > { %v5551_v42 = vsel %vm4509_vm10, %v7990_v35, 0 }
 0x2c6   : > { %v5197_v60 = vsel %vm9230_vm14, %v5195_v59, %v5196_v61  ;;  %v5204_v41 = vsel %vm9230_vm14, %v5202_v8, %v5203_v11  ;;  %v5224_v59 = vrot.slane %v5073_v63, 5  ;;  %v5648_v31 = vrot.slane %v5551_v42, 5 }
 0x2c7   : > { %v6911_v25 = vcombine.low %v5194_v1, %v5197_v60  ;;  %v6912_v30 = vcombine.low %v5201_v22, %v5204_v41  ;;  %v5222_v11 = vsel %vm9230_vm14, %v6899_v40, %v5221_v28  ;;  %v5229_v5 = vsel %vm9230_vm14, %v6900_v2, %v5228_v4  ;;  %v5536_v4 = vld [vmem:[#allocation2 + $0x30] sm:$0xe]  ;;  %v5537_v40 = vld [vmem:[#allocation2 + $0x3c] sm:$0xe]  ;;  %v7999_v2 = vld [vmem:[#allocation2 + $0x44] sm:$0x1] }
 0x2c8   : > { %v5225_v29 = vsel %vm9230_vm14, %v5223_v38, %v5224_v59  ;;  %v5079_v41 = vsel %vm4510_vm11, %v7991_v12, 0  ;;  %v5559_v12 = vsel %vm9184_vm2, %v5537_v40, 0 }
 0x2c9   : > { %v6915_v60 = vcombine.low %v5222_v11, %v5225_v29 }
 0x2cb   : > { %7512 = vmatmul.mubr.msk.bf16.gmra.mrb[28].mxu1 %vm1398_vm7, %v6907_v58  ;;  %v5070_v58 = vsel %vm4510_vm11, %v7984_v21, 0  ;;  %v5550_v21 = vsel %vm9184_vm2, %v5534_v13, 0  ;;  %v8001_v13 = vld [vmem:[#allocation2 + $0x58] sm:$0xf] }
 0x2cc   : > { %7515 = vmatprep.mubr.msk.bf16.mxu1 %vm1398_vm7, %v6908_v51  ;;  %v5210_v51 = vrot.slane %v5067_v27, 5  ;;  %v5217_v46 = vrot.slane %v5070_v58, 5  ;;  %v5650_v27 = vrot.slane %v5648_v31, 4  ;;  %v7994_v58 = vld [vmem:[#allocation2 + $0x34] sm:$0xf]  ;;  %v6934_v43 = vrot.slane %v5550_v21, 9 }
 0x2cd   : > { %v5557_v7 = vsel %vm4509_vm10, %v7994_v58, 0 }
 0x2ce   : > { %v5211_v57 = vsel %vm9230_vm14, %v5209_v16, %v5210_v51  ;;  %v5218_v55 = vsel %vm9230_vm14, %v5216_v17, %v5217_v46  ;;  %v5238_v16 = vrot.slane %v5079_v41, 5  ;;  %v5662_v46 = vrot.slane %v5557_v7, 5 }
 0x2cf   : > { %v6913_v6 = vcombine.low %v5208_v24, %v5211_v57  ;;  %v6914_v14 = vcombine.low %v5215_v18, %v5218_v55  ;;  %v5535_v57 = vld [vmem:[#allocation2 + $0x24] sm:$0xe]  ;;  %v5649_v53 = vsel %vm9230_vm14, %v6934_v43, %v5648_v31  ;;  %v5555_v55 = vsel %vm4510_vm11, %v7995_v52, 0  ;;  %v5538_v31 = vld [vmem:[#allocation2 + $0x48] sm:$0xe] }
 0x2d0   : > { %v5553_v9 = vsel %vm9184_vm2, %v5535_v57, 0  ;;  %v5664_v63 = vrot.slane %v5662_v46, 4  ;;  %v5658_v38 = vrot.slane %v5555_v55, 5  ;;  %v8004_v52 = vld [vmem:[#allocation2 + $0x68] sm:$0x1] }
 0x2d1   : > { %v5570_v55 = vsel %vm4510_vm11, %v8004_v52, 0  ;;  %v8012_v52 = vld [vmem:[#allocation2 + $0x98] sm:$0x1] }
 0x2d3   : > { %7516 = vmatmul.mubr.msk.bf16.gmra.mrb[0].mxu1 %vm1398_vm7, %v6909_v44  ;;  %v7988_v44 = vld [vmem:[#allocation2 + $0xbc] sm:$0x1] }
 0x2d4   : > { %7519 = vmatprep.mubr.msk.bf16.mxu1 %vm1398_vm7, %v6910_v33  ;;  %v5076_v49 = vsel %vm4510_vm11, %v7988_v44, 0  ;;  %v5078_v33 = vsel %vm4509_vm10, %v7989_v34, 0  ;;  %v5556_v44 = vsel %vm9184_vm2, %v5536_v4, 0  ;;  %v6935_v34 = vrot.slane %v5553_v9, 9 }
 0x2d5   : > { %v5231_v8 = vrot.slane %v5076_v49, 5  ;;  %v5235_v61 = vrot.slane %v5078_v33, 5  ;;  %v7998_v49 = vld [vmem:[#allocation2 + $0x4c] sm:$0xf]  ;;  %v6936_v39 = vrot.slane %v5556_v44, 9 }
 0x2d6   : > { %v5563_v10 = vsel %vm4509_vm10, %v7998_v49, 0 }
 0x2d7   : > { %v5232_v32 = vsel %vm9230_vm14, %v5230_v23, %v5231_v8  ;;  %v5237_v20 = vrot.slane %v5235_v61, 4  ;;  %v5236_v50 = vsel %vm9230_vm14, %v6901_v36, %v5235_v61  ;;  %v5676_v42 = vrot.slane %v5563_v10, 5  ;;  %v5539_v36 = vld [vmem:[#allocation2 + $0x54] sm:$0xe] }
 0x2d8   : > { %v6916_v1 = vcombine.low %v5229_v5, %v5232_v32  ;;  %v5663_v61 = vsel %vm9230_vm14, %v6936_v39, %v5662_v46  ;;  %v5561_v32 = vsel %vm4510_vm11, %v7999_v2, 0  ;;  %v5541_v39 = vld [vmem:[#allocation2 + $0x6c] sm:$0xe] }
 0x2d9   : > { %v5239_v51 = vsel %vm9230_vm14, %v5237_v20, %v5238_v16  ;;  %v5678_v41 = vrot.slane %v5676_v42, 4  ;;  %v5672_v20 = vrot.slane %v5561_v32, 5 }
 0x2da   : > { %v6917_v28 = vcombine.low %v5236_v50, %v5239_v51  ;;  %v5540_v50 = vld [vmem:[#allocation2 + $0x60] sm:$0xe] }
 0x2db   : > { %7520 = vmatmul.mubr.msk.bf16.gmra.mrb[4].mxu1 %vm1398_vm7, %v6911_v25  ;;  %v7992_v25 = vld [vmem:[#allocation2 + $0x20] sm:$0x1] }
 0x2dc   : > { %7523 = vmatprep.mubr.msk.bf16.mxu1 %vm1398_vm7, %v6912_v30  ;;  %v5552_v22 = vsel %vm4510_vm11, %v7992_v25, 0  ;;  %v5554_v30 = vsel %vm4509_vm10, %v7993_v15, 0  ;;  %v5562_v25 = vsel %vm9184_vm2, %v5538_v31, 0  ;;  %v6937_v15 = vrot.slane %v5559_v12, 9  ;;  %v8008_v31 = vld [vmem:[#allocation2 + $0x80] sm:$0x1] }
 0x2dd   : > { %v5651_v17 = vrot.slane %v5552_v22, 5  ;;  %v5655_v3 = vrot.slane %v5554_v30, 5  ;;  %v8002_v22 = vld [vmem:[#allocation2 + $0x64] sm:$0xf]  ;;  %v6938_v21 = vrot.slane %v5562_v25, 9 }
 0x2de   : > { %v5569_v26 = vsel %vm4509_vm10, %v8002_v22, 0  ;;  %v8009_v12 = vld [vmem:[#allocation2 + $0x88] sm:$0xf]  ;;  %v8010_v25 = vld [vmem:[#allocation2 + $0x94] sm:$0xf] }
 0x2df   : > { %v5652_v0 = vsel %vm9230_vm14, %v5650_v27, %v5651_v17  ;;  %v5657_v47 = vrot.slane %v5655_v3, 4  ;;  %v5656_v8 = vsel %vm9230_vm14, %v6935_v34, %v5655_v3  ;;  %v5690_v7 = vrot.slane %v5569_v26, 5 }
 0x2e0   : > { %v6950_v24 = vcombine.low %v5649_v53, %v5652_v0  ;;  %v5677_v43 = vsel %vm9230_vm14, %v6938_v21, %v5676_v42  ;;  %v8003_v0 = vld [vmem:[#allocation2 + $0x5c] sm:$0x1]  ;;  %v5581_v22 = vsel %vm4509_vm10, %v8010_v25, 0  ;;  %v8017_v25 = vld [vmem:[#allocation2 + $0xb8] sm:$0xf] }
 0x2e1   : > { %v5659_v33 = vsel %vm9230_vm14, %v5657_v47, %v5658_v38  ;;  %v5567_v46 = vsel %vm4510_vm11, %v8003_v0, 0  ;;  %v5692_v47 = vrot.slane %v5690_v7, 4  ;;  %v5693_v38 = vrot.slane %v5570_v55, 5  ;;  %v8011_v0 = vld [vmem:[#allocation2 + $0x8c] sm:$0x1] }
 0x2e2   : > { %v6951_v29 = vcombine.low %v5656_v8, %v5659_v33  ;;  %v5686_v9 = vrot.slane %v5567_v46, 5  ;;  %v8007_v8 = vld [vmem:[#allocation2 + $0x74] sm:$0x1]  ;;  %v5579_v46 = vsel %vm4510_vm11, %v8011_v0, 0  ;;  %v5582_v55 = vsel %vm4510_vm11, %v8012_v52, 0 }
 0x2e3   : > { %7524 = vmatmul.mubr.msk.bf16.gmra.mrb[8].mxu1 %vm1398_vm7, %v6913_v6  ;;  %v7996_v6 = vld [vmem:[#allocation2 + $0x38] sm:$0x1]  ;;  %v5694_v34 = vsel %vm9230_vm14, %v5692_v47, %v5693_v38  ;;  %v5573_v40 = vsel %vm4510_vm11, %v8007_v8, 0 }
 0x2e4   : > { %7527 = vmatprep.mubr.msk.bf16.mxu1 %vm1398_vm7, %v6914_v14  ;;  %v5558_v18 = vsel %vm4510_vm11, %v7996_v6, 0  ;;  %v5560_v14 = vsel %vm4509_vm10, %v7997_v45, 0  ;;  %v8005_v6 = vld [vmem:[#allocation2 + $0x70] sm:$0xf]  ;;  %v8006_v45 = vld [vmem:[#allocation2 + $0x7c] sm:$0xf] }
 0x2e5   : > { %v5665_v23 = vrot.slane %v5558_v18, 5  ;;  %v5669_v59 = vrot.slane %v5560_v14, 5  ;;  %v5572_v18 = vsel %vm4509_vm10, %v8005_v6, 0  ;;  %v5575_v14 = vsel %vm4509_vm10, %v8006_v45, 0  ;;  %v8013_v6 = vld [vmem:[#allocation2 + $0xa0] sm:$0xf] }
 0x2e6   : > { %v5697_v10 = vrot.slane %v5572_v18, 5  ;;  %v5704_v33 = vrot.slane %v5575_v14, 5  ;;  %v5584_v18 = vsel %vm4509_vm10, %v8013_v6, 0  ;;  %v8014_v14 = vld [vmem:[#allocation2 + $0xac] sm:$0xf] }
 0x2e7   : > { %v5666_v35 = vsel %vm9230_vm14, %v5664_v63, %v5665_v23  ;;  %v5671_v54 = vrot.slane %v5669_v59, 4  ;;  %v5670_v37 = vsel %vm9230_vm14, %v6937_v15, %v5669_v59  ;;  %v5568_v63 = vsel %vm9184_vm2, %v5540_v50, 0  ;;  %v5544_v50 = vld [vmem:[#allocation2 + $0x90] sm:$0xe] }
 0x2e8   : > { %v6952_v11 = vcombine.low %v5663_v61, %v5666_v35  ;;  %v6940_v23 = vrot.slane %v5568_v63, 9  ;;  %v5699_v32 = vrot.slane %v5697_v10, 4  ;;  %v5714_v63 = vrot.slane %v5579_v46, 5 }
 0x2e9   : > { %v5673_v30 = vsel %vm9230_vm14, %v5671_v54, %v5672_v20  ;;  %v5580_v45 = vsel %vm9184_vm2, %v5544_v50, 0  ;;  %v5587_v38 = vsel %vm4509_vm10, %v8014_v14, 0 }
 0x2ea   : > { %v6953_v3 = vcombine.low %v5670_v37, %v5673_v30  ;;  %v5691_v42 = vsel %vm9230_vm14, %v6940_v23, %v5690_v7  ;;  %v5718_v7 = vrot.slane %v5581_v22, 5  ;;  %v5590_v22 = vsel %vm4509_vm10, %v8017_v25, 0 }
 0x2eb   : > { %7528 = vmatmul.mubr.msk.bf16.gmra.mrb[12].mxu1 %vm1398_vm7, %v6915_v60  ;;  %v8000_v60 = vld [vmem:[#allocation2 + $0x50] sm:$0x1]  ;;  %v6956_v2 = vcombine.low %v5691_v42, %v5694_v34  ;;  %v5732_v42 = vrot.slane %v5587_v38, 5 }
 0x2ec   : > { %7531 = vmatprep.mubr.msk.bf16.mxu1 %vm1398_vm7, %v6916_v1  ;;  %v5564_v5 = vsel %vm4510_vm11, %v8000_v60, 0  ;;  %v5566_v1 = vsel %vm4509_vm10, %v8001_v13, 0  ;;  %v5571_v60 = vsel %vm9184_vm2, %v5541_v39, 0  ;;  %v5720_v47 = vrot.slane %v5718_v7, 4 }
 0x2ed   : > { %v5679_v27 = vrot.slane %v5564_v5, 5  ;;  %v5683_v16 = vrot.slane %v5566_v1, 5  ;;  %v5706_v5 = vrot.slane %v5704_v33, 4  ;;  %v5700_v1 = vrot.slane %v5573_v40, 5  ;;  %v5545_v40 = vld [vmem:[#allocation2 + $0x9c] sm:$0xe] }
 0x2ee   : > { %v6941_v15 = vrot.slane %v5571_v60, 9  ;;  %v6944_v39 = vrot.slane %v5580_v45, 9 }
 0x2ef   : > { %v5680_v58 = vsel %vm9230_vm14, %v5678_v41, %v5679_v27  ;;  %v5685_v53 = vrot.slane %v5683_v16, 4  ;;  %v5578_v41 = vsel %vm4509_vm10, %v8009_v12, 0  ;;  %v5701_v30 = vsel %vm9230_vm14, %v5699_v32, %v5700_v1  ;;  %v8015_v32 = vld [vmem:[#allocation2 + $0xa4] sm:$0x1]  ;;  %v8016_v12 = vld [vmem:[#allocation2 + $0xb0] sm:$0x1] }
 0x2f0   : > { %v5698_v37 = vsel %vm9230_vm14, %v6941_v15, %v5697_v10  ;;  %v5583_v1 = vsel %vm9184_vm2, %v5545_v40, 0 }
 0x2f1   : > { %v5687_v49 = vsel %vm9230_vm14, %v5685_v53, %v5686_v9 }
 0x2f3   : > { %7532 = vmatmul.mubr.msk.bf16.gmra.mrb[16].mxu1 %vm1398_vm7, %v6917_v28  ;;  %v6954_v28 = vcombine.low %v5677_v43, %v5680_v58 }
 0x2f4   : > { %7537 = vmatprep.mubr.msk.bf16.mxu1 %vm1398_vm7, %v6950_v24  ;;  %v5565_v24 = vsel %vm9184_vm2, %v5539_v36, 0  ;;  %v5543_v36 = vld [vmem:[#allocation2 + $0x84] sm:$0xe] }
 0x2f5   : > { %v6939_v44 = vrot.slane %v5565_v24, 9  ;;  %v5577_v24 = vsel %vm9184_vm2, %v5543_v36, 0  ;;  %v5739_v36 = vrot.slane %v5590_v22, 5 }
 0x2f6   : > { %v6943_v23 = vrot.slane %v5577_v24, 9 }
 0x2f7   : > { %v5684_v59 = vsel %vm9230_vm14, %v6939_v44, %v5683_v16  ;;  %v5711_v16 = vrot.slane %v5578_v41, 5  ;;  %v5588_v41 = vsel %vm4510_vm11, %v8016_v12, 0  ;;  %v5741_v38 = vrot.slane %v5739_v36, 4 }
 0x2f8   : > { %v6955_v35 = vcombine.low %v5684_v59, %v5687_v49  ;;  %v5721_v49 = vrot.slane %v5582_v55, 5 }
 0x2f9   : > { %v5713_v53 = vrot.slane %v5711_v16, 4  ;;  %v5712_v8 = vsel %vm9230_vm14, %v6943_v23, %v5711_v16 }
 0x2fb   : > { %7538 = vmatmul.mubr.msk.bf16.vlgmr.msra.gmra.mrb[20].mxu1 %vm1398_vm7, %v6951_v29  ;;  %v5542_v29 = vld [vmem:[#allocation2 + $0x78] sm:$0xe]  ;;  %v5715_v34 = vsel %vm9230_vm14, %v5713_v53, %v5714_v63  ;;  %v5547_v53 = vld [vmem:[#allocation2 + $0xb4] sm:$0xe]  ;;  %v8020_v63 = vld [vmem:[#allocation2 + $0xd0] sm:$0xf] }
 0x2fc   : > { %7541 = vmatprep.mubr.msk.bf16.mxu1 %vm1398_vm7, %v6952_v11  ;;  %v5576_v11 = vsel %vm4510_vm11, %v8008_v31, 0  ;;  %v5574_v20 = vsel %vm9184_vm2, %v5542_v29, 0  ;;  %v6959_v29 = vcombine.low %v5712_v8, %v5715_v34  ;;  %v5585_v31 = vsel %vm4510_vm11, %v8015_v32, 0  ;;  %v5549_v34 = vld [vmem:[#allocation2 + $0xcc] sm:$0xe] }
 0x2fd   : > { %v5707_v27 = vrot.slane %v5576_v11, 5  ;;  %v6942_v21 = vrot.slane %v5574_v20, 9  ;;  %v5546_v11 = vld [vmem:[#allocation2 + $0xa8] sm:$0xe]  ;;  %v5734_v20 = vrot.slane %v5732_v42, 4  ;;  %v5596_v45 = vsel %vm4509_vm10, %v8020_v63, 0 }
 0x2fe   : > { %v5586_v15 = vsel %vm9184_vm2, %v5546_v11, 0  ;;  %v5595_v40 = vsel %vm9184_vm2, %v5549_v34, 0 }
 0x2ff   : > { %v9671_v17 = vpop.f32.mrb[44].mxu0  ;;  %v5708_v58 = vsel %vm9230_vm14, %v5706_v5, %v5707_v27  ;;  %v5705_v43 = vsel %vm9230_vm14, %v6942_v21, %v5704_v33  ;;  %v5725_v33 = vrot.slane %v5584_v18, 5  ;;  %v5728_v27 = vrot.slane %v5585_v31, 5  ;;  %v5548_v18 = vld [vmem:[#allocation2 + $0xc0] sm:$0xe] }
 0x300   : > { %v9675_v51 = vpop.f32.mrb[45].mxu0  ;;  %v5735_v21 = vrot.slane %v5588_v41, 5  ;;  %v5592_v62 = vsel %vm9184_vm2, %v5548_v18, 0  ;;  %v6949_v41 = vrot.slane %v5595_v40, 9 }
 0x301   : > { %v9681_v57 = vpop.f32.mrb[46].mxu0  ;;  %v5727_v5 = vrot.slane %v5725_v33, 4  ;;  %v6948_v11 = vrot.slane %v5592_v62, 9 }
 0x302   : > { %v9685_v4 = vpop.f32.mrb[47].mxu0  ;;  %v5736_v0 = vsel %vm9230_vm14, %v5734_v20, %v5735_v21 }
 0x303   : > { %7542 = vmatmul.mubr.msk.bf16.gmra.mrb[24].mxu1 %vm1398_vm7, %v6953_v3  ;;  %v6957_v3 = vcombine.low %v5698_v37, %v5701_v30  ;;  %v8018_v30 = vld [vmem:[#allocation2 + $0xc4] sm:$0xf]  ;;  %v5729_v37 = vsel %vm9230_vm14, %v5727_v5, %v5728_v27 }
 0x304   : > { %7545 = vmatprep.mubr.msk.bf16.mxu1 %vm1398_vm7, %v6954_v28  ;;  %v6958_v28 = vcombine.low %v5705_v43, %v5708_v58  ;;  %v5593_v16 = vsel %vm4509_vm10, %v8018_v30, 0  ;;  %v6946_v43 = vrot.slane %v5586_v15, 9 }
 0x305   : > { %v5746_v46 = vrot.slane %v5593_v16, 5 }
 0x306   : > { %v5733_v24 = vsel %vm9230_vm14, %v6946_v43, %v5732_v42  ;;  %v5753_v42 = vrot.slane %v5596_v45, 5 }
 0x307   : > { %v6962_v14 = vcombine.low %v5733_v24, %v5736_v0  ;;  %v5747_v25 = vsel %vm9230_vm14, %v6948_v11, %v5746_v46 }
 0x308   : > { %v5755_v48 = vrot.slane %v5753_v42, 4  ;;  %v5754_v30 = vsel %vm9230_vm14, %v6949_v41, %v5753_v42 }
 0x309   : > { %v9707_v61 = vpop.f32.mrb[48].mxu0 }
 0x30a   : > { %v9711_v54 = vpop.f32.mrb[49].mxu0 }
 0x30b   : > { %7546 = vmatmul.mubr.msk.bf16.gmra.mrb[28].mxu1 %vm1398_vm7, %v6955_v35  ;;  %v9718_v13 = vpop.f32.mrb[50].mxu0  ;;  %v5722_v35 = vsel %vm9230_vm14, %v5720_v47, %v5721_v49  ;;  %v8019_v47 = vld [vmem:[#allocation2 + $0xbc] sm:$0x1]  ;;  %v8021_v49 = vld [vmem:[#allocation2 + $0xc8] sm:$0x1] }
 0x30c   : > { %7549 = vmatprep.mubr.msk.bf16.mxu1 %vm1398_vm7, %v6956_v2  ;;  %v9725_v26 = vpop.f32.mrb[51].mxu0  ;;  %v5719_v2 = vsel %vm9230_vm14, %v6944_v39, %v5718_v7  ;;  %v6945_v7 = vrot.slane %v5583_v1, 9  ;;  %v5591_v6 = vsel %vm4510_vm11, %v8019_v47, 0  ;;  %v5594_v23 = vsel %vm4510_vm11, %v8021_v49, 0 }
 0x30d   : > { %v6960_v60 = vcombine.low %v5719_v2, %v5722_v35  ;;  %v5748_v39 = vrot.slane %v5746_v46, 4  ;;  %v5742_v35 = vrot.slane %v5591_v6, 5  ;;  %v5749_v8 = vrot.slane %v5594_v23, 5 }
 0x30f   : > { %v5743_v31 = vsel %vm9230_vm14, %v5741_v38, %v5742_v35 }
 0x313   : > { %7550 = vmatmul.mubr.msk.bf16.gmra.mrb[0].mxu1 %vm1398_vm7, %v6957_v3  ;;  %v9744_v9 = vpop.f32.mrb[52].mxu0 }
 0x314   : > { %7553 = vmatprep.mubr.msk.bf16.mxu1 %vm1398_vm7, %v6958_v28  ;;  %v9751_v44 = vpop.f32.mrb[53].mxu0  ;;  %v5726_v28 = vsel %vm9230_vm14, %v6945_v7, %v5725_v33  ;;  %v5589_v33 = vsel %vm9184_vm2, %v5547_v53, 0 }
 0x315   : > { %v9753_v10 = vpop.f32.mrb[54].mxu0  ;;  %v6961_v55 = vcombine.low %v5726_v28, %v5729_v37  ;;  %v6947_v32 = vrot.slane %v5589_v33, 9 }
 0x316   : > { %v9757_v59 = vpop.f32.mrb[55].mxu0 }
 0x317   : > { %v5740_v12 = vsel %vm9230_vm14, %v6947_v32, %v5739_v36 }
 0x318   : > { %v6963_v19 = vcombine.low %v5740_v12, %v5743_v31 }
 0x31b   : > { %7554 = vmatmul.mubr.msk.bf16.gmra.mrb[4].mxu1 %vm1398_vm7, %v6959_v29  ;;  %v8022_v29 = vld [vmem:[#allocation2 + $0xd4] sm:$0x1] }
 0x31c   : > { %7557 = vmatprep.mubr.msk.bf16.mxu1 %vm1398_vm7, %v6960_v60  ;;  %v5597_v2 = vsel %vm4510_vm11, %v8022_v29, 0  ;;  %v5750_v60 = vsel %vm9230_vm14, %v5748_v39, %v5749_v8 }
 0x31d   : > { %v9779_v58 = vpop.f32.mrb[56].mxu0  ;;  %v5756_v1 = vrot.slane %v5597_v2, 5  ;;  %v6964_v27 = vcombine.low %v5747_v25, %v5750_v60 }
 0x31e   : > { %v9783_v3 = vpop.f32.mrb[57].mxu0 }
 0x31f   : > { %v9787_v50 = vpop.f32.mrb[58].mxu0  ;;  %v5757_v16 = vsel %vm9230_vm14, %v5755_v48, %v5756_v1 }
 0x320   : > { %v9791_v52 = vpop.f32.mrb[59].mxu0  ;;  %v6965_v21 = vcombine.low %v5754_v30, %v5757_v16 }
 0x323   : > { %7558 = vmatmul.mubr.msk.bf16.gmra.mrb[8].mxu1 %vm1398_vm7, %v6961_v55 }
 0x324   : > { %7561 = vmatprep.mubr.msk.bf16.mxu1 %vm1398_vm7, %v6962_v14 }
 0x327   : > { %v9815_v5 = vpop.f32.mrb[60].mxu0 }
 0x328   : > { %v9819_v20 = vpop.f32.mrb[61].mxu0 }
 0x329   : > { %v9823_v22 = vpop.f32.mrb[62].mxu0 }
 0x32a   : > { %v9825_v15 = vpop.f32.mrb[63].mxu0 }
 0x32b   : > { %7562 = vmatmul.mubr.msk.bf16.gmra.mrb[12].mxu1 %vm1398_vm7, %v6963_v19 }
 0x32c   : > { %7565 = vmatprep.mubr.msk.bf16.mxu1 %vm1398_vm7, %v6964_v27 }
 0x333   : > { %7566 = vmatmul.mubr.msk.bf16.gmra.mrb[16].mxu1 %vm1398_vm7, %v6965_v21 }
 0x33e   : > { %v7369_v7 = vpop.f32.mrb[32].mxu0 }
 0x33f   : > { %v2865_v37 = vpop.f32.mrb[33].mxu0 }
 0x340   : > { %v7370_v36 = vpop.f32.mrb[34].mxu0 }
 0x341   : > { %v2868_v43 = vpop.f32.mrb[35].mxu0 }
 0x34d   : > { %v7373_v0 = vpop.f32.mrb[36].mxu0 }
 0x34e   : > { %v2881_v46 = vpop.f32.mrb[37].mxu0 }
 0x34f   : > { %v7374_v28 = vpop.f32.mrb[38].mxu0 }
 0x350   : > { %v2884_v53 = vpop.f32.mrb[39].mxu0 }
 0x35a   : > { %v7377_v55 = vpop.f32.mrb[40].mxu0 }
 0x35b   : > { %v2897_v24 = vpop.f32.mrb[41].mxu0 }
 0x35c   : > { %v7378_v47 = vpop.f32.mrb[42].mxu0 }
 0x35d   : > { %v2900_v6 = vpop.f32.mrb[43].mxu0 }
 0x3ce   : > { %v7539_v18 = vpop.f32.mrb[20].mxu1 }
 0x3cf   : > { %v7605_v63 = vadd.f32 %v7539_v18, %v7369_v7  ;;  %v5893_v45 = vpop.f32.mrb[21].mxu1 }
 0x3d0   : > { %v7606_v14 = vadd.f32 %v5893_v45, %v2865_v37  ;;  %v7540_v38 = vpop.f32.mrb[22].mxu1 }
 0x3d1   : > { %v6061_v49 = vadd.f32 %v7605_v63, %v9837_v56  ;;  %v7607_v23 = vadd.f32 %v7540_v38, %v7370_v36  ;;  %v5896_v34 = vpop.f32.mrb[23].mxu1 }
 0x3d2   : > { %v6059_v33 = vadd.f32 %v7606_v14, %v9837_v56  ;;  %v7608_v39 = vadd.f32 %v5896_v34, %v2868_v43 }
 0x3d3   : > { %v6062_v35 = vadd.f32 %v7607_v23, %v9837_v56  ;;  %v6093_v42 = vmax.f32 %v6061_v49, 0.0 }
 0x3d4   : > { %v6060_v62 = vadd.f32 %v7608_v39, %v9837_v56  ;;  %v6091_v40 = vmax.f32 %v6059_v33, 0.0 }
 0x3d5   : > { %v6094_v8 = vmax.f32 %v6062_v35, 0.0 }
 0x3d6   : > { %v6092_v29 = vmax.f32 %v6060_v62, 0.0  ;;  %v7543_v2 = vpop.f32.mrb[24].mxu1 }
 0x3d7   : > { %v6124_v32 = vpack.c.bf16 %v6094_v8, %v6093_v42  ;;  %v7609_v31 = vadd.f32 %v7543_v2, %v7373_v0  ;;  %v5909_v11 = vpop.f32.mrb[25].mxu1 }
 0x3d8   : > { %v6123_v60 = vpack.c.bf16 %v6092_v29, %v6091_v40  ;;  %v7610_v12 = vadd.f32 %v5909_v11, %v2881_v46  ;;  %v7544_v41 = vpop.f32.mrb[26].mxu1 }
 0x3d9   : > { %v6065_v48 = vadd.f32 %v7609_v31, %v9837_v56  ;;  %v7611_v1 = vadd.f32 %v7544_v41, %v7374_v28  ;;  %v5912_v19 = vpop.f32.mrb[27].mxu1 }
 0x3da   : > { %v6063_v25 = vadd.f32 %v7610_v12, %v9837_v56  ;;  %v7612_v27 = vadd.f32 %v5912_v19, %v2884_v53  ;;  %7571 = vmatprep.mubr.msk.bf16.mxu0 %vm1398_vm7, %v6123_v60 }
 0x3db   : > { %v6066_v30 = vadd.f32 %v7611_v1, %v9837_v56  ;;  %7572 = vmatmul.mubr.msk.bf16.vlgmr.msra.gmra.mrb[64].mxu0 %vm1398_vm7, %v6124_v32  ;;  %v6097_v21 = vmax.f32 %v6065_v48, 0.0 }
 0x3dc   : > { %v6064_v16 = vadd.f32 %v7612_v27, %v9837_v56  ;;  %v6095_v37 = vmax.f32 %v6063_v25, 0.0 }
 0x3dd   : > { %v6098_v7 = vmax.f32 %v6066_v30, 0.0 }
 0x3de   : > { %v6096_v36 = vmax.f32 %v6064_v16, 0.0  ;;  %v7547_v43 = vpop.f32.mrb[28].mxu1 }
 0x3df   : > { %v6126_v0 = vpack.c.bf16 %v6098_v7, %v6097_v21  ;;  %v7613_v46 = vadd.f32 %v7547_v43, %v7377_v55  ;;  %v5925_v28 = vpop.f32.mrb[29].mxu1 }
 0x3e0   : > { %v6125_v18 = vpack.c.bf16 %v6096_v36, %v6095_v37  ;;  %v7614_v63 = vadd.f32 %v5925_v28, %v2897_v24  ;;  %v7548_v45 = vpop.f32.mrb[30].mxu1 }
 0x3e1   : > { %v6069_v53 = vadd.f32 %v7613_v46, %v9837_v56  ;;  %v7615_v14 = vadd.f32 %v7548_v45, %v7378_v47  ;;  %v5928_v38 = vpop.f32.mrb[31].mxu1 }
 0x3e2   : > { %v6067_v49 = vadd.f32 %v7614_v63, %v9837_v56  ;;  %v7616_v23 = vadd.f32 %v5928_v38, %v2900_v6  ;;  %7575 = vmatprep.mubr.msk.bf16.mxu0 %vm1398_vm7, %v6125_v18 }
 0x3e3   : > { %v6070_v34 = vadd.f32 %v7615_v14, %v9837_v56  ;;  %7576 = vmatmul.mubr.msk.bf16.gmra.mrb[68].mxu0 %vm1398_vm7, %v6126_v0  ;;  %v6101_v55 = vmax.f32 %v6069_v53, 0.0 }
 0x3e4   : > { %v6068_v33 = vadd.f32 %v7616_v23, %v9837_v56  ;;  %v6099_v35 = vmax.f32 %v6067_v49, 0.0 }
 0x3e5   : > { %v6102_v39 = vmax.f32 %v6070_v34, 0.0 }
 0x3e6   : > { %v6100_v24 = vmax.f32 %v6068_v33, 0.0  ;;  %v7551_v62 = vpop.f32.mrb[0].mxu1 }
 0x3e7   : > { %v6128_v42 = vpack.c.bf16 %v6102_v39, %v6101_v55  ;;  %v7617_v47 = vadd.f32 %v7551_v62, %v9671_v17  ;;  %v5941_v8 = vpop.f32.mrb[1].mxu1 }
 0x3e8   : > { %v6127_v40 = vpack.c.bf16 %v6100_v24, %v6099_v35  ;;  %v7618_v6 = vadd.f32 %v5941_v8, %v9675_v51  ;;  %v7552_v29 = vpop.f32.mrb[2].mxu1 }
 0x3e9   : > { %v6073_v2 = vadd.f32 %v7617_v47, %v9837_v56  ;;  %v7619_v32 = vadd.f32 %v7552_v29, %v9681_v57  ;;  %v5944_v31 = vpop.f32.mrb[3].mxu1 }
 0x3ea   : > { %v6071_v11 = vadd.f32 %v7618_v6, %v9837_v56  ;;  %v7620_v60 = vadd.f32 %v5944_v31, %v9685_v4  ;;  %7579 = vmatprep.mubr.msk.bf16.mxu0 %vm1398_vm7, %v6127_v40 }
 0x3eb   : > { %v6074_v12 = vadd.f32 %v7619_v32, %v9837_v56  ;;  %7580 = vmatmul.mubr.msk.bf16.gmra.mrb[72].mxu0 %vm1398_vm7, %v6128_v42  ;;  %v6105_v41 = vmax.f32 %v6073_v2, 0.0 }
 0x3ec   : > { %v6072_v17 = vadd.f32 %v7620_v60, %v9837_v56  ;;  %v6103_v48 = vmax.f32 %v6071_v11, 0.0 }
 0x3ed   : > { %v6106_v51 = vmax.f32 %v6074_v12, 0.0 }
 0x3ee   : > { %v6104_v1 = vmax.f32 %v6072_v17, 0.0  ;;  %v7555_v19 = vpop.f32.mrb[4].mxu1 }
 0x3ef   : > { %v6130_v25 = vpack.c.bf16 %v6106_v51, %v6105_v41  ;;  %v7621_v57 = vadd.f32 %v7555_v19, %v9707_v61  ;;  %v5957_v27 = vpop.f32.mrb[5].mxu1 }
 0x3f0   : > { %v6129_v30 = vpack.c.bf16 %v6104_v1, %v6103_v48  ;;  %v7622_v4 = vadd.f32 %v5957_v27, %v9711_v54  ;;  %v7556_v16 = vpop.f32.mrb[6].mxu1 }
 0x3f1   : > { %v6077_v21 = vadd.f32 %v7621_v57, %v9837_v56  ;;  %v7623_v7 = vadd.f32 %v7556_v16, %v9718_v13  ;;  %v5960_v37 = vpop.f32.mrb[7].mxu1 }
 0x3f2   : > { %v6075_v36 = vadd.f32 %v7622_v4, %v9837_v56  ;;  %v7624_v43 = vadd.f32 %v5960_v37, %v9725_v26  ;;  %7583 = vmatprep.mubr.msk.bf16.mxu0 %vm1398_vm7, %v6129_v30 }
 0x3f3   : > { %v6078_v0 = vadd.f32 %v7623_v7, %v9837_v56  ;;  %7584 = vmatmul.mubr.msk.bf16.gmra.mrb[76].mxu0 %vm1398_vm7, %v6130_v25  ;;  %v6109_v46 = vmax.f32 %v6077_v21, 0.0 }
 0x3f4   : > { %v6076_v61 = vadd.f32 %v7624_v43, %v9837_v56  ;;  %v6107_v28 = vmax.f32 %v6075_v36, 0.0 }
 0x3f5   : > { %v6110_v54 = vmax.f32 %v6078_v0, 0.0 }
 0x3f6   : > { %v6108_v18 = vmax.f32 %v6076_v61, 0.0  ;;  %v7559_v63 = vpop.f32.mrb[8].mxu1  ;;  %v6361_v61 = vld [vmem:[%s8349_s11 + $0x10] sm:$0xff] }
 0x3f7   : > { %v6132_v45 = vpack.c.bf16 %v6110_v54, %v6109_v46  ;;  %v7625_v13 = vadd.f32 %v7559_v63, %v9744_v9  ;;  %v5973_v53 = vpop.f32.mrb[9].mxu1  ;;  %v6359_v54 = vld [vmem:[%s8349_s11] sm:$0xff]  ;;  %v6362_v63 = vld [vmem:[%s8349_s11 + $0x18] sm:$0xff] }
 0x3f8   : > { %v6131_v14 = vpack.c.bf16 %v6108_v18, %v6107_v28  ;;  %v7626_v26 = vadd.f32 %v5973_v53, %v9751_v44  ;;  %v7560_v38 = vpop.f32.mrb[10].mxu1 }
 0x3f9   : > { %v6081_v49 = vadd.f32 %v7625_v13, %v9837_v56  ;;  %v7627_v23 = vadd.f32 %v7560_v38, %v9753_v10  ;;  %v5976_v34 = vpop.f32.mrb[11].mxu1 }
 0x3fa   : > { %v6079_v33 = vadd.f32 %v7626_v26, %v9837_v56  ;;  %v7628_v55 = vadd.f32 %v5976_v34, %v9757_v59  ;;  %7587 = vmatprep.mubr.msk.bf16.mxu0 %vm1398_vm7, %v6131_v14  ;;  %v6360_v14 = vld [vmem:[%s8349_s11 + $0x8] sm:$0xff] }
 0x3fb   : > { %v6082_v39 = vadd.f32 %v7627_v23, %v9837_v56  ;;  %7588 = vmatmul.mubr.msk.bf16.gmra.mrb[80].mxu0 %vm1398_vm7, %v6132_v45  ;;  %v6113_v35 = vmax.f32 %v6081_v49, 0.0 }
 0x3fc   : > { %v6080_v9 = vadd.f32 %v7628_v55, %v9837_v56  ;;  %v6111_v24 = vmax.f32 %v6079_v33, 0.0 }
 0x3fd   : > { %v6114_v44 = vmax.f32 %v6082_v39, 0.0 }
 0x3fe   : > { %v6112_v62 = vmax.f32 %v6080_v9, 0.0  ;;  %v7563_v42 = vpop.f32.mrb[12].mxu1 }
 0x3ff   : > { %v6134_v47 = vpack.c.bf16 %v6114_v44, %v6113_v35  ;;  %v7629_v10 = vadd.f32 %v7563_v42, %v9779_v58  ;;  %v5989_v8 = vpop.f32.mrb[13].mxu1  ;;  %v6365_v35 = vld [vmem:[%s8349_s11 + $0x30] sm:$0xff] }
 0x400   : > { %v6133_v40 = vpack.c.bf16 %v6112_v62, %v6111_v24  ;;  %v7630_v59 = vadd.f32 %v5989_v8, %v9783_v3  ;;  %v7564_v6 = vpop.f32.mrb[14].mxu1  ;;  %v6363_v62 = vld [vmem:[%s8349_s11 + $0x20] sm:$0xff] }
 0x401   : > { %v6085_v29 = vadd.f32 %v7629_v10, %v9837_v56  ;;  %v7631_v2 = vadd.f32 %v7564_v6, %v9787_v50  ;;  %v5992_v32 = vpop.f32.mrb[15].mxu1  ;;  %v6366_v10 = vld [vmem:[%s8349_s11 + $0x38] sm:$0xff]  ;;  %v6364_v6 = vld [vmem:[%s8349_s11 + $0x28] sm:$0xff] }
 0x402   : > { %v6083_v31 = vadd.f32 %v7630_v59, %v9837_v56  ;;  %v7632_v11 = vadd.f32 %v5992_v32, %v9791_v52  ;;  %7591 = vmatprep.mubr.msk.bf16.mxu0 %vm1398_vm7, %v6133_v40 }
 0x403   : > { %v6086_v60 = vadd.f32 %v7631_v2, %v9837_v56  ;;  %7592 = vmatmul.mubr.msk.bf16.gmra.mrb[84].mxu0 %vm1398_vm7, %v6134_v47  ;;  %v6117_v12 = vmax.f32 %v6085_v29, 0.0 }
 0x404   : > { %v6084_v58 = vadd.f32 %v7632_v11, %v9837_v56  ;;  %v6115_v17 = vmax.f32 %v6083_v31, 0.0 }
 0x405   : > { %v6118_v3 = vmax.f32 %v6086_v60, 0.0 }
 0x406   : > { %v6116_v41 = vmax.f32 %v6084_v58, 0.0  ;;  %v7567_v51 = vpop.f32.mrb[16].mxu1 }
 0x407   : > { %v6136_v48 = vpack.c.bf16 %v6118_v3, %v6117_v12  ;;  %v7633_v50 = vadd.f32 %v7567_v51, %v9815_v5  ;;  %v6005_v1 = vpop.f32.mrb[17].mxu1 }
 0x408   : > { %v6135_v19 = vpack.c.bf16 %v6116_v41, %v6115_v17  ;;  %v7634_v52 = vadd.f32 %v6005_v1, %v9819_v20  ;;  %v7568_v25 = vpop.f32.mrb[18].mxu1  ;;  %v6369_v17 = vld [vmem:[%s8349_s11 + $0x50] sm:$0xff] }
 0x409   : > { %v6089_v57 = vadd.f32 %v7633_v50, %v9837_v56  ;;  %v7635_v27 = vadd.f32 %v7568_v25, %v9823_v22  ;;  %v6008_v30 = vpop.f32.mrb[19].mxu1 }
 0x40a   : > { %v6087_v4 = vadd.f32 %v7634_v52, %v9837_v56  ;;  %v7636_v16 = vadd.f32 %v6008_v30, %v9825_v15  ;;  %7595 = vmatprep.mubr.msk.bf16.mxu0 %vm1398_vm7, %v6135_v19  ;;  %v9910_v15 = vld [vmem:[%s10101_s6] ss:$0 sm:$0xff]  ;;  %v6370_v19 = vld [vmem:[%s8349_s11 + $0x58] sm:$0xff] }
 0x40b   : > { %v6090_v21 = vadd.f32 %v7635_v27, %v9837_v56  ;;  %7596 = vmatmul.mubr.msk.bf16.gmra.mrb[88].mxu0 %vm1398_vm7, %v6136_v48  ;;  %v6121_v20 = vmax.f32 %v6089_v57, 0.0  ;;  %v6367_v48 = vld [vmem:[%s8349_s11 + $0x40] sm:$0xff]  ;;  %v6368_v27 = vld [vmem:[%s8349_s11 + $0x48] sm:$0xff] }
 0x40c   : > { %v6088_v5 = vadd.f32 %v7636_v16, %v9837_v56  ;;  %v6119_v37 = vmax.f32 %v6087_v4, 0.0 }
 0x40d   : > { %v6122_v7 = vmax.f32 %v6090_v21, 0.0 }
 0x40e   : > { %v6120_v22 = vmax.f32 %v6088_v5, 0.0 }
 0x40f   : > { %v6138_v36 = vpack.c.bf16 %v6122_v7, %v6121_v20 }
 0x410   : > { %v6137_v43 = vpack.c.bf16 %v6120_v22, %v6119_v37 }
 0x412   : > { %7599 = vmatprep.mubr.msk.bf16.mxu0 %vm1398_vm7, %v6137_v43 }
 0x413   : > { %7600 = vmatmul.mubr.msk.bf16.gmra.mrb[92].mxu0 %vm1398_vm7, %v6138_v36  ;;  %v6373_v36 = vld [vmem:[%s8349_s11 + $0x70] sm:$0xff] }
 0x4ae   : > { %v7573_v0 = vpop.f32.mrb[64].mxu0 }
 0x4af   : > { %v6241_v56 = vadd.f32 %v7573_v0, %v9910_v15  ;;  %v6232_v46 = vpop.f32.mrb[65].mxu0 }
 0x4b0   : > { %v6233_v28 = vadd.f32 %v9910_v15, %v6232_v46  ;;  %v7574_v18 = vpop.f32.mrb[66].mxu0 }
 0x4b1   : > { %v6393_v45 = vadd.f32 %v6361_v61, %v6241_v56  ;;  %v6244_v13 = vadd.f32 %v7574_v18, %v9910_v15  ;;  %v6235_v53 = vpop.f32.mrb[67].mxu0  ;;  %v6371_v61 = vld [vmem:[%s8349_s11 + $0x60] sm:$0xff] }
 0x4b2   : > { %v6391_v26 = vadd.f32 %v6359_v54, %v6233_v28  ;;  %v6236_v38 = vadd.f32 %v9910_v15, %v6235_v53  ;;  %v6374_v54 = vld [vmem:[%s8349_s11 + $0x78] sm:$0xff] }
 0x4b3   : > { %v6425_v49 = vmax.f32 %v6393_v45, 0.0  ;;  %v6394_v23 = vadd.f32 %v6362_v63, %v6244_v13  ;;  %v6372_v45 = vld [vmem:[%s8349_s11 + $0x68] sm:$0xff] }
 0x4b4   : > { %v6423_v34 = vmax.f32 %v6391_v26, 0.0  ;;  %v6392_v33 = vadd.f32 %v6360_v14, %v6236_v38 }
 0x4b5   : > { %6457 = vst.msk [vmem:[%s9922_s16 + $0x10] sm:$0xff] %vm386_vm0, %v6425_v49  ;;  %v6426_v55 = vmax.f32 %v6394_v23, 0.0 }
 0x4b6   : > { %6455 = vst.msk [vmem:[%s9922_s16] sm:$0xff] %vm386_vm0, %v6423_v34  ;;  %v6424_v39 = vmax.f32 %v6392_v33, 0.0  ;;  %v7577_v9 = vpop.f32.mrb[68].mxu0 }
 0x4b7   : > { %6458 = vst.msk [vmem:[%s9922_s16 + $0x18] sm:$0xff] %vm386_vm0, %v6426_v55  ;;  %v6257_v44 = vadd.f32 %v7577_v9, %v9910_v15  ;;  %v6248_v24 = vpop.f32.mrb[69].mxu0  ;;  %v6377_v55 = vld [vmem:[%s8349_s11 + $0x90] sm:$0xff] }
 0x4b8   : > { %6456 = vst.msk [vmem:[%s9922_s16 + $0x8] sm:$0xff] %vm386_vm0, %v6424_v39  ;;  %v6249_v42 = vadd.f32 %v9910_v15, %v6248_v24  ;;  %v7578_v47 = vpop.f32.mrb[70].mxu0 }
 0x4b9   : > { %v6397_v8 = vadd.f32 %v6365_v35, %v6257_v44  ;;  %v6260_v40 = vadd.f32 %v7578_v47, %v9910_v15  ;;  %v6251_v59 = vpop.f32.mrb[71].mxu0  ;;  %v6375_v35 = vld [vmem:[%s8349_s11 + $0x80] sm:$0xff] }
 0x4ba   : > { %v6395_v29 = vadd.f32 %v6363_v62, %v6249_v42  ;;  %v6252_v2 = vadd.f32 %v9910_v15, %v6251_v59  ;;  %v6378_v62 = vld [vmem:[%s8349_s11 + $0x98] sm:$0xff] }
 0x4bb   : > { %v6429_v32 = vmax.f32 %v6397_v8, 0.0  ;;  %v6398_v31 = vadd.f32 %v6366_v10, %v6260_v40  ;;  %v6376_v8 = vld [vmem:[%s8349_s11 + $0x88] sm:$0xff] }
 0x4bc   : > { %v6427_v11 = vmax.f32 %v6395_v29, 0.0  ;;  %v6396_v60 = vadd.f32 %v6364_v6, %v6252_v2 }
 0x4bd   : > { %6461 = vst.msk [vmem:[%s9922_s16 + $0x30] sm:$0xff] %vm386_vm0, %v6429_v32  ;;  %v6430_v58 = vmax.f32 %v6398_v31, 0.0 }
 0x4be   : > { %6459 = vst.msk [vmem:[%s9922_s16 + $0x20] sm:$0xff] %vm386_vm0, %v6427_v11  ;;  %v6428_v12 = vmax.f32 %v6396_v60, 0.0  ;;  %v7581_v3 = vpop.f32.mrb[72].mxu0 }
 0x4bf   : > { %6462 = vst.msk [vmem:[%s9922_s16 + $0x38] sm:$0xff] %vm386_vm0, %v6430_v58  ;;  %v6273_v41 = vadd.f32 %v7581_v3, %v9910_v15  ;;  %v6264_v51 = vpop.f32.mrb[73].mxu0  ;;  %v6381_v58 = vld [vmem:[%s8349_s11 + $0xb0] sm:$0xff] }
 0x4c0   : > { %6460 = vst.msk [vmem:[%s9922_s16 + $0x28] sm:$0xff] %vm386_vm0, %v6428_v12  ;;  %v6265_v50 = vadd.f32 %v9910_v15, %v6264_v51  ;;  %v7582_v1 = vpop.f32.mrb[74].mxu0 }
 0x4c1   : > { %v6401_v52 = vadd.f32 %v6369_v17, %v6273_v41  ;;  %v6276_v25 = vadd.f32 %v7582_v1, %v9910_v15  ;;  %v6267_v57 = vpop.f32.mrb[75].mxu0  ;;  %v6379_v17 = vld [vmem:[%s8349_s11 + $0xa0] sm:$0xff] }
 0x4c2   : > { %v6399_v30 = vadd.f32 %v6367_v48, %v6265_v50  ;;  %v6268_v4 = vadd.f32 %v9910_v15, %v6267_v57  ;;  %v6382_v48 = vld [vmem:[%s8349_s11 + $0xb8] sm:$0xff] }
 0x4c3   : > { %v6433_v16 = vmax.f32 %v6401_v52, 0.0  ;;  %v6402_v21 = vadd.f32 %v6370_v19, %v6276_v25  ;;  %v6380_v52 = vld [vmem:[%s8349_s11 + $0xa8] sm:$0xff] }
 0x4c4   : > { %v6431_v5 = vmax.f32 %v6399_v30, 0.0  ;;  %v6400_v20 = vadd.f32 %v6368_v27, %v6268_v4 }
 0x4c5   : > { %6465 = vst.msk [vmem:[%s9922_s16 + $0x50] sm:$0xff] %vm386_vm0, %v6433_v16  ;;  %v6434_v7 = vmax.f32 %v6402_v21, 0.0 }
 0x4c6   : > { %6463 = vst.msk [vmem:[%s9922_s16 + $0x40] sm:$0xff] %vm386_vm0, %v6431_v5  ;;  %v6432_v37 = vmax.f32 %v6400_v20, 0.0  ;;  %v7585_v22 = vpop.f32.mrb[76].mxu0 }
 0x4c7   : > { %6466 = vst.msk [vmem:[%s9922_s16 + $0x58] sm:$0xff] %vm386_vm0, %v6434_v7  ;;  %v6289_v43 = vadd.f32 %v7585_v22, %v9910_v15  ;;  %v6280_v0 = vpop.f32.mrb[77].mxu0  ;;  %v6385_v7 = vld [vmem:[%s8349_s11 + $0xd0] sm:$0xff] }
 0x4c8   : > { %6464 = vst.msk [vmem:[%s9922_s16 + $0x48] sm:$0xff] %vm386_vm0, %v6432_v37  ;;  %v6281_v56 = vadd.f32 %v9910_v15, %v6280_v0  ;;  %v7586_v46 = vpop.f32.mrb[78].mxu0 }
 0x4c9   : > { %v6405_v28 = vadd.f32 %v6373_v36, %v6289_v43  ;;  %v6292_v18 = vadd.f32 %v7586_v46, %v9910_v15  ;;  %v6283_v63 = vpop.f32.mrb[79].mxu0  ;;  %v6383_v36 = vld [vmem:[%s8349_s11 + $0xc0] sm:$0xff] }
 0x4ca   : > { %v6403_v13 = vadd.f32 %v6371_v61, %v6281_v56  ;;  %v6284_v53 = vadd.f32 %v9910_v15, %v6283_v63  ;;  %v6386_v61 = vld [vmem:[%s8349_s11 + $0xd8] sm:$0xff] }
 0x4cb   : > { %v6437_v14 = vmax.f32 %v6405_v28, 0.0  ;;  %v6406_v26 = vadd.f32 %v6374_v54, %v6292_v18  ;;  %v6384_v28 = vld [vmem:[%s8349_s11 + $0xc8] sm:$0xff] }
 0x4cc   : > { %v6435_v38 = vmax.f32 %v6403_v13, 0.0  ;;  %v6404_v49 = vadd.f32 %v6372_v45, %v6284_v53 }
 0x4cd   : > { %6469 = vst.msk [vmem:[%s9922_s16 + $0x70] sm:$0xff] %vm386_vm0, %v6437_v14  ;;  %v6438_v23 = vmax.f32 %v6406_v26, 0.0 }
 0x4ce   : > { %6467 = vst.msk [vmem:[%s9922_s16 + $0x60] sm:$0xff] %vm386_vm0, %v6435_v38  ;;  %v6436_v34 = vmax.f32 %v6404_v49, 0.0  ;;  %v7589_v33 = vpop.f32.mrb[80].mxu0 }
 0x4cf   : > { %6470 = vst.msk [vmem:[%s9922_s16 + $0x78] sm:$0xff] %vm386_vm0, %v6438_v23  ;;  %v6305_v39 = vadd.f32 %v7589_v33, %v9910_v15  ;;  %v6296_v9 = vpop.f32.mrb[81].mxu0  ;;  %v6389_v23 = vld [vmem:[%s8349_s11 + $0xf0] sm:$0xff] }
 0x4d0   : > { %6468 = vst.msk [vmem:[%s9922_s16 + $0x68] sm:$0xff] %vm386_vm0, %v6436_v34  ;;  %v6297_v44 = vadd.f32 %v9910_v15, %v6296_v9  ;;  %v7590_v24 = vpop.f32.mrb[82].mxu0 }
 0x4d1   : > { %v6409_v42 = vadd.f32 %v6377_v55, %v6305_v39  ;;  %v6308_v47 = vadd.f32 %v7590_v24, %v9910_v15  ;;  %v6299_v10 = vpop.f32.mrb[83].mxu0  ;;  %v6387_v55 = vld [vmem:[%s8349_s11 + $0xe0] sm:$0xff] }
 0x4d2   : > { %v6407_v40 = vadd.f32 %v6375_v35, %v6297_v44  ;;  %v6300_v59 = vadd.f32 %v9910_v15, %v6299_v10  ;;  %v6390_v35 = vld [vmem:[%s8349_s11 + $0xf8] sm:$0xff] }
 0x4d3   : > { %v6441_v6 = vmax.f32 %v6409_v42, 0.0  ;;  %v6410_v29 = vadd.f32 %v6378_v62, %v6308_v47  ;;  %v6388_v42 = vld [vmem:[%s8349_s11 + $0xe8] sm:$0xff]  ;;  %s8081_s11 = scalar_lea.vmem %s10045_s14, 4096 }
 0x4d4   : > { %v6439_v2 = vmax.f32 %v6407_v40, 0.0  ;;  %v6408_v32 = vadd.f32 %v6376_v8, %v6300_v59  ;;  %p8082_p4 = scmp.ne.s32.totalorder %s10045_s14, %s8081_s11  ;;  %p8089_p13 = scmp.lt.s32.totalorder %s8087_s10, %s8081_s11 }
 0x4d5   : > { %6473 = vst.msk [vmem:[%s9922_s16 + $0x90] sm:$0xff] %vm386_vm0, %v6441_v6  ;;  %v6442_v31 = vmax.f32 %v6410_v29, 0.0 }
 0x4d6   : > { %6471 = vst.msk [vmem:[%s9922_s16 + $0x80] sm:$0xff] %vm386_vm0, %v6439_v2  ;;  %v6440_v11 = vmax.f32 %v6408_v32, 0.0  ;;  %v7593_v60 = vpop.f32.mrb[84].mxu0  ;;  %p8083_p6 = pnand %p8082_p4, %p8295_p12  ;;  %p8090_p3 = por %p8089_p13, %p8088_p10 }
 0x4d7   : > { %6474 = vst.msk [vmem:[%s9922_s16 + $0x98] sm:$0xff] %vm386_vm0, %v6442_v31  ;;  %v6321_v12 = vadd.f32 %v7593_v60, %v9910_v15  ;;  %v6312_v3 = vpop.f32.mrb[85].mxu0 }
 0x4d8   : > { %6472 = vst.msk [vmem:[%s9922_s16 + $0x88] sm:$0xff] %vm386_vm0, %v6440_v11  ;;  %v6313_v41 = vadd.f32 %v9910_v15, %v6312_v3  ;;  %v7594_v51 = vpop.f32.mrb[86].mxu0  ;;  %p8084_p8 = pneg %p8083_p6 }
 0x4d9   : > { %v6413_v50 = vadd.f32 %v6381_v58, %v6321_v12  ;;  %v6324_v1 = vadd.f32 %v7594_v51, %v9910_v15  ;;  %v6315_v19 = vpop.f32.mrb[87].mxu0 }
 0x4da   : > { %v6411_v25 = vadd.f32 %v6379_v17, %v6313_v41  ;;  %v6316_v57 = vadd.f32 %v9910_v15, %v6315_v19  ;;  %p8091_p7 = pnand %p8090_p3, %p8084_p8 }
 0x4db   : > { %v6445_v27 = vmax.f32 %v6413_v50, 0.0  ;;  %v6414_v30 = vadd.f32 %v6382_v48, %v6324_v1 }
 0x4dc   : > { %v6443_v4 = vmax.f32 %v6411_v25, 0.0  ;;  %v6412_v16 = vadd.f32 %v6380_v52, %v6316_v57 }
 0x4dd   : > { %6477 = vst.msk [vmem:[%s9922_s16 + $0xb0] sm:$0xff] %vm386_vm0, %v6445_v27  ;;  %v6446_v21 = vmax.f32 %v6414_v30, 0.0 }
 0x4de   : > { %6475 = vst.msk [vmem:[%s9922_s16 + $0xa0] sm:$0xff] %vm386_vm0, %v6443_v4  ;;  %v6444_v5 = vmax.f32 %v6412_v16, 0.0  ;;  %v7597_v20 = vpop.f32.mrb[88].mxu0 }
 0x4df   : > { %6478 = vst.msk [vmem:[%s9922_s16 + $0xb8] sm:$0xff] %vm386_vm0, %v6446_v21  ;;  %v6337_v37 = vadd.f32 %v7597_v20, %v9910_v15  ;;  %v6328_v22 = vpop.f32.mrb[89].mxu0 }
 0x4e0   : > { %6476 = vst.msk [vmem:[%s9922_s16 + $0xa8] sm:$0xff] %vm386_vm0, %v6444_v5  ;;  %v6329_v43 = vadd.f32 %v9910_v15, %v6328_v22  ;;  %v7598_v0 = vpop.f32.mrb[90].mxu0 }
 0x4e1   : > { %v6417_v56 = vadd.f32 %v6385_v7, %v6337_v37  ;;  %v6340_v46 = vadd.f32 %v7598_v0, %v9910_v15  ;;  %v6331_v54 = vpop.f32.mrb[91].mxu0 }
 0x4e2   : > { %v6415_v18 = vadd.f32 %v6383_v36, %v6329_v43  ;;  %v6332_v63 = vadd.f32 %v9910_v15, %v6331_v54 }
 0x4e3   : > { %v6449_v45 = vmax.f32 %v6417_v56, 0.0  ;;  %v6418_v13 = vadd.f32 %v6386_v61, %v6340_v46 }
 0x4e4   : > { %v6447_v53 = vmax.f32 %v6415_v18, 0.0  ;;  %v6416_v14 = vadd.f32 %v6384_v28, %v6332_v63 }
 0x4e5   : > { %6481 = vst.msk [vmem:[%s9922_s16 + $0xd0] sm:$0xff] %vm386_vm0, %v6449_v45  ;;  %v6450_v26 = vmax.f32 %v6418_v13, 0.0 }
 0x4e6   : > { %6479 = vst.msk [vmem:[%s9922_s16 + $0xc0] sm:$0xff] %vm386_vm0, %v6447_v53  ;;  %v6448_v38 = vmax.f32 %v6416_v14, 0.0  ;;  %v7601_v49 = vpop.f32.mrb[92].mxu0 }
 0x4e7   : > { %6482 = vst.msk [vmem:[%s9922_s16 + $0xd8] sm:$0xff] %vm386_vm0, %v6450_v26  ;;  %v6353_v34 = vadd.f32 %v7601_v49, %v9910_v15  ;;  %v6344_v33 = vpop.f32.mrb[93].mxu0 }
 0x4e8   : > { %6480 = vst.msk [vmem:[%s9922_s16 + $0xc8] sm:$0xff] %vm386_vm0, %v6448_v38  ;;  %v6345_v39 = vadd.f32 %v9910_v15, %v6344_v33  ;;  %v7602_v9 = vpop.f32.mrb[94].mxu0 }
 0x4e9   : > { %v6421_v44 = vadd.f32 %v6389_v23, %v6353_v34  ;;  %v6356_v24 = vadd.f32 %v7602_v9, %v9910_v15  ;;  %v6347_v62 = vpop.f32.mrb[95].mxu0 }
 0x4ea   : > { %v6419_v47 = vadd.f32 %v6387_v55, %v6345_v39  ;;  %v6348_v10 = vadd.f32 %v9910_v15, %v6347_v62 }
 0x4eb   : > { %v6453_v8 = vmax.f32 %v6421_v44, 0.0  ;;  %v6422_v40 = vadd.f32 %v6390_v35, %v6356_v24 }
 0x4ec   : > { %v6451_v59 = vmax.f32 %v6419_v47, 0.0  ;;  %v6420_v6 = vadd.f32 %v6388_v42, %v6348_v10 }
 0x4ed   : > { %6485 = vst.msk [vmem:[%s9922_s16 + $0xf0] sm:$0xff] %vm386_vm0, %v6453_v8  ;;  %v6454_v29 = vmax.f32 %v6422_v40, 0.0 }
 0x4ee   : > { %6483 = vst.msk [vmem:[%s9922_s16 + $0xe0] sm:$0xff] %vm386_vm0, %v6451_v59  ;;  %v6452_v15 = vmax.f32 %v6420_v6, 0.0 }
 0x4ef   : > { %6486 = vst.msk [vmem:[%s9922_s16 + $0xf8] sm:$0xff] %vm386_vm0, %v6454_v29 }
 0x4f0   : > { %6484 = vst.msk [vmem:[%s9922_s16 + $0xe8] sm:$0xff] %vm386_vm0, %v6452_v15 }
 0x4f1   : > { %8094 = shalt.err (!%p8091_p7)
}
 0x4f2   : > { %s8095_s22 = scalar_lea.hbm %s10043_s29, 4096  ;;  %s8099_s16 = scalar_lea.hbm %s10102_s7, 8192 }
 0x4f3   : > { %p8096_p9 = scmp.ne.s32.totalorder %s10043_s29, %s8095_s22  ;;  %p8100_p5 = scmp.lt.u32.totalorder %s10043_s29, %s10102_s7 }
 0x4f4   : > { %p8101_p11 = scmp.lt.u32.totalorder %s8099_s16, %s8095_s22  ;;  %p8103_p4 = scmp.lt.u32.totalorder %s8095_s22, %s10043_s29 }
 0x4f5   : > { %p8097_p2 = pnand %p8096_p9, %p8295_p12 }
 0x4f6   : > { %p8102_p1 = por %p8101_p11, %p8100_p5 }
 0x4f7   : > { %p8098_p0 = pneg %p8097_p2 }
 0x4f8   : > { %p8104_p6 = por %p8103_p4, %p8102_p1 }
 0x4fa   : > { %p8105_p8 = pnand %p8104_p6, %p8098_p0 }
 0x4fc   : > { %8108 = shalt.err (!%p8105_p8)
}
 0x4fd   : > { %s8162_s30 = smov 128   ;;  %s8163_s11 = smov 8  }
 0x4fe   : > { %7878 = dma.vmem_to_hbm [thread:$0]  (%p8295_p12), %s10045_s14, 4096, %s10043_s29, %s6488_s28, %s8162_s30, %s8162_s30, %s8163_s11  }
 0x4ff PF: > { %s6516_s17 = sand.u32 1, %s8139_s24   ;;  %p10133_p10 = scmp.ne.s32.totalorder %s10107_s8, 0 }
 0x500   : > { %p10134_p13 = scmp.ge.s32.totalorder %s8151_s27, 2  ;;  %s6517_s21 = scalar_lea.sflag [#allocation5], %s6516_s17 }
 0x502   : > { %p7889_p3 = pnand %p10134_p13, %p10133_p10 }
 0x504   : > { %8134 = dma.done.wait (!%p7889_p3), %s6517_s21, 4096  }
 0x505   : > { %8136 = vsyncadd (!%p7889_p3), %s6517_s21, 4294963200  ;;  %p21_p7 = scmp.ge.s32.totalorder %s8260_s13, 4   ;;  %s10135_s24 = smov %s8143_s25 }
 0x506   : > { %s10136_s25 = smov %s8147_s26  ;;  %s10137_s26 = smov %s8291_s18 }
 0x507   : > { %s10138_s27 = smov %s8260_s13  ;;  %23 = sbr.rel (!%p21_p7) target bundleno = 6 (0x6), region = 108 }
 0x50e   :  { %6522 = vsyncpa [#allocation4], 1 }
 0x50f   :  { %6524 = vsyncpa [#allocation4 + $0x1], 1 }
 0x510   :  { %6525 = vsyncpa [#allocation7], 1 }
 0x511   :  { %6526 = vsyncpa [#allocation5], 1 }
 0x512   :  { %6528 = vsyncpa [#allocation5 + $0x1], 1 }

</bundles_post_ra>
